<compile_context>
chip_gen: v6e
topology: v6e:2x2x1
jax: 0.10.0
libtpu: 0.0.40
codegen_flags: <defaults>
</compile_context>

<pallas_src>
import functools

import jax
import jax.numpy as jnp
from jax import lax
from jax.experimental import pallas as pl
from jax.experimental.pallas import tpu as pltpu


def _round_up(x, m):
    return (x + m - 1) // m * m


def _pick_row_tile(h_out, target_rows):
    """Largest divisor of h_out that is <= target_rows (at least 1)."""
    th = min(h_out, max(1, target_rows))
    while h_out % th:
        th -= 1
    return th


def _simconv_kernel(x_ref, w_ref, b_ref, o_ref, *, kh, kw, stride, th, w_out):
    # x_ref: (Hp, Wp, Cin_pad)            whole padded image (bf16/f32)
    # w_ref: (kh*kw, Cin_pad, Cout_pad)   BN-scale-folded weights
    # b_ref: (1, Cout_pad)                folded BN bias (f32)
    # o_ref: (th, w_out, Cout_pad)        output row tile (f32, lane-dense)
    r = pl.program_id(1)
    row0 = pl.multiple_of(r * (th * stride), th * stride)
    cin_pad = x_ref.shape[-1]
    cout_pad = o_ref.shape[-1]

    acc = None
    for i in range(kh):
        for j in range(kw):
            if stride == 1:
                win = x_ref[pl.ds(row0 + i, th), j:j + w_out, :]
            else:
                win = x_ref[pl.ds(row0 + i, (th - 1) * stride + 1, stride),
                            j:j + (w_out - 1) * stride + 1:stride, :]
            lhs = win.reshape(th * w_out, cin_pad)
            part = jnp.dot(lhs, w_ref[i * kw + j],
                           preferred_element_type=jnp.float32)
            acc = part if acc is None else acc + part

    y = jnp.maximum(acc + b_ref[...], 0.0)                  # f32 epilogue
    o_ref[...] = y.reshape(th, w_out, cout_pad).astype(o_ref.dtype)


def simconv_forward(x_nchw, weight, gamma, beta, run_mean, run_var, *,
                    stride=1, padding=None, eps=1e-5,
                    compute_dtype=jnp.bfloat16, target_tile_rows=512):
    """Conv2d(bias=False, groups=1) + BatchNorm2d(eval) + ReLU, NCHW in/out."""
    cout, cin, kh, kw = weight.shape
    if padding is None:
        padding = kh // 2
    n, c, h, w = x_nchw.shape
    assert c == cin
    h_out = (h + 2 * padding - kh) // stride + 1
    w_out = (w + 2 * padding - kw) // stride + 1
    hp, wp = h + 2 * padding, w + 2 * padding

    cin_pad = _round_up(cin, 8)                       # sublane-friendly contraction
    cout_pad = _round_up(max(cout, 128), 128)         # lane-dense output stores

    # ---- glue: NCHW -> NHWC, conv padding, channel pad, cast ----
    # TODO(synk): if the surrounding graph carries NHWC activations, both
    # transposes (one full HBM pass each) can be dropped.
    x = jnp.transpose(x_nchw, (0, 2, 3, 1))
    x = jnp.pad(x, ((0, 0), (padding, padding), (padding, padding),
                    (0, cin_pad - cin)))
    x = x.astype(compute_dtype)

    # ---- fold BatchNorm (eval) into weight + bias ----
    scale = (gamma / jnp.sqrt(run_var + eps)).astype(jnp.float32)   # [Cout]
    bias = (beta - run_mean * scale).astype(jnp.float32)            # [Cout]
    w_mat = jnp.transpose(weight, (2, 3, 1, 0)).astype(jnp.float32)  # [KH,KW,Cin,Cout]
    w_mat = w_mat * scale[None, None, None, :]
    w_mat = jnp.pad(w_mat, ((0, 0), (0, 0),
                            (0, cin_pad - cin), (0, cout_pad - cout)))
    w_mat = w_mat.reshape(kh * kw, cin_pad, cout_pad).astype(compute_dtype)
    bias = jnp.pad(bias, (0, cout_pad - cout)).reshape(1, cout_pad)

    # ---- tiling / grid ----
    th = _pick_row_tile(h_out, max(1, target_tile_rows // max(w_out, 1)))
    n_row_tiles = h_out // th

    # ---- explicit VMEM budget (double-buffered blocks + headroom) ----
    itm = jnp.dtype(compute_dtype).itemsize
    est = 2 * (hp * wp * cin_pad * itm            # input image block
               + th * w_out * cout_pad * 4        # output tile (f32)
               + kh * kw * cin_pad * cout_pad * itm
               + cout_pad * 4)
    vmem_limit = int(min(64 * 1024 * 1024,
                         max(2 * est + (2 << 20), 16 * 1024 * 1024)))

    kernel = functools.partial(_simconv_kernel, kh=kh, kw=kw, stride=stride,
                               th=th, w_out=w_out)

    out = pl.pallas_call(
        kernel,
        out_shape=jax.ShapeDtypeStruct((n, h_out, w_out, cout_pad), jnp.float32),
        grid_spec=pltpu.PrefetchScalarGridSpec(
            num_scalar_prefetch=0,
            grid=(n, n_row_tiles),
            in_specs=[
                # whole padded image per batch element; constant along r axis
                pl.BlockSpec((None, hp, wp, cin_pad), lambda b, r: (b, 0, 0, 0)),
                # resident folded weights and bias
                pl.BlockSpec((kh * kw, cin_pad, cout_pad), lambda b, r: (0, 0, 0)),
                pl.BlockSpec((1, cout_pad), lambda b, r: (0, 0)),
            ],
            out_specs=pl.BlockSpec((None, th, w_out, cout_pad),
                                   lambda b, r: (b, r, 0, 0)),
        ),
        compiler_params=pltpu.CompilerParams(
            dimension_semantics=("parallel", "parallel"),
            vmem_limit_bytes=vmem_limit),
    )(x, w_mat, bias)

    out = out[..., :cout]                       # drop lane-padding channels
    return jnp.transpose(out, (0, 3, 1, 2))     # NHWC -> NCHW


def _reference(x_nchw, weight, gamma, beta, run_mean, run_var,
               *, stride, padding, eps=1e-5):
    y = lax.conv_general_dilated(
        x_nchw.astype(jnp.float32), weight.astype(jnp.float32),
        window_strides=(stride, stride),
        padding=[(padding, padding), (padding, padding)],
        dimension_numbers=("NCHW", "OIHW", "NCHW"))
    scale = gamma / jnp.sqrt(run_var + eps)
    bias = beta - run_mean * scale
    y = y * scale[None, :, None, None] + bias[None, :, None, None]
    return jnp.maximum(y, 0.0)


if __name__ == "__main__":
    key = jax.random.PRNGKey(0)
    k_x, k_w, k_g, k_b, k_m, k_v = jax.random.split(key, 6)

    # SimConv(in_channels=4, out_channels=8, kernel_size=3, stride=1)
    N, Cin, H, W = 2, 4, 16, 16
    Cout, K, STRIDE = 8, 3, 1
    PAD = K // 2

    x = jax.random.normal(k_x, (N, Cin, H, W), dtype=jnp.float32)
    weight = jax.random.normal(k_w, (Cout, Cin, K, K), dtype=jnp.float32) * 0.1
    gamma = jax.random.uniform(k_g, (Cout,), minval=0.5, maxval=1.5)
    beta = jax.random.normal(k_b, (Cout,)) * 0.1
    run_mean = jax.random.normal(k_m, (Cout,)) * 0.1
    run_var = jax.random.uniform(k_v, (Cout,), minval=0.5, maxval=1.5)
    # NOTE: BatchNorm is evaluated in inference mode (running stats), matching
    # the deploy-time semantics of SimConv.forward.

    ref = _reference(x, weight, gamma, beta, run_mean, run_var,
                     stride=STRIDE, padding=PAD)

    # default path: bf16 MXU inputs, f32 accumulate/epilogue
    out = simconv_forward(x, weight, gamma, beta, run_mean, run_var,
                          stride=STRIDE, padding=PAD)
    out = jax.block_until_ready(out)
    assert out.shape == (N, Cout, H, W), out.shape
    assert jnp.allclose(out, ref, atol=5e-2, rtol=5e-2), \
        float(jnp.max(jnp.abs(out - ref)))

    # f32 compute path: tight check of kernel indexing / BN folding
    out_f32 = simconv_forward(x, weight, gamma, beta, run_mean, run_var,
                              stride=STRIDE, padding=PAD,
                              compute_dtype=jnp.float32)
    out_f32 = jax.block_until_ready(out_f32)
    assert jnp.allclose(out_f32, ref, atol=1e-4, rtol=1e-4), \
        float(jnp.max(jnp.abs(out_f32 - ref)))

    print("KERNEL_OK")
</pallas_src>

<mosaic_0001>
module attributes {stable_mosaic.version = 11 : i64} {
  func.func @_simconv_kernel(%arg0: i32, %arg1: i32, %arg2: memref<1x18x18x8xbf16, #tpu.memory_space<vmem>>, %arg3: memref<9x8x128xbf16, #tpu.memory_space<vmem>>, %arg4: memref<1x128xf32, #tpu.memory_space<vmem>>, %arg5: memref<1x16x16x128xf32, #tpu.memory_space<vmem>>) attributes {dimension_semantics = [#tpu.dimension_semantics<parallel>, #tpu.dimension_semantics<parallel>], iteration_bounds = array<i64: 2, 1>, scalar_prefetch = 0 : i64, scratch_operands = 0 : i64, tpu.core_type = #tpu.core_type<tc>, window_params = [{transform_indices = @transform_0, window_bounds = array<i64: 1, 18, 18, 8>}, {pipeline_mode = #tpu.pipeline_mode<synchronous>, transform_indices = @transform_1, window_bounds = array<i64: 9, 8, 128>}, {pipeline_mode = #tpu.pipeline_mode<synchronous>, transform_indices = @transform_2, window_bounds = array<i64: 1, 128>}, {transform_indices = @transform_3, window_bounds = array<i64: 1, 16, 16, 128>}]} {
    %c16_i32 = arith.constant 16 : i32
    %0 = arith.muli %arg1, %c16_i32 : i32
    %1 = tpu.assume_multiple %0, 16 : i32
    %c0_i32 = arith.constant 0 : i32
    %2 = arith.addi %1, %c0_i32 : i32
    %c0 = arith.constant 0 : index
    %3 = arith.index_cast %2 : i32 to index
    %c0_0 = arith.constant 0 : index
    %c0_1 = arith.constant 0 : index
    %4 = vector.load %arg2[%c0, %3, %c0_0, %c0_1] : memref<1x18x18x8xbf16, #tpu.memory_space<vmem>>, vector<1x16x16x8xbf16>
    %5 = vector.shape_cast %4 : vector<1x16x16x8xbf16> to vector<16x16x8xbf16>
    %6 = vector.shape_cast %5 : vector<16x16x8xbf16> to vector<256x8xbf16>
    %c0_2 = arith.constant 0 : index
    %c0_3 = arith.constant 0 : index
    %c0_4 = arith.constant 0 : index
    %7 = vector.load %arg3[%c0_2, %c0_3, %c0_4] : memref<9x8x128xbf16, #tpu.memory_space<vmem>>, vector<1x8x128xbf16>
    %8 = vector.shape_cast %7 : vector<1x8x128xbf16> to vector<8x128xbf16>
    %cst = arith.constant dense<0.000000e+00> : vector<256x128xf32>
    %9 = tpu.matmul %6, %8, %cst {dimension_numbers = #tpu.dot_dimension_numbers<[1], [0], [0], [1], [0, 0, 1, 1], [], []>} : vector<256x8xbf16>, vector<8x128xbf16>, vector<256x128xf32> -> vector<256x128xf32>
    %c0_i32_5 = arith.constant 0 : i32
    %10 = arith.addi %1, %c0_i32_5 : i32
    %c0_6 = arith.constant 0 : index
    %11 = arith.index_cast %10 : i32 to index
    %c1 = arith.constant 1 : index
    %c0_7 = arith.constant 0 : index
    %12 = vector.load %arg2[%c0_6, %11, %c1, %c0_7] : memref<1x18x18x8xbf16, #tpu.memory_space<vmem>>, vector<1x16x16x8xbf16>
    %13 = vector.shape_cast %12 : vector<1x16x16x8xbf16> to vector<16x16x8xbf16>
    %14 = vector.shape_cast %13 : vector<16x16x8xbf16> to vector<256x8xbf16>
    %c1_8 = arith.constant 1 : index
    %c0_9 = arith.constant 0 : index
    %c0_10 = arith.constant 0 : index
    %15 = vector.load %arg3[%c1_8, %c0_9, %c0_10] : memref<9x8x128xbf16, #tpu.memory_space<vmem>>, vector<1x8x128xbf16>
    %16 = vector.shape_cast %15 : vector<1x8x128xbf16> to vector<8x128xbf16>
    %cst_11 = arith.constant dense<0.000000e+00> : vector<256x128xf32>
    %17 = tpu.matmul %14, %16, %cst_11 {dimension_numbers = #tpu.dot_dimension_numbers<[1], [0], [0], [1], [0, 0, 1, 1], [], []>} : vector<256x8xbf16>, vector<8x128xbf16>, vector<256x128xf32> -> vector<256x128xf32>
    %18 = arith.addf %9, %17 : vector<256x128xf32>
    %c0_i32_12 = arith.constant 0 : i32
    %19 = arith.addi %1, %c0_i32_12 : i32
    %c0_13 = arith.constant 0 : index
    %20 = arith.index_cast %19 : i32 to index
    %c2 = arith.constant 2 : index
    %c0_14 = arith.constant 0 : index
    %21 = vector.load %arg2[%c0_13, %20, %c2, %c0_14] : memref<1x18x18x8xbf16, #tpu.memory_space<vmem>>, vector<1x16x16x8xbf16>
    %22 = vector.shape_cast %21 : vector<1x16x16x8xbf16> to vector<16x16x8xbf16>
    %23 = vector.shape_cast %22 : vector<16x16x8xbf16> to vector<256x8xbf16>
    %c2_15 = arith.constant 2 : index
    %c0_16 = arith.constant 0 : index
    %c0_17 = arith.constant 0 : index
    %24 = vector.load %arg3[%c2_15, %c0_16, %c0_17] : memref<9x8x128xbf16, #tpu.memory_space<vmem>>, vector<1x8x128xbf16>
    %25 = vector.shape_cast %24 : vector<1x8x128xbf16> to vector<8x128xbf16>
    %cst_18 = arith.constant dense<0.000000e+00> : vector<256x128xf32>
    %26 = tpu.matmul %23, %25, %cst_18 {dimension_numbers = #tpu.dot_dimension_numbers<[1], [0], [0], [1], [0, 0, 1, 1], [], []>} : vector<256x8xbf16>, vector<8x128xbf16>, vector<256x128xf32> -> vector<256x128xf32>
    %27 = arith.addf %18, %26 : vector<256x128xf32>
    %c1_i32 = arith.constant 1 : i32
    %28 = arith.addi %1, %c1_i32 : i32
    %c0_19 = arith.constant 0 : index
    %29 = arith.index_cast %28 : i32 to index
    %c0_20 = arith.constant 0 : index
    %c0_21 = arith.constant 0 : index
    %30 = vector.load %arg2[%c0_19, %29, %c0_20, %c0_21] : memref<1x18x18x8xbf16, #tpu.memory_space<vmem>>, vector<1x16x16x8xbf16>
    %31 = vector.shape_cast %30 : vector<1x16x16x8xbf16> to vector<16x16x8xbf16>
    %32 = vector.shape_cast %31 : vector<16x16x8xbf16> to vector<256x8xbf16>
    %c3 = arith.constant 3 : index
    %c0_22 = arith.constant 0 : index
    %c0_23 = arith.constant 0 : index
    %33 = vector.load %arg3[%c3, %c0_22, %c0_23] : memref<9x8x128xbf16, #tpu.memory_space<vmem>>, vector<1x8x128xbf16>
    %34 = vector.shape_cast %33 : vector<1x8x128xbf16> to vector<8x128xbf16>
    %cst_24 = arith.constant dense<0.000000e+00> : vector<256x128xf32>
    %35 = tpu.matmul %32, %34, %cst_24 {dimension_numbers = #tpu.dot_dimension_numbers<[1], [0], [0], [1], [0, 0, 1, 1], [], []>} : vector<256x8xbf16>, vector<8x128xbf16>, vector<256x128xf32> -> vector<256x128xf32>
    %36 = arith.addf %27, %35 : vector<256x128xf32>
    %c1_i32_25 = arith.constant 1 : i32
    %37 = arith.addi %1, %c1_i32_25 : i32
    %c0_26 = arith.constant 0 : index
    %38 = arith.index_cast %37 : i32 to index
    %c1_27 = arith.constant 1 : index
    %c0_28 = arith.constant 0 : index
    %39 = vector.load %arg2[%c0_26, %38, %c1_27, %c0_28] : memref<1x18x18x8xbf16, #tpu.memory_space<vmem>>, vector<1x16x16x8xbf16>
    %40 = vector.shape_cast %39 : vector<1x16x16x8xbf16> to vector<16x16x8xbf16>
    %41 = vector.shape_cast %40 : vector<16x16x8xbf16> to vector<256x8xbf16>
    %c4 = arith.constant 4 : index
    %c0_29 = arith.constant 0 : index
    %c0_30 = arith.constant 0 : index
    %42 = vector.load %arg3[%c4, %c0_29, %c0_30] : memref<9x8x128xbf16, #tpu.memory_space<vmem>>, vector<1x8x128xbf16>
    %43 = vector.shape_cast %42 : vector<1x8x128xbf16> to vector<8x128xbf16>
    %cst_31 = arith.constant dense<0.000000e+00> : vector<256x128xf32>
    %44 = tpu.matmul %41, %43, %cst_31 {dimension_numbers = #tpu.dot_dimension_numbers<[1], [0], [0], [1], [0, 0, 1, 1], [], []>} : vector<256x8xbf16>, vector<8x128xbf16>, vector<256x128xf32> -> vector<256x128xf32>
    %45 = arith.addf %36, %44 : vector<256x128xf32>
    %c1_i32_32 = arith.constant 1 : i32
    %46 = arith.addi %1, %c1_i32_32 : i32
    %c0_33 = arith.constant 0 : index
    %47 = arith.index_cast %46 : i32 to index
    %c2_34 = arith.constant 2 : index
    %c0_35 = arith.constant 0 : index
    %48 = vector.load %arg2[%c0_33, %47, %c2_34, %c0_35] : memref<1x18x18x8xbf16, #tpu.memory_space<vmem>>, vector<1x16x16x8xbf16>
    %49 = vector.shape_cast %48 : vector<1x16x16x8xbf16> to vector<16x16x8xbf16>
    %50 = vector.shape_cast %49 : vector<16x16x8xbf16> to vector<256x8xbf16>
    %c5 = arith.constant 5 : index
    %c0_36 = arith.constant 0 : index
    %c0_37 = arith.constant 0 : index
    %51 = vector.load %arg3[%c5, %c0_36, %c0_37] : memref<9x8x128xbf16, #tpu.memory_space<vmem>>, vector<1x8x128xbf16>
    %52 = vector.shape_cast %51 : vector<1x8x128xbf16> to vector<8x128xbf16>
    %cst_38 = arith.constant dense<0.000000e+00> : vector<256x128xf32>
    %53 = tpu.matmul %50, %52, %cst_38 {dimension_numbers = #tpu.dot_dimension_numbers<[1], [0], [0], [1], [0, 0, 1, 1], [], []>} : vector<256x8xbf16>, vector<8x128xbf16>, vector<256x128xf32> -> vector<256x128xf32>
    %54 = arith.addf %45, %53 : vector<256x128xf32>
    %c2_i32 = arith.constant 2 : i32
    %55 = arith.addi %1, %c2_i32 : i32
    %c0_39 = arith.constant 0 : index
    %56 = arith.index_cast %55 : i32 to index
    %c0_40 = arith.constant 0 : index
    %c0_41 = arith.constant 0 : index
    %57 = vector.load %arg2[%c0_39, %56, %c0_40, %c0_41] : memref<1x18x18x8xbf16, #tpu.memory_space<vmem>>, vector<1x16x16x8xbf16>
    %58 = vector.shape_cast %57 : vector<1x16x16x8xbf16> to vector<16x16x8xbf16>
    %59 = vector.shape_cast %58 : vector<16x16x8xbf16> to vector<256x8xbf16>
    %c6 = arith.constant 6 : index
    %c0_42 = arith.constant 0 : index
    %c0_43 = arith.constant 0 : index
    %60 = vector.load %arg3[%c6, %c0_42, %c0_43] : memref<9x8x128xbf16, #tpu.memory_space<vmem>>, vector<1x8x128xbf16>
    %61 = vector.shape_cast %60 : vector<1x8x128xbf16> to vector<8x128xbf16>
    %cst_44 = arith.constant dense<0.000000e+00> : vector<256x128xf32>
    %62 = tpu.matmul %59, %61, %cst_44 {dimension_numbers = #tpu.dot_dimension_numbers<[1], [0], [0], [1], [0, 0, 1, 1], [], []>} : vector<256x8xbf16>, vector<8x128xbf16>, vector<256x128xf32> -> vector<256x128xf32>
    %63 = arith.addf %54, %62 : vector<256x128xf32>
    %c2_i32_45 = arith.constant 2 : i32
    %64 = arith.addi %1, %c2_i32_45 : i32
    %c0_46 = arith.constant 0 : index
    %65 = arith.index_cast %64 : i32 to index
    %c1_47 = arith.constant 1 : index
    %c0_48 = arith.constant 0 : index
    %66 = vector.load %arg2[%c0_46, %65, %c1_47, %c0_48] : memref<1x18x18x8xbf16, #tpu.memory_space<vmem>>, vector<1x16x16x8xbf16>
    %67 = vector.shape_cast %66 : vector<1x16x16x8xbf16> to vector<16x16x8xbf16>
    %68 = vector.shape_cast %67 : vector<16x16x8xbf16> to vector<256x8xbf16>
    %c7 = arith.constant 7 : index
    %c0_49 = arith.constant 0 : index
    %c0_50 = arith.constant 0 : index
    %69 = vector.load %arg3[%c7, %c0_49, %c0_50] : memref<9x8x128xbf16, #tpu.memory_space<vmem>>, vector<1x8x128xbf16>
    %70 = vector.shape_cast %69 : vector<1x8x128xbf16> to vector<8x128xbf16>
    %cst_51 = arith.constant dense<0.000000e+00> : vector<256x128xf32>
    %71 = tpu.matmul %68, %70, %cst_51 {dimension_numbers = #tpu.dot_dimension_numbers<[1], [0], [0], [1], [0, 0, 1, 1], [], []>} : vector<256x8xbf16>, vector<8x128xbf16>, vector<256x128xf32> -> vector<256x128xf32>
    %72 = arith.addf %63, %71 : vector<256x128xf32>
    %c2_i32_52 = arith.constant 2 : i32
    %73 = arith.addi %1, %c2_i32_52 : i32
    %c0_53 = arith.constant 0 : index
    %74 = arith.index_cast %73 : i32 to index
    %c2_54 = arith.constant 2 : index
    %c0_55 = arith.constant 0 : index
    %75 = vector.load %arg2[%c0_53, %74, %c2_54, %c0_55] : memref<1x18x18x8xbf16, #tpu.memory_space<vmem>>, vector<1x16x16x8xbf16>
    %76 = vector.shape_cast %75 : vector<1x16x16x8xbf16> to vector<16x16x8xbf16>
    %77 = vector.shape_cast %76 : vector<16x16x8xbf16> to vector<256x8xbf16>
    %c8 = arith.constant 8 : index
    %c0_56 = arith.constant 0 : index
    %c0_57 = arith.constant 0 : index
    %78 = vector.load %arg3[%c8, %c0_56, %c0_57] : memref<9x8x128xbf16, #tpu.memory_space<vmem>>, vector<1x8x128xbf16>
    %79 = vector.shape_cast %78 : vector<1x8x128xbf16> to vector<8x128xbf16>
    %cst_58 = arith.constant dense<0.000000e+00> : vector<256x128xf32>
    %80 = tpu.matmul %77, %79, %cst_58 {dimension_numbers = #tpu.dot_dimension_numbers<[1], [0], [0], [1], [0, 0, 1, 1], [], []>} : vector<256x8xbf16>, vector<8x128xbf16>, vector<256x128xf32> -> vector<256x128xf32>
    %81 = arith.addf %72, %80 : vector<256x128xf32>
    %c0_59 = arith.constant 0 : index
    %c0_60 = arith.constant 0 : index
    %82 = vector.load %arg4[%c0_59, %c0_60] : memref<1x128xf32, #tpu.memory_space<vmem>>, vector<1x128xf32>
    %83 = vector.broadcast %82 : vector<1x128xf32> to vector<256x128xf32>
    %84 = arith.addf %81, %83 : vector<256x128xf32>
    %cst_61 = arith.constant 0.000000e+00 : f32
    %85 = vector.broadcast %cst_61 : f32 to vector<256x128xf32>
    %86 = arith.maximumf %84, %85 : vector<256x128xf32>
    %87 = vector.shape_cast %86 : vector<256x128xf32> to vector<16x16x128xf32>
    %c0_62 = arith.constant 0 : index
    %c0_63 = arith.constant 0 : index
    %c0_64 = arith.constant 0 : index
    %c0_65 = arith.constant 0 : index
    %88 = vector.load %arg5[%c0_62, %c0_63, %c0_64, %c0_65] : memref<1x16x16x128xf32, #tpu.memory_space<vmem>>, vector<1x16x16x128xf32>
    %89 = vector.shape_cast %88 : vector<1x16x16x128xf32> to vector<16x16x128xf32>
    %90 = vector.shape_cast %87 : vector<16x16x128xf32> to vector<1x16x16x128xf32>
    tpu.vector_store %arg5[%c0_62, %c0_63, %c0_64, %c0_65], %90 {strides = array<i32>} : memref<1x16x16x128xf32, #tpu.memory_space<vmem>>, vector<1x16x16x128xf32>,
    return
  }
  func.func @transform_0(%arg0: i32, %arg1: i32) -> (i32, i32, i32, i32) {
    %c0_i32 = arith.constant 0 : i32
    %c0_i32_0 = arith.constant 0 : i32
    %c0_i32_1 = arith.constant 0 : i32
    %c0_i32_2 = arith.constant 0 : i32
    return %arg0, %c0_i32, %c0_i32_0, %c0_i32_1 : i32, i32, i32, i32
  }
  func.func @transform_1(%arg0: i32, %arg1: i32) -> (i32, i32, i32) {
    %c0_i32 = arith.constant 0 : i32
    %c0_i32_0 = arith.constant 0 : i32
    %c0_i32_1 = arith.constant 0 : i32
    %c0_i32_2 = arith.constant 0 : i32
    return %c0_i32, %c0_i32_0, %c0_i32_1 : i32, i32, i32
  }
  func.func @transform_2(%arg0: i32, %arg1: i32) -> (i32, i32) {
    %c0_i32 = arith.constant 0 : i32
    %c0_i32_0 = arith.constant 0 : i32
    %c0_i32_1 = arith.constant 0 : i32
    return %c0_i32, %c0_i32_0 : i32, i32
  }
  func.func @transform_3(%arg0: i32, %arg1: i32) -> (i32, i32, i32, i32) {
    %c0_i32 = arith.constant 0 : i32
    %c0_i32_0 = arith.constant 0 : i32
    %c0_i32_1 = arith.constant 0 : i32
    return %arg0, %arg1, %c0_i32, %c0_i32_0 : i32, i32, i32, i32
  }
}

</mosaic_0001>

<bundles_post_ra>
// kernel: tpu_custom_call.1
= control target key start
LH: loop header
LB: loop body
LE: loop exit
PB: predicated region body
PF: predicated region fallthrough
CT: control target
= control target key end

     0   :  { %8 = vsyncpa [#allocation3], 0  ;;  %s8930_s0 = inlined_call_operand.vmem [shape: bf16[2,18,18,8], index: 0, kind: input, shape index: {}]   ;;  %s8931_s1 = inlined_call_operand.vmem [shape: bf16[9,8,128], index: 1, kind: input, shape index: {}]   ;;  %s8932_s2 = inlined_call_operand.vmem [shape: f32[1,128], index: 2, kind: input, shape index: {}]   ;;  %s8933_s3 = inlined_call_operand.hbm [shape: f32[2,16,16,128], index: 3, kind: output, shape index: {}]  }
   0x1   :  { %10 = vsyncpa [#allocation3 + $0x1], 0  ;;  %s6187_s12 = smov 0   ;;  %s6189_s13 = smov 0  }
   0x2   :  { %s6191_s14 = smov 0   ;;  %s6193_s15 = smov 0  }
   0x3   :  { %s6195_s16 = smov 0   ;;  %s6197_s17 = smov 0  }
   0x4 LB: > { %s4957_s18 = sadd.s32 4294967295, %s6162_s17   ;;  %s4958_s19 = sadd.s32 4294967294, %s6162_s17   ;;  %s6162_s17 = sphi %s6197_s17, %s16_s17   ;;  %s6158_s16 = sphi %s6195_s16, %s9214_s16   ;;  %s6154_s15 = sphi %s6193_s15, %s9213_s15   ;;  %s6150_s14 = sphi %s6191_s14, %s9212_s14   ;;  %s6146_s13 = sphi %s6189_s13, %s9211_s13   ;;  %s6142_s12 = sphi %s6187_s12, %s9210_s12  }
   0x5   : > { %s28_s20 = sadd.s32 1, %s6158_s16  ;;  %s105_s21 = sadd.s32 1, %s6150_s14 }
   0x6   : > { %p30_p0 = scmp.ge.s32.totalorder %s28_s20, 2  ;;  %p115_p1 = scmp.ne.s32.totalorder %s6150_s14, %s6146_s13 }
   0x7   : > { %p116_p2 = scmp.eq.s32.totalorder %s4957_s18, 1  ;;  %p121_p3 = scmp.ne.s32.totalorder %s6146_s13, %s6142_s12 }
   0x8   : > { %s9216_s20 = smov (%p30_p0, %s28_s20), 0  ;;  %p122_p5 = scmp.eq.s32.totalorder %s4958_s19, 1 }
   0x9   : > { %p6227_p4 = por %p116_p2, %p115_p1  ;;  %s100_s23 = ssub.s32 %s6158_s16, %s9216_s20 }
   0xa   : > { %p4961_p6 = scmp.ge.s32.totalorder %s6162_s17, 1  ;;  %p103_p7 = scmp.eq.s32.totalorder %s100_s23, 0 }
   0xb   : > { %p6234_p8 = por %p122_p5, %p121_p3  ;;  %p154_p9 = scmp.lt.s32.totalorder %s6162_s17, 3 }
   0xc   : > { %s6240_s25 = scalar_select %p103_p7, %s6150_s14, %s105_s21  }
   0xd   : > { %p155_p10 = pnand %p4961_p6, %p154_p9 }
   0xf   : > { %158 = sbr.rel (%p155_p10) target bundleno = 579 (0x243), region = 32 }
  0x14   : > { %v4964_v0 = vld [vmem:[%s8931_s1 + $0x4] sm:$0xf]  ;;  %vm724_vm0 = vcmask 1043456   ;;  %p178_p11 = scmp.lt.s32.totalorder %s6154_s15, 1  ;;  %v221_v2 = vld [vmem:[%s8931_s1] sm:$0xf] }
  0x15   : > { %5969 = vmatprep.subr.msk.bf16.mxu1 %vm724_vm0, %v4964_v0  ;;  %5968 = vmatprep.subr.msk.bf16.mxu0 %vm724_vm0, %v4964_v0  ;;  %v726_v1 = vsel %vm724_vm0, %v4964_v0, 0  ;;  %v5045_v3 = vld [vmem:[%s8931_s1 + $0x8] sm:$0xf]  ;;  %vm238_vm1 = vsmask.f32 3328  ;;  %v6264_v4 = vsel %vm724_vm0, %v221_v2, 0 }
  0x16   : > { %5967 = vmatpush3.bf16.msra.mxu1 %v726_v1  ;;  %5661 = vmatpush3.bf16.msra.mxu0 %v726_v1  ;;  %s179_s30 = scalar_select %p178_p11, %s6154_s15, 1  ;;  %vm239_vm2 = vsmask.f32 7440  ;;  %vm675_vm3 = vcmask 64512   ;;  %v6290_v16 = vsel %vm724_vm0, %v5045_v3, 0  ;;  %vm1229_vm5 = vcmask 1042432  }
  0x17   : > { %5970 = vmatprep.subr.msk.bf16.mxu1 %vm724_vm0, %v221_v2  ;;  %5971 = vmatprep.subr.msk.bf16.mxu0 %vm724_vm0, %v5045_v3  ;;  %vm6305_vm4 = vmor %vm238_vm1, %vm239_vm2  ;;  %vm1230_vm6 = vcmask 1046532   ;;  %s175_s5 = sand.u32 1, %s6146_s13   ;;  %s5506_s10 = sshll.u32 %s6154_s15, 12 }
  0x18   : > { %s5978_s6 = smul.u32 216, %s179_s30  ;;  %vm6591_vm7 = vmor %vm1229_vm5, %vm1230_vm6  ;;  %s4962_s8 = sshll.u32 %s175_s5, 8 }
  0x19   : > { %s8877_s21 = scalar_lea.hbm %s8933_s3, %s5506_s10  ;;  %s8885_s15 = scalar_lea.sflag [#allocation3], %s175_s5 }
  0x1a   : > { %s6261_s9 = scalar_lea.vmem %s8930_s0, %s5978_s6  ;;  %s6164_s26 = smov [#allocation2]  }
  0x1b   : > { %v6267_v5 = vld [vmem:[%s6261_s9] sm:$0xf]  ;;  %v6270_v6 = vld [vmem:[%s6261_s9 + $0x4] sm:$0xf]  ;;  %v6273_v7 = vld [vmem:[%s6261_s9 + $0x8] sm:$0x1] }
  0x1c   : > { %v242_v8 = vshrl.u32 %v6267_v5, 16  ;;  %v245_v9 = vshll.u32 %v6267_v5, 16  ;;  %v251_v10 = vshll.u32 %v6270_v6, 16  ;;  %v255_v11 = vshrl.u32 %v6270_v6, 16  ;;  %v6280_v12 = vld [vmem:[%s6261_s9 + $0x60] sm:$0xf] }
  0x1d   : > { %v261_v13 = vshll.u32 %v6273_v7, 16  ;;  %v6284_v14 = vld [vmem:[%s6261_s9 + $0x64] sm:$0xf]  ;;  %v6287_v15 = vld [vmem:[%s6261_s9 + $0x68] sm:$0x1]  ;;  %v434_v22 = vshrl.u32 %v6280_v12, 16 }
  0x1e   : > { %v244_v17 = vrot.slane %v242_v8, 4  ;;  %v247_v18 = vrot.slane %v245_v9, 5  ;;  %v253_v19 = vrot.slane %v251_v10, 5  ;;  %v257_v20 = vrot.slane %v255_v11, 4  ;;  %v6298_v29 = vld [vmem:[%s6261_s9 + $0xc] sm:$0xf] }
  0x1f   : > { %v263_v21 = vrot.slane %v261_v13, 5  ;;  %v437_v23 = vshll.u32 %v6280_v12, 16  ;;  %v443_v24 = vshll.u32 %v6284_v14, 16  ;;  %v447_v27 = vshrl.u32 %v6284_v14, 16  ;;  %v6301_v30 = vld [vmem:[%s6261_s9 + $0x10] sm:$0xf] }
  0x20   : > { %v248_v25 = vor.u32 %v247_v18, %v244_v17  ;;  %v258_v26 = vor.u32 %v257_v20, %v253_v19  ;;  %v453_v28 = vshll.u32 %v6287_v15, 16  ;;  %v436_v33 = vrot.slane %v434_v22, 4  ;;  %v6311_v41 = vld [vmem:[%s6261_s9 + $0x14] sm:$0x1]  ;;  %v6322_v53 = vld [vmem:[%s6261_s9 + $0x6c] sm:$0xf] }
  0x21   : > { %v439_v34 = vrot.slane %v437_v23, 5  ;;  %v445_v35 = vrot.slane %v443_v24, 5  ;;  %v449_v38 = vrot.slane %v447_v27, 4  ;;  %v266_v42 = vshrl.u32 %v6298_v29, 16  ;;  %v6326_v58 = vld [vmem:[%s6261_s9 + $0x70] sm:$0xf] }
  0x22   : > { %v249_v36 = vrot.slane %v248_v25, 4  ;;  %v259_v37 = vrot.slane %v258_v26, 4  ;;  %v455_v39 = vrot.slane %v453_v28, 5  ;;  %v269_v43 = vshll.u32 %v6298_v29, 16  ;;  %v6334_v63 = vld [vmem:[%s6261_s9 + $0x74] sm:$0x1] }
  0x23   : > { %v440_v40 = vor.u32 %v439_v34, %v436_v33  ;;  %v275_v44 = vshll.u32 %v6301_v30, 16  ;;  %v450_v47 = vor.u32 %v449_v38, %v445_v35  ;;  %v279_v48 = vshrl.u32 %v6301_v30, 16  ;;  %v6340_v8 = vld [vmem:[%s6261_s9 + $0x18] sm:$0xf]  ;;  %v6353_v25 = vld [vmem:[%s6261_s9 + $0x20] sm:$0x1] }
  0x24   : > { %v254_v45 = vsel %vm6305_vm4, %v249_v36, %v253_v19  ;;  %v264_v46 = vsel %vm6305_vm4, %v259_v37, %v263_v21  ;;  %v268_v51 = vrot.slane %v266_v42, 4  ;;  %v271_v52 = vrot.slane %v269_v43, 5  ;;  %v6347_v21 = vld [vmem:[%s6261_s9 + $0x1c] sm:$0xf]  ;;  %s6090_s27 = sshll.u32 %s6164_s26, 4  ;;  %s6091_s27 = int_to_ptr.vmem [resolvable:$false] %s6090_s27 }
  0x25   : > { %v4965_v49 = vcombine.low %v254_v45, %v264_v46  ;;  %v441_v50 = vrot.slane %v440_v40, 4  ;;  %v451_v54 = vrot.slane %v450_v47, 4  ;;  %v277_v55 = vrot.slane %v275_v44, 5  ;;  %v6366_v40 = vld [vmem:[%s8931_s1 + $0x10] sm:$0xf]  ;;  %s6092_s28 = scalar_lea.vmem %s6091_s27, 8192 }
  0x26   : > { %v281_v56 = vrot.slane %v279_v48, 4  ;;  %v285_v57 = vshll.u32 %v6311_v41, 16  ;;  %v272_v60 = vor.u32 %v271_v52, %v268_v51  ;;  %v458_v3 = vshrl.u32 %v6322_v53, 16  ;;  %v6371_v46 = vld [vmem:[%s6261_s9 + $0x7c] sm:$0xf] }
  0x27   : > { %5662 = vmatprep.mubr.msk.bf16.mxu0 %vm675_vm3, %v4965_v49  ;;  %v446_v59 = vsel %vm6305_vm4, %v441_v50, %v445_v35  ;;  %v456_v0 = vsel %vm6305_vm4, %v451_v54, %v455_v39  ;;  %v461_v11 = vshll.u32 %v6322_v53, 16  ;;  %v467_v13 = vshll.u32 %v6326_v58, 16  ;;  %v6360_v35 = vld [vmem:[%s6261_s9 + $0x78] sm:$0xf] }
  0x28   : > { %v282_v1 = vor.u32 %v281_v56, %v277_v55  ;;  %v287_v2 = vrot.slane %v285_v57, 5  ;;  %v4973_v9 = vcombine.low %v446_v59, %v456_v0  ;;  %v273_v10 = vrot.slane %v272_v60, 4  ;;  %v6378_v56 = vld [vmem:[%s6261_s9 + $0x80] sm:$0x1] }
  0x29   : > { %v460_v18 = vrot.slane %v458_v3, 4  ;;  %v471_v19 = vshrl.u32 %v6326_v58, 16  ;;  %v477_v20 = vshll.u32 %v6334_v63, 16  ;;  %v463_v23 = vrot.slane %v461_v11, 5  ;;  %8971 = vst [vmem:[#allocation5_spill] sm:$0xff] %v6378_v56 }
  0x2a   : > { %v283_v17 = vrot.slane %v282_v1, 4  ;;  %5678 = vmatprep.mubr.msk.bf16.mxu1 %vm675_vm3, %v4973_v9  ;;  %v278_v22 = vsel %vm6305_vm4, %v273_v10, %v277_v55  ;;  %v469_v24 = vrot.slane %v467_v13, 5  ;;  %v290_v26 = vshrl.u32 %v6340_v8, 16  ;;  %v6384_v1 = vld [vmem:[%s6261_s9 + $0x24] sm:$0xf] }
  0x2b   : > { %v473_v28 = vrot.slane %v471_v19, 4  ;;  %v479_v33 = vrot.slane %v477_v20, 5  ;;  %v293_v34 = vshll.u32 %v6340_v8, 16  ;;  %v464_v37 = vor.u32 %v463_v23, %v460_v18  ;;  %v6392_v10 = vld [vmem:[%s6261_s9 + $0x28] sm:$0xf] }
  0x2c   : > { %v288_v27 = vsel %vm6305_vm4, %v283_v17, %v287_v2  ;;  %v292_v38 = vrot.slane %v290_v26, 4  ;;  %v299_v39 = vshll.u32 %v6347_v21, 16  ;;  %v303_v44 = vshrl.u32 %v6347_v21, 16  ;;  %v6398_v19 = vld [vmem:[%s8931_s1 + $0xc] sm:$0xf] }
  0x2d   : > { %v4966_v36 = vcombine.low %v278_v22, %v288_v27  ;;  %v474_v42 = vor.u32 %v473_v28, %v469_v24  ;;  %v295_v43 = vrot.slane %v293_v34, 5  ;;  %v309_v45 = vshll.u32 %v6353_v25, 16 }
  0x2e   : > { %v465_v47 = vrot.slane %v464_v37, 4  ;;  %v301_v48 = vrot.slane %v299_v39, 5  ;;  %v482_v49 = vshrl.u32 %v6360_v35, 16  ;;  %v485_v50 = vshll.u32 %v6360_v35, 16 }
  0x2f   : > { %5663 = vmatmul.mubr.msk.bf16.vlgmr.msra.gmra.mxu0 %vm675_vm3, %v4966_v36  ;;  %v475_v51 = vrot.slane %v474_v42, 4  ;;  %v296_v52 = vor.u32 %v295_v43, %v292_v38  ;;  %v305_v54 = vrot.slane %v303_v44, 4  ;;  %v311_v55 = vrot.slane %v309_v45, 5  ;;  %v6410_v36 = vld [vmem:[%s6261_s9 + $0x84] sm:$0xf] }
  0x30   : > { %5729 = vmatpush3.bf16.msra.mxu0 %v6290_v16  ;;  %v470_v57 = vsel %vm6305_vm4, %v465_v47, %v469_v24  ;;  %v484_v59 = vrot.slane %v482_v49, 4  ;;  %v487_v60 = vrot.slane %v485_v50, 5  ;;  %v491_v0 = vshll.u32 %v6371_v46, 16  ;;  %v6403_v24 = vld [vmem:[%s6261_s9 + $0x2c] sm:$0x1] }
  0x31   : > { %5973 = vmatprep.subr.msk.bf16.mxu0 %vm724_vm0, %v6366_v40  ;;  %v480_v16 = vsel %vm6305_vm4, %v475_v51, %v479_v33  ;;  %v297_v2 = vrot.slane %v296_v52, 4  ;;  %v306_v3 = vor.u32 %v305_v54, %v301_v48  ;;  %v495_v9 = vshrl.u32 %v6371_v46, 16  ;;  %v6417_v43 = vld [vmem:[%s6261_s9 + $0x88] sm:$0xf]  ;;  %v6425_v51 = vld [vmem:[%s6261_s9 + $0x8c] sm:$0x1] }
  0x32   : > { %v4974_v11 = vcombine.low %v470_v57, %v480_v16  ;;  %v488_v13 = vor.u32 %v487_v60, %v484_v59  ;;  %v493_v17 = vrot.slane %v491_v0, 5  ;;  %v501_v18 = vshll.u32 %v6378_v56, 16  ;;  %8972 = vst [vmem:[#allocation6_spill] sm:$0xff] %v6425_v51  ;;  %v6433_v60 = vld [vmem:[%s6261_s9 + $0x30] sm:$0xf] }
  0x33   : > { %v302_v20 = vsel %vm6305_vm4, %v297_v2, %v301_v48  ;;  %v307_v22 = vrot.slane %v306_v3, 4  ;;  %v497_v23 = vrot.slane %v495_v9, 4  ;;  %v314_v26 = vshrl.u32 %v6384_v1, 16  ;;  %v6438_v9 = vld [vmem:[%s6261_s9 + $0x34] sm:$0xf] }
  0x34   : > { %5679 = vmatmul.mubr.msk.bf16.vlgmr.msra.gmra.mxu1 %vm675_vm3, %v4974_v11  ;;  %v489_v27 = vrot.slane %v488_v13, 4  ;;  %v503_v28 = vrot.slane %v501_v18, 5  ;;  %v317_v33 = vshll.u32 %v6384_v1, 16  ;;  %v323_v34 = vshll.u32 %v6392_v10, 16 }
  0x35   : > { %5695 = vmatpush3.bf16.msra.mxu1 %v6264_v4  ;;  %v312_v37 = vsel %vm6305_vm4, %v307_v22, %v311_v55  ;;  %v498_v38 = vor.u32 %v497_v23, %v493_v17  ;;  %v316_v39 = vrot.slane %v314_v26, 4  ;;  %v327_v42 = vshrl.u32 %v6392_v10, 16 }
  0x36   : > { %v4967_v44 = vcombine.low %v302_v20, %v312_v37  ;;  %v494_v45 = vsel %vm6305_vm4, %v489_v27, %v493_v17  ;;  %v319_v47 = vrot.slane %v317_v33, 5  ;;  %v325_v48 = vrot.slane %v323_v34, 5  ;;  %5972 = vmatprep.subr.msk.bf16.mxu1 %vm724_vm0, %v6398_v19  ;;  %v6446_v33 = vld [vmem:[%s6261_s9 + $0x38] sm:$0x1] }
  0x37   : > { %v499_v4 = vrot.slane %v498_v38, 4  ;;  %v329_v49 = vrot.slane %v327_v42, 4  ;;  %v333_v50 = vshll.u32 %v6403_v24, 16  ;;  %v506_v52 = vshrl.u32 %v6410_v36, 16  ;;  %v6451_v38 = vld [vmem:[%s6261_s9 + $0x90] sm:$0xf] }
  0x38   : > { %5666 = vmatprep.mubr.msk.bf16.mxu0 %vm675_vm3, %v4967_v44  ;;  %v320_v54 = vor.u32 %v319_v47, %v316_v39  ;;  %v509_v55 = vshll.u32 %v6410_v36, 16  ;;  %v515_v57 = vshll.u32 %v6417_v43, 16  ;;  %v519_v59 = vshrl.u32 %v6417_v43, 16  ;;  %8973 = vst [vmem:[#allocation7_spill] sm:$0xff] %v6451_v38  ;;  %v6456_v47 = vld [vmem:[%s6261_s9 + $0x94] sm:$0xf] }
  0x39   : > { %v504_v0 = vsel %vm6305_vm4, %v499_v4, %v503_v28  ;;  %v330_v16 = vor.u32 %v329_v49, %v325_v48  ;;  %v335_v2 = vrot.slane %v333_v50, 5  ;;  %v508_v3 = vrot.slane %v506_v52, 4  ;;  %8974 = vst [vmem:[#allocation8_spill] sm:$0xff] %v6456_v47 }
  0x3a   : > { %v4975_v11 = vcombine.low %v494_v45, %v504_v0  ;;  %v321_v13 = vrot.slane %v320_v54, 4  ;;  %v511_v17 = vrot.slane %v509_v55, 5  ;;  %v517_v18 = vrot.slane %v515_v57, 5 }
  0x3b   : > { %v331_v20 = vrot.slane %v330_v16, 4  ;;  %v521_v22 = vrot.slane %v519_v59, 4  ;;  %v525_v23 = vshll.u32 %v6425_v51, 16  ;;  %v338_v26 = vshrl.u32 %v6433_v60, 16  ;;  %v6465_v16 = vld [vmem:[%s6261_s9 + $0x98] sm:$0x1] }
  0x3c   : > { %5682 = vmatprep.mubr.msk.bf16.mxu1 %vm675_vm3, %v4975_v11  ;;  %v326_v27 = vsel %vm6305_vm4, %v321_v13, %v325_v48  ;;  %v512_v28 = vor.u32 %v511_v17, %v508_v3  ;;  %v341_v34 = vshll.u32 %v6433_v60, 16  ;;  %v347_v37 = vshll.u32 %v6438_v9, 16  ;;  %8975 = vst [vmem:[#allocation9_spill] sm:$0xff] %v6465_v16  ;;  %v6470_v11 = vld [vmem:[%s6261_s9 + $0x3c] sm:$0xf] }
  0x3d   : > { %v336_v39 = vsel %vm6305_vm4, %v331_v20, %v335_v2  ;;  %v522_v42 = vor.u32 %v521_v22, %v517_v18  ;;  %v527_v44 = vrot.slane %v525_v23, 5  ;;  %v340_v45 = vrot.slane %v338_v26, 4  ;;  %v6475_v23 = vld [vmem:[%s6261_s9 + $0x40] sm:$0xf]  ;;  %v1182_v51 = vld [vmem:[%s6261_s9 + $0xc] sm:$0xe] }
  0x3e   : > { %v4968_v48 = vcombine.low %v326_v27, %v336_v39  ;;  %v513_v4 = vrot.slane %v512_v28, 4  ;;  %v343_v49 = vrot.slane %v341_v34, 5  ;;  %v349_v50 = vrot.slane %v347_v37, 5 }
  0x3f   : > { %v523_v52 = vrot.slane %v522_v42, 4  ;;  %v351_v54 = vshrl.u32 %v6438_v9, 16  ;;  %v357_v55 = vshll.u32 %v6446_v33, 16  ;;  %v530_v57 = vshrl.u32 %v6451_v38, 16 }
  0x40   : > { %5667 = vmatmul.mubr.msk.bf16.gmra.mxu0 %vm675_vm3, %v4968_v48  ;;  %v518_v59 = vsel %vm6305_vm4, %v513_v4, %v517_v18  ;;  %v344_v0 = vor.u32 %v343_v49, %v340_v45  ;;  %v533_v2 = vshll.u32 %v6451_v38, 16  ;;  %v539_v3 = vshll.u32 %v6456_v47, 16  ;;  %v6484_v48 = vld [vmem:[%s6261_s9 + $0x44] sm:$0x1] }
  0x41   : > { %v528_v13 = vsel %vm6305_vm4, %v523_v52, %v527_v44  ;;  %v353_v17 = vrot.slane %v351_v54, 4  ;;  %v359_v20 = vrot.slane %v357_v55, 5  ;;  %v532_v22 = vrot.slane %v530_v57, 4  ;;  %v6489_v52 = vld [vmem:[%s6261_s9 + $0x9c] sm:$0xf] }
  0x42   : > { %v4976_v18 = vcombine.low %v518_v59, %v528_v13  ;;  %v345_v26 = vrot.slane %v344_v0, 4  ;;  %v535_v27 = vrot.slane %v533_v2, 5  ;;  %v541_v28 = vrot.slane %v539_v3, 5  ;;  %8976 = vst [vmem:[#allocation10_spill] sm:$0xff] %v6489_v52  ;;  %v6493_v13 = vld [vmem:[%s6261_s9 + $0xa0] sm:$0xf] }
  0x43   : > { %v354_v34 = vor.u32 %v353_v17, %v349_v50  ;;  %v543_v37 = vshrl.u32 %v6456_v47, 16  ;;  %v549_v39 = vshll.u32 %v6465_v16, 16  ;;  %v362_v42 = vshrl.u32 %v6470_v11, 16  ;;  %8977 = vst [vmem:[#allocation11_spill] sm:$0xff] %v6493_v13 }
  0x44   : > { %5683 = vmatmul.mubr.msk.bf16.gmra.mxu1 %vm675_vm3, %v4976_v18  ;;  %v350_v44 = vsel %vm6305_vm4, %v345_v26, %v349_v50  ;;  %v536_v45 = vor.u32 %v535_v27, %v532_v22  ;;  %v365_v4 = vshll.u32 %v6470_v11, 16  ;;  %v371_v49 = vshll.u32 %v6475_v23, 16  ;;  %v6499_v26 = vld [vmem:[%s6261_s9 + $0xa4] sm:$0x1] }
  0x45   : > { %v355_v54 = vrot.slane %v354_v34, 4  ;;  %v545_v55 = vrot.slane %v543_v37, 4  ;;  %v551_v57 = vrot.slane %v549_v39, 5  ;;  %v364_v59 = vrot.slane %v362_v42, 4  ;;  %8978 = vst [vmem:[#allocation12_spill] sm:$0xff] %v6499_v26 }
  0x46   : > { %v537_v0 = vrot.slane %v536_v45, 4  ;;  %v367_v2 = vrot.slane %v365_v4, 5  ;;  %v373_v3 = vrot.slane %v371_v49, 5  ;;  %v375_v50 = vshrl.u32 %v6475_v23, 16  ;;  %v6503_v34 = vld [vmem:[%s6261_s9 + $0x48] sm:$0xf] }
  0x47   : > { %v360_v17 = vsel %vm6305_vm4, %v355_v54, %v359_v20  ;;  %v546_v22 = vor.u32 %v545_v55, %v541_v28  ;;  %v381_v18 = vshll.u32 %v6484_v48, 16  ;;  %v554_v27 = vshrl.u32 %v6489_v52, 16 }
  0x48   : > { %v4969_v37 = vcombine.low %v350_v44, %v360_v17  ;;  %v542_v39 = vsel %vm6305_vm4, %v537_v0, %v541_v28  ;;  %v368_v42 = vor.u32 %v367_v2, %v364_v59  ;;  %v377_v45 = vrot.slane %v375_v50, 4  ;;  %v6512_v17 = vld [vmem:[%s6261_s9 + $0x4c] sm:$0xf]  ;;  %v6518_v2 = vld [vmem:[%s6261_s9 + $0x50] sm:$0x1] }
  0x49   : > { %v547_v4 = vrot.slane %v546_v22, 4  ;;  %v383_v49 = vrot.slane %v381_v18, 5  ;;  %v556_v20 = vrot.slane %v554_v27, 4  ;;  %v557_v54 = vshll.u32 %v6489_v52, 16 }
  0x4a   : > { %5670 = vmatprep.mubr.msk.bf16.mxu0 %vm675_vm3, %v4969_v37  ;;  %v369_v55 = vrot.slane %v368_v42, 4  ;;  %v378_v62 = vor.u32 %v377_v45, %v373_v3  ;;  %v563_v32 = vshll.u32 %v6493_v13, 16  ;;  %v567_v44 = vshrl.u32 %v6493_v13, 16  ;;  %v6524_v42 = vld [vmem:[%s6261_s9 + $0xa8] sm:$0xf] }
  0x4b   : > { %v552_v28 = vsel %vm6305_vm4, %v547_v4, %v551_v57  ;;  %v559_v59 = vrot.slane %v557_v54, 5  ;;  %v573_v0 = vshll.u32 %v6499_v26, 16  ;;  %v386_v50 = vshrl.u32 %v6503_v34, 16  ;;  %8979 = vst [vmem:[#allocation13_spill] sm:$0xff] %v6524_v42 }
  0x4c   : > { %v4977_v22 = vcombine.low %v542_v39, %v552_v28  ;;  %v374_v18 = vsel %vm6305_vm4, %v369_v55, %v373_v3  ;;  %v379_v27 = vrot.slane %v378_v62, 4  ;;  %v565_v37 = vrot.slane %v563_v32, 5 }
  0x4d   : > { %v560_v45 = vor.u32 %v559_v59, %v556_v20  ;;  %v569_v61 = vrot.slane %v567_v44, 4  ;;  %v575_v57 = vrot.slane %v573_v0, 5  ;;  %v388_v4 = vrot.slane %v386_v50, 4  ;;  %v6534_v44 = vld [vmem:[%s6261_s9 + $0xac] sm:$0xf] }
  0x4e   : > { %5686 = vmatprep.mubr.msk.bf16.mxu1 %vm675_vm3, %v4977_v22  ;;  %v384_v54 = vsel %vm6305_vm4, %v379_v27, %v383_v49  ;;  %v389_v39 = vshll.u32 %v6503_v34, 16  ;;  %v395_v28 = vshll.u32 %v6512_v17, 16  ;;  %v399_v62 = vshrl.u32 %v6512_v17, 16  ;;  %8980 = vst [vmem:[#allocation14_spill] sm:$0xff] %v6534_v44  ;;  %v6537_v22 = vld [vmem:[%s6261_s9 + $0xb0] sm:$0x1] }
  0x4f   : > { %v4970_v3 = vcombine.low %v374_v18, %v384_v54  ;;  %v561_v32 = vrot.slane %v560_v45, 4  ;;  %v570_v55 = vor.u32 %v569_v61, %v565_v37  ;;  %v405_v20 = vshll.u32 %v6518_v2, 16  ;;  %8981 = vst [vmem:[#allocation15_spill] sm:$0xff] %v6537_v22 }
  0x50   : > { %v391_v59 = vrot.slane %v389_v39, 5  ;;  %v397_v0 = vrot.slane %v395_v28, 5  ;;  %v401_v50 = vrot.slane %v399_v62, 4  ;;  %v578_v49 = vshrl.u32 %v6524_v42, 16  ;;  %v6546_v62 = vld [vmem:[%s6261_s9 + $0x54] sm:$0xf] }
  0x51   : > { %5671 = vmatmul.mubr.msk.bf16.gmra.mxu0 %vm675_vm3, %v4970_v3  ;;  %v566_v18 = vsel %vm6305_vm4, %v561_v32, %v565_v37  ;;  %v571_v27 = vrot.slane %v570_v55, 4  ;;  %v407_v61 = vrot.slane %v405_v20, 5  ;;  %v581_v45 = vshll.u32 %v6524_v42, 16  ;;  %v6553_v55 = vld [vmem:[%s6261_s9 + $0x58] sm:$0xf] }
  0x52   : > { %v392_v54 = vor.u32 %v391_v59, %v388_v4  ;;  %v402_v56 = vor.u32 %v401_v50, %v397_v0  ;;  %v580_v39 = vrot.slane %v578_v49, 4  ;;  %v587_v28 = vshll.u32 %v6534_v44, 16  ;;  %v6556_v49 = vld [vmem:[%s6261_s9 + $0x5c] sm:$0x1] }
  0x53   : > { %v576_v3 = vsel %vm6305_vm4, %v571_v27, %v575_v57  ;;  %v583_v26 = vrot.slane %v581_v45, 5  ;;  %v591_v37 = vshrl.u32 %v6534_v44, 16  ;;  %v597_v32 = vshll.u32 %v6537_v22, 16  ;;  %v1181_v22 = vld [vmem:[%s6261_s9] sm:$0xe] }
  0x54   : > { %v4978_v4 = vcombine.low %v566_v18, %v576_v3  ;;  %v393_v20 = vrot.slane %v392_v54, 4  ;;  %v403_v59 = vrot.slane %v402_v56, 4  ;;  %v589_v50 = vrot.slane %v587_v28, 5  ;;  %v6567_v54 = vld [vmem:[%s6261_s9 + $0xb4] sm:$0xf] }
  0x55   : > { %v584_v42 = vor.u32 %v583_v26, %v580_v39  ;;  %v593_v52 = vrot.slane %v591_v37, 4  ;;  %v599_v13 = vrot.slane %v597_v32, 5  ;;  %v410_v57 = vshrl.u32 %v6546_v62, 16  ;;  %8982 = vst [vmem:[#allocation16_spill] sm:$0xff] %v6567_v54  ;;  %v6570_v37 = vld [vmem:[%s6261_s9 + $0xb8] sm:$0xf] }
  0x56   : > { %5687 = vmatmul.mubr.msk.bf16.gmra.mxu1 %vm675_vm3, %v4978_v4  ;;  %v398_v27 = vsel %vm6305_vm4, %v393_v20, %v397_v0  ;;  %v408_v18 = vsel %vm6305_vm4, %v403_v59, %v407_v61  ;;  %v413_v56 = vshll.u32 %v6546_v62, 16  ;;  %v419_v45 = vshll.u32 %v6553_v55, 16  ;;  %v6575_v61 = vld [vmem:[%s6261_s9 + $0xbc] sm:$0x1] }
  0x57   : > { %v4971_v26 = vcombine.low %v398_v27, %v408_v18  ;;  %v585_v39 = vrot.slane %v584_v42, 4  ;;  %v594_v28 = vor.u32 %v593_v52, %v589_v50  ;;  %v412_v3 = vrot.slane %v410_v57, 4 }
  0x58   : > { %v415_v32 = vrot.slane %v413_v56, 5  ;;  %v421_v4 = vrot.slane %v419_v45, 5  ;;  %v423_v0 = vshrl.u32 %v6553_v55, 16  ;;  %v429_v20 = vshll.u32 %v6556_v49, 16 }
  0x59   : > { %5674 = vmatprep.mubr.msk.bf16.mxu0 %vm675_vm3, %v4971_v26  ;;  %v590_v59 = vsel %vm6305_vm4, %v585_v39, %v589_v50  ;;  %v595_v27 = vrot.slane %v594_v28, 4  ;;  %v602_v52 = vshrl.u32 %v6567_v54, 16  ;;  %v605_v42 = vshll.u32 %v6567_v54, 16 }
  0x5a   : > { %v416_v57 = vor.u32 %v415_v32, %v412_v3  ;;  %v425_v18 = vrot.slane %v423_v0, 4  ;;  %v431_v56 = vrot.slane %v429_v20, 5  ;;  %v611_v45 = vshll.u32 %v6570_v37, 16 }
  0x5b   : > { %v600_v44 = vsel %vm6305_vm4, %v595_v27, %v599_v13  ;;  %v604_v16 = vrot.slane %v602_v52, 4  ;;  %v607_v26 = vrot.slane %v605_v42, 5  ;;  %v615_v38 = vshrl.u32 %v6570_v37, 16 }
  0x5c   : > { %v4979_v50 = vcombine.low %v590_v59, %v600_v44  ;;  %v417_v39 = vrot.slane %v416_v57, 4  ;;  %v426_v28 = vor.u32 %v425_v18, %v421_v4  ;;  %v613_v47 = vrot.slane %v611_v45, 5  ;;  %v1183_v57 = vld [vmem:[%s6261_s9 + $0x18] sm:$0xe] }
  0x5d   : > { %v608_v54 = vor.u32 %v607_v26, %v604_v16  ;;  %v617_v3 = vrot.slane %v615_v38, 4  ;;  %v621_v32 = vshll.u32 %v6575_v61, 16  ;;  %v5029_v13 = vrot.slane %v1181_v22, 9 }
  0x5e   : > { %5690 = vmatprep.mubr.msk.bf16.mxu1 %vm675_vm3, %v4979_v50  ;;  %v422_v44 = vsel %vm6305_vm4, %v417_v39, %v421_v4  ;;  %v427_v20 = vrot.slane %v426_v28, 4  ;;  %v1234_v59 = vrot.slane %v6270_v6, 5  ;;  %v4998_v38 = vcombine.low %v6298_v29, %v6301_v30 }
  0x5f   : > { %v609_v16 = vrot.slane %v608_v54, 4  ;;  %v618_v27 = vor.u32 %v617_v3, %v613_v47  ;;  %v623_v52 = vrot.slane %v621_v32, 5  ;;  %v5030_v42 = vrot.slane %v1182_v51, 9 }
  0x60   : > { %v432_v18 = vsel %vm6305_vm4, %v427_v20, %v431_v56  ;;  %v1235_v22 = vsel %vm6591_vm7, %v5029_v13, %v1234_v59  ;;  %v1236_v45 = vrot.slane %v1234_v59, 4  ;;  %v8985_v4 = vrot.slane %v6301_v30, 5 }
  0x61   : > { %v4972_v50 = vcombine.low %v422_v44, %v432_v18  ;;  %v614_v54 = vsel %vm6305_vm4, %v609_v16, %v613_v47  ;;  %v619_v39 = vrot.slane %v618_v27, 4  ;;  %v4997_v51 = vcombine.low %v6267_v5, %v6270_v6  ;;  %v1184_v27 = vld [vmem:[%s6261_s9 + $0x24] sm:$0xe] }
  0x62   : > { %v1243_v26 = vrot.slane %v8985_v4, 4  ;;  %v8986_v28 = vrot.slane %v6273_v7, 5  ;;  %v8987_v3 = vmov %v8985_v4  ;;  %v4999_v13 = vcombine.low %v6340_v8, %v6347_v21  ;;  %v1186_v4 = vld [vmem:[%s6261_s9 + $0x3c] sm:$0xe] }
  0x63   : > { %v1242_v32 = vsel %vm6591_vm7, %v5030_v42, %v8987_v3  ;;  %v5031_v44 = vrot.slane %v1183_v57, 9  ;;  %5675 = vmatmul.mubr.msk.bf16.gmra.mxu0 %vm675_vm3, %v4972_v50  ;;  %v624_v47 = vsel %vm6305_vm4, %v619_v39, %v623_v52  ;;  %v8988_v6 = vrot.slane %v6311_v41, 5  ;;  %v1185_v42 = vld [vmem:[%s6261_s9 + $0x30] sm:$0xe]  ;;  %v1187_v39 = vld [vmem:[%s6261_s9 + $0x48] sm:$0xe] }
  0x64   : > { %v1238_v56 = vsel %vm6591_vm7, %v1236_v45, %v8986_v28  ;;  %v1248_v20 = vrot.slane %v6347_v21, 5  ;;  %v4980_v59 = vcombine.low %v614_v54, %v624_v47  ;;  %v1251_v16 = vrot.slane %v6353_v25, 5  ;;  %v1188_v47 = vld [vmem:[%s6261_s9 + $0x54] sm:$0xe]  ;;  %v6886_v21 = vld [vmem:[%s6261_s9 + $0x2c] sm:$0x1] }
  0x65   : > { %v5046_v5 = vcombine.low %v1235_v22, %v1238_v56  ;;  %v1245_v7 = vsel %vm6591_vm7, %v1243_v26, %v8988_v6  ;;  %v1805_v52 = vsel %vm724_vm0, %v6398_v19, 0  ;;  %v1255_v18 = vrot.slane %v6392_v10, 5 }
  0x66   : > { %v1249_v41 = vsel %vm6591_vm7, %v5031_v44, %v1248_v20  ;;  %v1250_v57 = vrot.slane %v1248_v20, 4  ;;  %5691 = vmatmul.mubr.msk.bf16.gmra.mxu1 %vm675_vm3, %v4980_v59  ;;  %v5047_v22 = vcombine.low %v1242_v32, %v1245_v7  ;;  %v2531_v25 = vsel %vm724_vm0, %v6366_v40, 0 }
  0x67   : > { %5730 = vmatprep.mubr.msk.bf16.mxu0 %vm675_vm3, %v5046_v5  ;;  %v1262_v45 = vrot.slane %v6438_v9, 5  ;;  %5696 = vmatprep.mubr.msk.bf16.mxu1 %vm675_vm3, %v4997_v51  ;;  %v5032_v26 = vrot.slane %v1184_v27, 9  ;;  %v1258_v50 = vrot.slane %v6403_v24, 5  ;;  %v5033_v54 = vrot.slane %v1185_v42, 9  ;;  %v6658_v24 = vld [vmem:[%s8931_s1 + $0x18] sm:$0xf] }
  0x68   : > { %v1252_v19 = vsel %vm6591_vm7, %v1250_v57, %v1251_v16  ;;  %v1257_v56 = vrot.slane %v1255_v18, 4  ;;  %v1265_v32 = vrot.slane %v6446_v33, 5  ;;  %v5034_v44 = vrot.slane %v1186_v4, 9 }
  0x69   : > { %v5048_v28 = vcombine.low %v1249_v41, %v1252_v19  ;;  %v1264_v3 = vrot.slane %v1262_v45, 4  ;;  %v1269_v40 = vrot.slane %v6475_v23, 5  ;;  %v1293_v5 = vrot.slane %v6287_v15, 5 }
  0x6a   : > { %v1272_v51 = vrot.slane %v6484_v48, 5  ;;  %v5035_v6 = vrot.slane %v1187_v39, 9  ;;  %v1276_v7 = vrot.slane %v6512_v17, 5  ;;  %v5000_v33 = vcombine.low %v6384_v1, %v6392_v10  ;;  %v1189_v1 = vld [vmem:[%s6261_s9 + $0x60] sm:$0xe] }
  0x6b   : > { %5731 = vmatmul.mubr.msk.bf16.vlgmr.msra.gmra.mxu0 %vm675_vm3, %v5047_v22  ;;  %v1256_v20 = vsel %vm6591_vm7, %v5032_v26, %v1255_v18  ;;  %v1271_v59 = vrot.slane %v1269_v40, 4  ;;  %v1279_v16 = vrot.slane %v6518_v2, 5  ;;  %v1259_v48 = vsel %vm6591_vm7, %v1257_v56, %v1258_v50  ;;  %v6686_v22 = vld [vmem:[%s8931_s1 + $0x14] sm:$0xf]  ;;  %v6711_v50 = vld [vmem:[%s6261_s9 + $0x6c] sm:$0xe] }
  0x6c   : > { %5797 = vmatpush3.bf16.msra.mxu0 %v2531_v25  ;;  %5734 = vmatprep.mubr.msk.bf16.mxu0 %vm675_vm3, %v5048_v28  ;;  %v1263_v27 = vsel %vm6591_vm7, %v5033_v54, %v1262_v45  ;;  %v1266_v42 = vsel %vm6591_vm7, %v1264_v3, %v1265_v32  ;;  %v1278_v41 = vrot.slane %v1276_v7, 4  ;;  %v6676_v10 = vsel %vm6591_vm7, %v5034_v44, %v1269_v40  ;;  %v1192_v39 = vld [vmem:[%s6261_s9 + $0x84] sm:$0xe]  ;;  %v6740_v44 = vld [vmem:[%s6261_s9 + $0x78] sm:$0xe] }
  0x6d   : > { %v6680_v2 = vsel %vm6591_vm7, %v5035_v6, %v1276_v7  ;;  %v5036_v57 = vrot.slane %v1188_v47, 9  ;;  %v1283_v18 = vrot.slane %v6553_v55, 5  ;;  %5975 = vmatprep.subr.msk.bf16.mxu0 %vm724_vm0, %v6658_v24  ;;  %v6696_v25 = vsel %vm6591_vm7, %v1271_v59, %v1272_v51  ;;  %v1193_v40 = vld [vmem:[%s6261_s9 + $0x90] sm:$0xe] }
  0x6e   : > { %5697 = vmatmul.mubr.msk.bf16.vlgmr.msra.gmra.mxu1 %vm675_vm3, %v4998_v38  ;;  %v6700_v45 = vsel %vm6591_vm7, %v1278_v41, %v1279_v16  ;;  %v1286_v4 = vrot.slane %v6556_v49, 5  ;;  %v1290_v19 = vrot.slane %v6284_v14, 5  ;;  %v5049_v29 = vcombine.low %v1256_v20, %v1259_v48  ;;  %v8989_v48 = vld [vmem:[#allocation6_spill] sm:$0xff] }
  0x6f   : > { %5763 = vmatpush3.bf16.msra.mxu1 %v1805_v52  ;;  %5700 = vmatprep.mubr.msk.bf16.mxu1 %vm675_vm3, %v4999_v13  ;;  %v5001_v30 = vcombine.low %v6433_v60, %v6438_v9  ;;  %v1285_v38 = vrot.slane %v1283_v18, 4  ;;  %v5037_v26 = vrot.slane %v1189_v1, 9  ;;  %v5050_v49 = vcombine.low %v1263_v27, %v1266_v42  ;;  %v1194_v42 = vld [vmem:[%s6261_s9 + $0x9c] sm:$0xe] }
  0x70   : > { %v5002_v52 = vcombine.low %v6470_v11, %v6475_v23  ;;  %v5003_v8 = vcombine.low %v6503_v34, %v6512_v17  ;;  %5974 = vmatprep.subr.msk.bf16.mxu1 %vm724_vm0, %v6686_v22  ;;  %v5051_v60 = vcombine.low %v6676_v10, %v6696_v25  ;;  %v5052_v9 = vcombine.low %v6680_v2, %v6700_v45  ;;  %v8990_v10 = vld [vmem:[#allocation8_spill] sm:$0xff]  ;;  %v8991_v2 = vld [vmem:[#allocation7_spill] sm:$0xff] }
  0x71   : > { %v1292_v54 = vrot.slane %v1290_v19, 4  ;;  %v6730_v28 = vsel %vm6591_vm7, %v5036_v57, %v1283_v18  ;;  %v6734_v56 = vsel %vm6591_vm7, %v1285_v38, %v1286_v4  ;;  %v5038_v32 = vrot.slane %v6711_v50, 9  ;;  %v1195_v18 = vld [vmem:[%s6261_s9 + $0xa8] sm:$0xe]  ;;  %v8993_v38 = vld [vmem:[#allocation11_spill] sm:$0xff] }
  0x72   : > { %v6746_v47 = vsel %vm6591_vm7, %v5037_v26, %v1290_v19  ;;  %v1297_v51 = vrot.slane %v6326_v58, 5  ;;  %v1300_v6 = vrot.slane %v6334_v63, 5  ;;  %v5040_v59 = vrot.slane %v1192_v39, 9  ;;  %v8992_v19 = vld [vmem:[#allocation9_spill] sm:$0xff]  ;;  %v8994_v26 = vld [vmem:[#allocation10_spill] sm:$0xff] }
  0x73   : > { %5735 = vmatmul.mubr.msk.bf16.gmra.mxu0 %vm675_vm3, %v5049_v29  ;;  %v1311_v16 = vrot.slane %v6417_v43, 5  ;;  %v1314_v27 = vrot.slane %v8989_v48, 5  ;;  %v5053_v41 = vcombine.low %v6730_v28, %v6734_v56  ;;  %v6764_v63 = vsel %vm6591_vm7, %v1292_v54, %v1293_v5  ;;  %v8996_v48 = vld [vmem:[#allocation14_spill] sm:$0xff] }
  0x74   : > { %5738 = vmatprep.mubr.msk.bf16.mxu0 %vm675_vm3, %v5050_v49  ;;  %v5039_v1 = vrot.slane %v6740_v44, 9  ;;  %v5041_v4 = vrot.slane %v1193_v40, 9  ;;  %v1318_v15 = vrot.slane %v8990_v10, 5  ;;  %v1299_v5 = vrot.slane %v1297_v51, 4  ;;  %v5143_v57 = vld [vmem:[%s6261_s9 + $0xc] sm:$0xf] }
  0x75   : > { %v6773_v25 = vsel %vm6591_vm7, %v5040_v59, %v1311_v16  ;;  %v1313_v45 = vrot.slane %v1311_v16, 4  ;;  %v1321_v29 = vrot.slane %v8992_v19, 5  ;;  %v5042_v49 = vrot.slane %v1194_v42, 9  ;;  %v8995_v59 = vld [vmem:[#allocation12_spill] sm:$0xff]  ;;  %v8997_v42 = vld [vmem:[#allocation13_spill] sm:$0xff] }
  0x76   : > { %5701 = vmatmul.mubr.msk.bf16.gmra.mxu1 %vm675_vm3, %v5000_v33  ;;  %v1304_v33 = vrot.slane %v6371_v46, 5  ;;  %v6787_v39 = vsel %vm6591_vm7, %v5041_v4, %v1318_v15  ;;  %v1320_v44 = vrot.slane %v1318_v15, 4  ;;  %v1325_v40 = vrot.slane %v8993_v38, 5  ;;  %v8998_v15 = vld [vmem:[#allocation15_spill] sm:$0xff] }
  0x77   : > { %5704 = vmatprep.mubr.msk.bf16.mxu1 %vm675_vm3, %v5001_v30  ;;  %v6783_v54 = vsel %vm6591_vm7, %v1313_v45, %v1314_v27  ;;  %v1328_v16 = vrot.slane %v8995_v59, 5  ;;  %v5043_v45 = vrot.slane %v1195_v18, 9  ;;  %v1332_v4 = vrot.slane %v8996_v48, 5 }
  0x78   : > { %v6797_v27 = vsel %vm6591_vm7, %v1320_v44, %v1321_v29  ;;  %v1335_v50 = vrot.slane %v8998_v15, 5  ;;  %v6807_v19 = vsel %vm6591_vm7, %v5042_v49, %v1325_v40  ;;  %v1327_v7 = vrot.slane %v1325_v40, 4  ;;  %v8999_v29 = vld [vmem:[#allocation16_spill] sm:$0xff]  ;;  %v9000_v15 = vld [vmem:[#allocation5_spill] sm:$0xff]  ;;  %v6822_v49 = vld [vmem:[%s6261_s9 + $0x10] sm:$0xf] }
  0x79   : > { %v6814_v18 = vsel %vm6591_vm7, %v5038_v32, %v1297_v51  ;;  %v6819_v59 = vsel %vm6591_vm7, %v5043_v45, %v1332_v4  ;;  %v1334_v30 = vrot.slane %v1332_v4, 4  ;;  %v5146_v40 = vld [vmem:[%s6261_s9 + $0x18] sm:$0xf]  ;;  %v1306_v20 = vrot.slane %v1304_v33, 4 }
  0x7a   : > { %v2049_v44 = vshrl.u32 %v5143_v57, 16  ;;  %v2052_v32 = vshll.u32 %v5143_v57, 16  ;;  %v5054_v51 = vcombine.low %v6746_v47, %v6764_v63  ;;  %v6837_v45 = vsel %vm6591_vm7, %v1299_v5, %v1300_v6  ;;  %v1196_v57 = vld [vmem:[%s6261_s9 + $0xb4] sm:$0xe]  ;;  %v6858_v47 = vld [vmem:[%s6261_s9 + $0x14] sm:$0x1] }
  0x7b   : > { %5739 = vmatmul.mubr.msk.bf16.gmra.mxu0 %vm675_vm3, %v5051_v60  ;;  %v1307_v60 = vrot.slane %v9000_v15, 5  ;;  %v6852_v11 = vsel %vm6591_vm7, %v5039_v1, %v1304_v33  ;;  %v2058_v6 = vshll.u32 %v6822_v49, 16  ;;  %v5147_v63 = vld [vmem:[%s6261_s9 + $0x1c] sm:$0xf]  ;;  %v2062_v17 = vshrl.u32 %v6822_v49, 16 }
  0x7c   : > { %5742 = vmatprep.mubr.msk.bf16.mxu0 %vm675_vm3, %v5052_v9  ;;  %v6827_v9 = vsel %vm6591_vm7, %v1327_v7, %v1328_v16  ;;  %v6843_v7 = vsel %vm6591_vm7, %v1334_v30, %v1335_v50  ;;  %v2051_v5 = vrot.slane %v2049_v44, 4  ;;  %v2054_v34 = vrot.slane %v2052_v32, 5  ;;  %v5149_v15 = vld [vmem:[%s6261_s9 + $0x24] sm:$0xf]  ;;  %v6871_v44 = vld [vmem:[%s6261_s9 + $0x28] sm:$0xf] }
  0x7d   : > { %v2073_v50 = vshrl.u32 %v5146_v40, 16  ;;  %v1308_v1 = vsel %vm6591_vm7, %v1306_v20, %v1307_v60  ;;  %v5044_v33 = vrot.slane %v1196_v57, 9  ;;  %v6866_v30 = vrot.slane %v2058_v6, 5 }
  0x7e   : > { %5705 = vmatmul.mubr.msk.bf16.gmra.mxu1 %vm675_vm3, %v5002_v52  ;;  %v1339_v52 = vrot.slane %v6570_v37, 5  ;;  %v2076_v16 = vshll.u32 %v5146_v40, 16  ;;  %v1342_v23 = vrot.slane %v6575_v61, 5  ;;  %v2064_v4 = vrot.slane %v2062_v17, 4 }
  0x7f   : > { %5708 = vmatprep.mubr.msk.bf16.mxu1 %vm675_vm3, %v5003_v8  ;;  %v5148_v8 = vld [vmem:[%s6261_s9 + $0x20] sm:$0x1]  ;;  %v2075_v3 = vrot.slane %v2073_v50, 4  ;;  %v2082_v13 = vshll.u32 %v5147_v63, 16  ;;  %v2068_v20 = vshll.u32 %v6858_v47, 16  ;;  %v2086_v57 = vshrl.u32 %v5147_v63, 16 }
  0x80   : > { %v1341_v32 = vrot.slane %v1339_v52, 4  ;;  %v2078_v60 = vrot.slane %v2076_v16, 5  ;;  %v5055_v61 = vcombine.low %v6814_v18, %v6837_v45  ;;  %v5056_v40 = vcombine.low %v6852_v11, %v1308_v1 }
  0x81   : > { %v2055_v6 = vor.u32 %v2054_v34, %v2051_v5  ;;  %v6882_v17 = vrot.slane %v2082_v13, 5  ;;  %v2065_v28 = vor.u32 %v2064_v4, %v6866_v30  ;;  %v2092_v50 = vshll.u32 %v5148_v8, 16  ;;  %v6909_v5 = vld [vmem:[%s6261_s9 + $0x34] sm:$0xf] }
  0x82   : > { %v2079_v56 = vor.u32 %v2078_v60, %v2075_v3  ;;  %v6894_v18 = vsel %vm6591_vm7, %v5044_v33, %v1339_v52  ;;  %v2097_v13 = vshrl.u32 %v5149_v15, 16  ;;  %v2100_v45 = vshll.u32 %v5149_v15, 16  ;;  %v5152_v52 = vld [vmem:[%s6261_s9 + $0x30] sm:$0xf] }
  0x83   : > { %5743 = vmatmul.mubr.msk.bf16.gmra.mxu0 %vm675_vm3, %v5053_v41  ;;  %v2088_v41 = vrot.slane %v2086_v57, 4  ;;  %v2106_v11 = vshll.u32 %v6871_v44, 16  ;;  %v9002_v3 = vcombine.low %v6280_v12, %v6284_v14  ;;  %v6903_v4 = vsel %vm6591_vm7, %v1341_v32, %v1342_v23 }
  0x84   : > { %5746 = vmatprep.mubr.msk.bf16.mxu0 %vm675_vm3, %v5054_v51  ;;  %v9001_v51 = vcombine.low %v6546_v62, %v6553_v55  ;;  %v2070_v62 = vrot.slane %v2068_v20, 5  ;;  %v2110_v63 = vshrl.u32 %v6871_v44, 16  ;;  %v2056_v34 = vrot.slane %v2055_v6, 4 }
  0x85   : > { %v2089_v55 = vor.u32 %v2088_v41, %v6882_v17  ;;  %v2099_v8 = vrot.slane %v2097_v13, 4  ;;  %v2102_v1 = vrot.slane %v2100_v45, 5  ;;  %v6911_v33 = vrot.slane %v2106_v11, 5  ;;  %v6917_v41 = vld [vmem:[%s6261_s9 + $0x38] sm:$0x1] }
  0x86   : > { %5709 = vmatmul.mubr.msk.bf16.gmra.mxu1 %vm675_vm3, %v9001_v51  ;;  %v2066_v12 = vrot.slane %v2065_v28, 4  ;;  %v2080_v14 = vrot.slane %v2079_v56, 4  ;;  %v2094_v16 = vrot.slane %v2092_v50, 5  ;;  %v2112_v23 = vrot.slane %v2110_v63, 4  ;;  %v5155_v13 = vld [vmem:[%s6261_s9 + $0x3c] sm:$0xf] }
  0x87   : > { %5712 = vmatprep.mubr.msk.bf16.mxu1 %vm675_vm3, %v9002_v3  ;;  %v2090_v15 = vrot.slane %v2089_v55, 4  ;;  %v2116_v32 = vshll.u32 %v6886_v21, 16  ;;  %v2121_v20 = vshrl.u32 %v5152_v52, 16  ;;  %v2124_v60 = vshll.u32 %v5152_v52, 16 }
  0x88   : > { %v2103_v57 = vor.u32 %v2102_v1, %v2099_v8  ;;  %v2113_v6 = vor.u32 %v2112_v23, %v6911_v33  ;;  %v2130_v28 = vshll.u32 %v6909_v5, 16  ;;  %v2134_v56 = vshrl.u32 %v6909_v5, 16  ;;  %v5158_v8 = vld [vmem:[%s6261_s9 + $0x48] sm:$0xf]  ;;  %v6944_v1 = vld [vmem:[%s6261_s9 + $0x4c] sm:$0xf] }
  0x89   : > { %v2123_v50 = vrot.slane %v2121_v20, 4  ;;  %v2126_v51 = vrot.slane %v2124_v60, 5  ;;  %v9003_v3 = vcombine.low %v6322_v53, %v6326_v58  ;;  %v5061_v55 = vcombine.low %v6894_v18, %v6903_v4 }
  0x8a   : > { %v6923_v45 = vrot.slane %v2130_v28, 5  ;;  %v2136_v11 = vrot.slane %v2134_v56, 4  ;;  %v2071_v63 = vsel %vm6305_vm4, %v2066_v12, %v2070_v62  ;;  %v2085_v52 = vsel %vm6305_vm4, %v2080_v14, %v6882_v17 }
  0x8b   : > { %5747 = vmatmul.mubr.msk.bf16.gmra.mxu0 %vm675_vm3, %v5055_v61  ;;  %v6926_v61 = vld [vmem:[%s6261_s9 + $0x40] sm:$0xf]  ;;  %v9004_v53 = vcombine.low %v6360_v35, %v6371_v46  ;;  %v2095_v58 = vsel %vm6305_vm4, %v2090_v15, %v2094_v16  ;;  %v2104_v23 = vrot.slane %v2103_v57, 4  ;;  %v2127_v20 = vor.u32 %v2126_v51, %v2123_v50  ;;  %v6978_v50 = vld [vmem:[%s6261_s9 + $0x44] sm:$0x1] }
  0x8c   : > { %5750 = vmatprep.mubr.msk.bf16.mxu0 %vm675_vm3, %v5056_v40  ;;  %v2061_v40 = vsel %vm6305_vm4, %v2056_v34, %v6866_v30  ;;  %v2114_v30 = vrot.slane %v2113_v6, 4  ;;  %v2118_v34 = vrot.slane %v2116_v32, 5  ;;  %v2140_v62 = vshll.u32 %v6917_v41, 16  ;;  %v5161_v51 = vld [vmem:[%s6261_s9 + $0x54] sm:$0xf] }
  0x8d   : > { %v2145_v12 = vshrl.u32 %v5155_v13, 16  ;;  %v2148_v17 = vshll.u32 %v5155_v13, 16  ;;  %v6955_v14 = vsel %vm724_vm0, %v6686_v22, 0  ;;  %v2137_v35 = vor.u32 %v2136_v11, %v6923_v45 }
  0x8e   : > { %5713 = vmatmul.mubr.msk.bf16.gmra.mxu1 %vm675_vm3, %v9003_v3  ;;  %v2154_v46 = vshll.u32 %v6926_v61, 16  ;;  %v2158_v16 = vshrl.u32 %v6926_v61, 16  ;;  %v6960_v15 = vcombine.low %v2061_v40, %v2071_v63  ;;  %v6964_v32 = vsel %vm724_vm0, %v6658_v24, 0  ;;  %v6987_v40 = vld [vmem:[%s6261_s9 + $0x58] sm:$0xf] }
  0x8f   : > { %5716 = vmatprep.mubr.msk.bf16.mxu1 %vm675_vm3, %v9004_v53  ;;  %v2169_v60 = vshrl.u32 %v5158_v8, 16  ;;  %v2172_v57 = vshll.u32 %v5158_v8, 16  ;;  %v9005_v6 = vcombine.low %v6773_v25, %v6783_v54  ;;  %v6970_v22 = vcombine.low %v2085_v52, %v2095_v58  ;;  %v6992_v8 = vld [vmem:[%s6261_s9 + $0x50] sm:$0x1] }
  0x90   : > { %v2109_v28 = vsel %vm6305_vm4, %v2104_v23, %v6911_v33  ;;  %v2119_v56 = vsel %vm6305_vm4, %v2114_v30, %v2118_v34  ;;  %v2178_v24 = vshll.u32 %v6944_v1, 16  ;;  %v9006_v25 = vcombine.low %v6787_v39, %v6797_v27  ;;  %v5164_v34 = vld [vmem:[%s6261_s9 + $0x60] sm:$0xf] }
  0x91   : > { %v2128_v54 = vrot.slane %v2127_v20, 4  ;;  %v2142_v13 = vrot.slane %v2140_v62, 5  ;;  %v2147_v11 = vrot.slane %v2145_v12, 4  ;;  %v2150_v3 = vrot.slane %v2148_v17, 5 }
  0x92   : > { %v2138_v33 = vrot.slane %v2137_v35, 4  ;;  %v6989_v63 = vrot.slane %v2154_v46, 5  ;;  %v2160_v52 = vrot.slane %v2158_v16, 4  ;;  %v2182_v53 = vshrl.u32 %v6944_v1, 16  ;;  %v7009_v35 = vld [vmem:[%s6261_s9 + $0x5c] sm:$0x1] }
  0x93   : > { %5751 = vmatmul.mubr.msk.bf16.gmra.mxu0 %vm675_vm3, %v9005_v6  ;;  %v9007_v39 = vcombine.low %v6410_v36, %v6417_v43  ;;  %v2171_v27 = vrot.slane %v2169_v60, 4  ;;  %v2174_v58 = vrot.slane %v2172_v57, 5  ;;  %v2193_v23 = vshrl.u32 %v5161_v51, 16 }
  0x94   : > { %5754 = vmatprep.mubr.msk.bf16.mxu0 %vm675_vm3, %v9006_v25  ;;  %v2196_v30 = vshll.u32 %v5161_v51, 16  ;;  %v9008_v20 = vcombine.low %v8991_v2, %v8990_v10  ;;  %v7004_v62 = vcombine.low %v2109_v28, %v2119_v56  ;;  %v7006_v12 = vrot.slane %v2178_v24, 5  ;;  %v7022_v28 = vld [vmem:[%s6261_s9 + $0x64] sm:$0xf] }
  0x95   : > { %v2184_v17 = vrot.slane %v2182_v53, 4  ;;  %v2202_v36 = vshll.u32 %v6987_v40, 16  ;;  %v2164_v43 = vshll.u32 %v6978_v50, 16  ;;  %v2195_v46 = vrot.slane %v2193_v23, 4 }
  0x96   : > { %5717 = vmatmul.mubr.msk.bf16.gmra.mxu1 %vm675_vm3, %v9007_v39  ;;  %v2198_v16 = vrot.slane %v2196_v30, 5  ;;  %v2206_v60 = vshrl.u32 %v6987_v40, 16  ;;  %v2133_v10 = vsel %vm6305_vm4, %v2128_v54, %v6923_v45  ;;  %v2143_v2 = vsel %vm6305_vm4, %v2138_v33, %v2142_v13  ;;  %v7044_v30 = vld [vmem:[%s6261_s9 + $0x68] sm:$0x1] }
  0x97   : > { %5720 = vmatprep.mubr.msk.bf16.mxu1 %vm675_vm3, %v9008_v20  ;;  %v2151_v57 = vor.u32 %v2150_v3, %v2147_v11  ;;  %v7019_v6 = vrot.slane %v2202_v36, 5  ;;  %v2161_v56 = vor.u32 %v2160_v52, %v6989_v63  ;;  %v2175_v24 = vor.u32 %v2174_v58, %v2171_v27  ;;  %v5167_v3 = vld [vmem:[%s6261_s9 + $0x6c] sm:$0xf]  ;;  %v7041_v27 = vld [vmem:[%s6261_s9 + $0x70] sm:$0xf] }
  0x98   : > { %v2188_v51 = vshll.u32 %v6992_v8, 16  ;;  %v2208_v25 = vrot.slane %v2206_v60, 4  ;;  %v9009_v53 = vcombine.low %v6807_v19, %v6827_v9  ;;  %v2185_v45 = vor.u32 %v2184_v17, %v7006_v12 }
  0x99   : > { %v2199_v54 = vor.u32 %v2198_v16, %v2195_v46  ;;  %v2217_v13 = vshrl.u32 %v5164_v34, 16  ;;  %v2220_v11 = vshll.u32 %v5164_v34, 16  ;;  %v9010_v33 = vcombine.low %v6819_v59, %v6843_v7  ;;  %v5170_v16 = vld [vmem:[%s6261_s9 + $0x78] sm:$0xf] }
  0x9a   : > { %v2209_v52 = vor.u32 %v2208_v25, %v7019_v6  ;;  %v2212_v39 = vshll.u32 %v7009_v35, 16  ;;  %v2226_v19 = vshll.u32 %v7022_v28, 16  ;;  %v2230_v9 = vshrl.u32 %v7022_v28, 16 }
  0x9b   : > { %5755 = vmatmul.mubr.msk.bf16.gmra.mxu0 %vm675_vm3, %v9009_v53  ;;  %v2152_v58 = vrot.slane %v2151_v57, 4  ;;  %v2166_v23 = vrot.slane %v2164_v43, 5  ;;  %v2219_v34 = vrot.slane %v2217_v13, 4  ;;  %v2222_v20 = vrot.slane %v2220_v11, 5 }
  0x9c   : > { %5758 = vmatprep.mubr.msk.bf16.mxu0 %vm675_vm3, %v9010_v33  ;;  %v9011_v59 = vcombine.low %v8994_v26, %v8993_v38  ;;  %v7050_v7 = vcombine.low %v2133_v10, %v2143_v2  ;;  %v2162_v17 = vrot.slane %v2161_v56, 4  ;;  %v2176_v36 = vrot.slane %v2175_v24, 4  ;;  %v7060_v2 = vld [vmem:[%s6261_s9 + $0x7c] sm:$0xf] }
  0x9d   : > { %v7052_v46 = vrot.slane %v2226_v19, 5  ;;  %v9012_v43 = vcombine.low %v8997_v42, %v8996_v48  ;;  %v2186_v60 = vrot.slane %v2185_v45, 4  ;;  %v2190_v57 = vrot.slane %v2188_v51, 5  ;;  %9013 = vst [vmem:[#allocation6_spill] sm:$0xff] %v7060_v2  ;;  %v5173_v19 = vld [vmem:[%s6261_s9 + $0x84] sm:$0xf] }
  0x9e   : > { %5721 = vmatmul.mubr.msk.bf16.gmra.mxu1 %vm675_vm3, %v9011_v59  ;;  %v2200_v25 = vrot.slane %v2199_v54, 4  ;;  %v2232_v38 = vrot.slane %v2230_v9, 4  ;;  %v2210_v26 = vrot.slane %v2209_v52, 4  ;;  %v2214_v53 = vrot.slane %v2212_v39, 5 }
  0x9f   : > { %5724 = vmatprep.mubr.msk.bf16.mxu1 %vm675_vm3, %v9012_v43  ;;  %v2223_v13 = vor.u32 %v2222_v20, %v2219_v34  ;;  %v2241_v10 = vshrl.u32 %v5167_v3, 16  ;;  %v2157_v56 = vsel %vm6305_vm4, %v2152_v58, %v6989_v63  ;;  %v2244_v24 = vshll.u32 %v5167_v3, 16  ;;  %v6052_v63 = vld [vmem:[%s6261_s9 + $0xc] sm:$0xff]   ;;  %v7094_v34 = vld [vmem:[%s6261_s9 + $0x88] sm:$0xf] }
  0xa0   : > { %v2250_v48 = vshll.u32 %v7041_v27, 16  ;;  %v2254_v42 = vshrl.u32 %v7041_v27, 16  ;;  %v2167_v51 = vsel %vm6305_vm4, %v2162_v17, %v2166_v23  ;;  %v2181_v45 = vsel %vm6305_vm4, %v2176_v36, %v7006_v12  ;;  %9014 = vst [vmem:[#allocation8_spill] sm:$0xff] %v7094_v34  ;;  %v7103_v36 = vld [vmem:[%s6261_s9 + $0x74] sm:$0x1] }
  0xa1   : > { %v2233_v54 = vor.u32 %v2232_v38, %v7052_v46  ;;  %v2236_v11 = vshll.u32 %v7044_v30, 16  ;;  %v2191_v3 = vsel %vm6305_vm4, %v2186_v60, %v2190_v57  ;;  %v2205_v33 = vsel %vm6305_vm4, %v2200_v25, %v7019_v6  ;;  %9016 = vst [vmem:[#allocation7_spill] sm:$0xff] %v7103_v36  ;;  %v7113_v38 = vld [vmem:[%s6261_s9 + $0x80] sm:$0x1] }
  0xa2   : > { %v2265_v52 = vshrl.u32 %v5170_v16, 16  ;;  %v2268_v12 = vshll.u32 %v5170_v16, 16  ;;  %v2215_v18 = vsel %vm6305_vm4, %v2210_v26, %v2214_v53  ;;  %v2224_v4 = vrot.slane %v2223_v13, 4  ;;  %9017 = vst [vmem:[#allocation9_spill] sm:$0xff] %v7113_v38  ;;  %v7116_v26 = vld [vmem:[%s6261_s9 + $0x8c] sm:$0x1] }
  0xa3   : > { %5759 = vmatmul.mubr.msk.bf16.gmra.mxu0 %vm675_vm3, %v5061_v55  ;;  %v2243_v55 = vrot.slane %v2241_v10, 4  ;;  %v2274_v39 = vshll.u32 %v7060_v2, 16  ;;  %v2246_v9 = vrot.slane %v2244_v24, 5  ;;  %v7090_v58 = vrot.slane %v2250_v48, 5  ;;  %9018 = vst [vmem:[#allocation11_spill] sm:$0xff] %v7116_v26  ;;  %v6053_v10 = vld [vmem:[%s6261_s9 + $0x18] sm:$0xff]  }
  0xa4   : > { %5798 = vmatprep.mubr.msk.bf16.mxu0 %vm675_vm3, %v6960_v15  ;;  %v2256_v23 = vrot.slane %v2254_v42, 4  ;;  %v2278_v6 = vshrl.u32 %v7060_v2, 16  ;;  %v9015_v15 = vcombine.low %v8999_v29, %v6570_v37  ;;  %v7100_v20 = vcombine.low %v2157_v56, %v2167_v51  ;;  %v5176_v51 = vld [vmem:[%s6261_s9 + $0x90] sm:$0xf] }
  0xa5   : > { %v2234_v59 = vrot.slane %v2233_v54, 4  ;;  %v2238_v17 = vrot.slane %v2236_v11, 5  ;;  %v2267_v16 = vrot.slane %v2265_v52, 4  ;;  %v2270_v43 = vrot.slane %v2268_v12, 5 }
  0xa6   : > { %5725 = vmatmul.mubr.msk.bf16.gmra.mxu1 %vm675_vm3, %v9015_v15  ;;  %v7106_v60 = vrot.slane %v2274_v39, 5  ;;  %v2280_v57 = vrot.slane %v2278_v6, 4  ;;  %v2289_v25 = vshrl.u32 %v5173_v19, 16  ;;  %v7108_v37 = vcombine.low %v2181_v45, %v2191_v3  ;;  %v7127_v45 = vld [vmem:[%s6261_s9 + $0x94] sm:$0xf] }
  0xa7   : > { %5764 = vmatprep.mubr.msk.bf16.mxu1 %vm675_vm3, %v6052_v63  ;;  %v7110_v29 = vcombine.low %v2205_v33, %v2215_v18  ;;  %v2292_v53 = vshll.u32 %v5173_v19, 16  ;;  %v2298_v13 = vshll.u32 %v7094_v34, 16  ;;  %v2229_v56 = vsel %vm6305_vm4, %v2224_v4, %v7052_v46  ;;  %9019 = vst [vmem:[#allocation10_spill] sm:$0xff] %v7127_v45  ;;  %v7135_v33 = vld [vmem:[%s8931_s1 + $0x20] sm:$0xf]  ;;  %v6054_v46 = vld [vmem:[%s6261_s9 + $0x24] sm:$0xff]  }
  0xa8   : > { %v2247_v24 = vor.u32 %v2246_v9, %v2243_v55  ;;  %v2257_v48 = vor.u32 %v2256_v23, %v7090_v58  ;;  %v2260_v42 = vshll.u32 %v7103_v36, 16  ;;  %v2291_v54 = vrot.slane %v2289_v25, 4  ;;  %9020 = vst [vmem:[#allocation12_spill] sm:$0xff] %v7135_v33 }
  0xa9   : > { %v2294_v11 = vrot.slane %v2292_v53, 5  ;;  %v7129_v63 = vrot.slane %v2298_v13, 5  ;;  %v2302_v3 = vshrl.u32 %v7094_v34, 16  ;;  %v2239_v52 = vsel %vm6305_vm4, %v2234_v59, %v2238_v17 }
  0xaa   : > { %v2271_v12 = vor.u32 %v2270_v43, %v2267_v16  ;;  %v2281_v18 = vor.u32 %v2280_v57, %v7106_v60  ;;  %v2284_v4 = vshll.u32 %v7113_v38, 16  ;;  %v2313_v19 = vshrl.u32 %v5176_v51, 16  ;;  %v7169_v57 = vld [vmem:[%s6261_s9 + $0xa0] sm:$0xf] }
  0xab   : > { %5799 = vmatmul.mubr.msk.bf16.vlgmr.msra.gmra.mxu0 %vm675_vm3, %v6970_v22  ;;  %v2295_v55 = vor.u32 %v2294_v11, %v2291_v54  ;;  %v2304_v39 = vrot.slane %v2302_v3, 4  ;;  %v2316_v9 = vshll.u32 %v5176_v51, 16  ;;  %v5179_v22 = vld [vmem:[%s6261_s9 + $0x9c] sm:$0xf]  ;;  %v7148_v23 = vrot.slane %v2247_v24, 4  ;;  %9022 = vst [vmem:[#allocation13_spill] sm:$0xff] %v7169_v57 }
  0xac   : > { %5865 = vmatpush3.bf16.msra.mxu0 %v6964_v32  ;;  %5802 = vmatprep.mubr.msk.bf16.mxu0 %vm675_vm3, %v7004_v62  ;;  %v7150_v6 = vrot.slane %v2260_v42, 5  ;;  %v2308_v15 = vshll.u32 %v7116_v26, 16  ;;  %v2322_v59 = vshll.u32 %v7127_v45, 16  ;;  %v7157_v32 = vld [vmem:[%s8931_s1 + $0x1c] sm:$0xf]  ;;  %v7162_v62 = vcombine.low %v2229_v56, %v2239_v52 }
  0xad   : > { %9021 = vst [vmem:[#allocation14_spill] sm:$0xff] %v7157_v32  ;;  %5977 = vmatprep.subr.msk.bf16.mxu0 %vm724_vm0, %v7135_v33  ;;  %v7164_v17 = vrot.slane %v2257_v48, 4  ;;  %v2305_v16 = vor.u32 %v2304_v39, %v7129_v63  ;;  %v2326_v43 = vshrl.u32 %v7127_v45, 16  ;;  %v7173_v25 = vrot.slane %v2271_v12, 4  ;;  %v7182_v56 = vld [vmem:[%s6261_s9 + $0x98] sm:$0x1] }
  0xae   : > { %5765 = vmatmul.mubr.msk.bf16.vlgmr.msra.gmra.mxu1 %vm675_vm3, %v6053_v10  ;;  %v7175_v53 = vrot.slane %v2281_v18, 4  ;;  %v7177_v13 = vrot.slane %v2284_v4, 5  ;;  %v7179_v10 = vrot.slane %v2295_v55, 4  ;;  %9023 = vst [vmem:[#allocation15_spill] sm:$0xff] %v7182_v56  ;;  %v2315_v24 = vrot.slane %v2313_v19, 4  ;;  %v6056_v19 = vld [vmem:[%s6261_s9 + $0x3c] sm:$0xff]  }
  0xaf   : > { %5831 = vmatpush3.bf16.msra.mxu1 %v6955_v14  ;;  %5768 = vmatprep.mubr.msk.bf16.mxu1 %vm675_vm3, %v6054_v46  ;;  %v2318_v48 = vrot.slane %v2316_v9, 5  ;;  %v2337_v42 = vshrl.u32 %v5179_v22, 16  ;;  %v2340_v51 = vshll.u32 %v5179_v22, 16  ;;  %v6055_v14 = vld [vmem:[%s6261_s9 + $0x30] sm:$0xff]   ;;  %v7191_v11 = vrot.slane %v2308_v15, 5 }
  0xb0   : > { %5976 = vmatprep.subr.msk.bf16.mxu1 %vm724_vm0, %v7157_v32  ;;  %v7193_v3 = vrot.slane %v2322_v59, 5  ;;  %v2346_v46 = vshll.u32 %v7169_v57, 16  ;;  %v5182_v52 = vld [vmem:[%s6261_s9 + $0xa8] sm:$0xf]  ;;  %v7197_v12 = vrot.slane %v2305_v16, 4  ;;  %v2328_v18 = vrot.slane %v2326_v43, 4 }
  0xb1   : > { %v2332_v4 = vshll.u32 %v7182_v56, 16  ;;  %v2350_v55 = vshrl.u32 %v7169_v57, 16  ;;  %v7202_v39 = vld [vmem:[%s6261_s9 + $0xac] sm:$0xf]  ;;  %v2319_v59 = vor.u32 %v2318_v48, %v2315_v24  ;;  %v7226_v16 = vld [vmem:[%s6261_s9 + $0xa4] sm:$0x1] }
  0xb2   : > { %9024 = vst [vmem:[#allocation16_spill] sm:$0xff] %v7202_v39  ;;  %9025 = vst [vmem:[#allocation5_spill] sm:$0xff] %v7226_v16  ;;  %v2339_v43 = vrot.slane %v2337_v42, 4  ;;  %v2342_v22 = vrot.slane %v2340_v51, 5  ;;  %v2361_v54 = vshrl.u32 %v5182_v52, 16  ;;  %v7228_v9 = vrot.slane %v2346_v46, 5 }
  0xb3   : > { %5803 = vmatmul.mubr.msk.bf16.gmra.mxu0 %vm675_vm3, %v7050_v7  ;;  %v2352_v32 = vrot.slane %v2350_v55, 4  ;;  %v2364_v15 = vshll.u32 %v5182_v52, 16  ;;  %v2370_v33 = vshll.u32 %v7202_v39, 16  ;;  %v5185_v57 = vld [vmem:[%s6261_s9 + $0xb4] sm:$0xf]  ;;  %v2329_v24 = vor.u32 %v2328_v18, %v7193_v3 }
  0xb4   : > { %5806 = vmatprep.mubr.msk.bf16.mxu0 %vm675_vm3, %v7100_v20  ;;  %v2311_v20 = vsel %vm6305_vm4, %v7197_v12, %v7191_v11  ;;  %v7238_v48 = vrot.slane %v2332_v4, 5  ;;  %v7241_v42 = vld [vmem:[%s6261_s9 + $0xb0] sm:$0x1]  ;;  %v2363_v51 = vrot.slane %v2361_v54, 4  ;;  %v7244_v46 = vld [vmem:[%s6261_s9 + $0xb8] sm:$0xf]  ;;  %v2343_v18 = vor.u32 %v2342_v22, %v2339_v43 }
  0xb5   : > { %9026 = vst [vmem:[#allocation17_spill] sm:$0xff] %v7241_v42  ;;  %9027 = vst [vmem:[#allocation18_spill] sm:$0xff] %v7244_v46  ;;  %v2366_v52 = vrot.slane %v2364_v15, 5  ;;  %v7248_v55 = vrot.slane %v2370_v33, 5  ;;  %v2374_v11 = vshrl.u32 %v7202_v39, 16  ;;  %v7251_v12 = vrot.slane %v2319_v59, 4 }
  0xb6   : > { %5769 = vmatmul.mubr.msk.bf16.gmra.mxu1 %vm675_vm3, %v6055_v14  ;;  %v2356_v14 = vshll.u32 %v7226_v16, 16  ;;  %v7254_v4 = vld [vmem:[%s6261_s9 + $0xbc] sm:$0x1]  ;;  %v2385_v54 = vshrl.u32 %v5185_v57, 16  ;;  %v2388_v7 = vshll.u32 %v5185_v57, 16  ;;  %v2353_v56 = vor.u32 %v2352_v32, %v7228_v9  ;;  %v6057_v16 = vld [vmem:[%s6261_s9 + $0x48] sm:$0xff]  }
  0xb7   : > { %5772 = vmatprep.mubr.msk.bf16.mxu1 %vm675_vm3, %v6056_v19  ;;  %v2376_v45 = vrot.slane %v2374_v11, 4  ;;  %v2380_v19 = vshll.u32 %v7241_v42, 16  ;;  %v2394_v15 = vshll.u32 %v7244_v46, 16  ;;  %v5188_v33 = vld [vmem:[%s6261_s9 + $0xc0] sm:$0xf]  ;;  %v2367_v26 = vor.u32 %v2366_v52, %v2363_v51  ;;  %v6058_v57 = vld [vmem:[%s6261_s9 + $0x54] sm:$0xff]  }
  0xb8   : > { %v2387_v39 = vrot.slane %v2385_v54, 4  ;;  %v2390_v34 = vrot.slane %v2388_v7, 5  ;;  %v2398_v59 = vshrl.u32 %v7244_v46, 16  ;;  %v7263_v22 = vld [vmem:[%s6261_s9 + $0xc4] sm:$0xf]  ;;  %v2330_v43 = vrot.slane %v2329_v24, 4 }
  0xb9   : > { %v2358_v32 = vrot.slane %v2356_v14, 5  ;;  %v2377_v11 = vor.u32 %v2376_v45, %v7248_v55  ;;  %v2396_v42 = vrot.slane %v2394_v15, 5  ;;  %v2404_v7 = vshll.u32 %v7254_v4, 16  ;;  %v7275_v45 = vld [vmem:[%s6261_s9 + $0xc8] sm:$0x1] }
  0xba   : > { %v2391_v51 = vor.u32 %v2390_v34, %v2387_v39  ;;  %v2400_v52 = vrot.slane %v2398_v59, 4  ;;  %v2409_v54 = vshrl.u32 %v5188_v33, 16  ;;  %v2344_v46 = vrot.slane %v2343_v18, 4 }
  0xbb   : > { %5807 = vmatmul.mubr.msk.bf16.gmra.mxu0 %vm675_vm3, %v7108_v37  ;;  %v2354_v38 = vrot.slane %v2353_v56, 4  ;;  %v2412_v2 = vshll.u32 %v5188_v33, 16  ;;  %v2418_v37 = vshll.u32 %v7263_v22, 16  ;;  %v2368_v24 = vrot.slane %v2367_v26, 4 }
  0xbc   : > { %5810 = vmatprep.mubr.msk.bf16.mxu0 %vm675_vm3, %v7110_v29  ;;  %v2382_v14 = vrot.slane %v2380_v19, 5  ;;  %v2401_v36 = vor.u32 %v2400_v52, %v2396_v42  ;;  %v2411_v15 = vrot.slane %v2409_v54, 4  ;;  %v2378_v34 = vrot.slane %v2377_v11, 4 }
  0xbd   : > { %v2414_v29 = vrot.slane %v2412_v2, 5  ;;  %v7278_v39 = vrot.slane %v2418_v37, 5  ;;  %v2422_v56 = vshrl.u32 %v7263_v22, 16  ;;  %v9028_v26 = vsel %vm6305_vm4, %v7164_v17, %v7150_v6 }
  0xbe   : > { %5773 = vmatmul.mubr.msk.bf16.gmra.mxu1 %vm675_vm3, %v6057_v16  ;;  %v9029_v16 = vsel %vm6305_vm4, %v7148_v23, %v7090_v58  ;;  %v2392_v19 = vrot.slane %v2391_v51, 4  ;;  %v2402_v33 = vrot.slane %v2401_v36, 4  ;;  %v2406_v2 = vrot.slane %v2404_v7, 5  ;;  %v6059_v23 = vld [vmem:[%s6261_s9 + $0x60] sm:$0xff]  }
  0xbf   : > { %5776 = vmatprep.mubr.msk.bf16.mxu1 %vm675_vm3, %v6058_v57  ;;  %v5200_v18 = vcombine.low %v9029_v16, %v9028_v26  ;;  %v9030_v59 = vsel %vm6305_vm4, %v7175_v53, %v7177_v13  ;;  %v9031_v6 = vsel %vm6305_vm4, %v7173_v25, %v7106_v60  ;;  %v2415_v57 = vor.u32 %v2414_v29, %v2411_v15  ;;  %v5226_v13 = vld [vmem:[%s6261_s9 + $0x24] sm:$0xe]  ;;  %v5229_v26 = vld [vmem:[%s6261_s9 + $0x48] sm:$0xe] }
  0xc0   : > { %v5201_v17 = vcombine.low %v9031_v6, %v9030_v59  ;;  %v2424_v11 = vrot.slane %v2422_v56, 4  ;;  %v2428_v58 = vshll.u32 %v7275_v45, 16  ;;  %v9032_v36 = vsel %vm6305_vm4, %v7179_v10, %v7129_v63  ;;  %v6060_v63 = vld [vmem:[%s6261_s9 + $0x6c] sm:$0xff]   ;;  %v5230_v6 = vld [vmem:[%s6261_s9 + $0x54] sm:$0xe] }
  0xc1   : > { %v5202_v51 = vcombine.low %v9032_v36, %v2311_v20  ;;  %v2325_v53 = vsel %vm6305_vm4, %v7251_v12, %v7193_v3  ;;  %v2335_v60 = vsel %vm6305_vm4, %v2330_v43, %v7238_v48  ;;  %v2349_v25 = vsel %vm6305_vm4, %v2344_v46, %v7228_v9  ;;  %v7331_v12 = vld [vmem:[%s6261_s9 + $0xc] sm:$0xe] }
  0xc2   : > { %v2359_v10 = vsel %vm6305_vm4, %v2354_v38, %v2358_v32  ;;  %v2373_v3 = vsel %vm6305_vm4, %v2368_v24, %v7248_v55  ;;  %v2383_v20 = vsel %vm6305_vm4, %v2378_v34, %v2382_v14  ;;  %v2425_v48 = vor.u32 %v2424_v11, %v7278_v39  ;;  %v5227_v55 = vld [vmem:[%s6261_s9 + $0x30] sm:$0xe]  ;;  %v5228_v14 = vld [vmem:[%s6261_s9 + $0x3c] sm:$0xe] }
  0xc3   : > { %5811 = vmatmul.mubr.msk.bf16.gmra.mxu0 %vm675_vm3, %v7162_v62  ;;  %v2397_v62 = vsel %vm6305_vm4, %v2392_v19, %v2396_v42  ;;  %v2407_v38 = vsel %vm6305_vm4, %v2402_v33, %v2406_v2  ;;  %v7338_v9 = vrot.slane %v2415_v57, 4  ;;  %v2792_v46 = vrot.slane %v6822_v49, 5  ;;  %v6061_v57 = vld [vmem:[%s6261_s9 + $0x78] sm:$0xff]  }
  0xc4   : > { %5814 = vmatprep.mubr.msk.bf16.mxu0 %vm675_vm3, %v5200_v18  ;;  %v7342_v43 = vcombine.low %v2325_v53, %v2335_v60  ;;  %v7344_v32 = vrot.slane %v2425_v48, 4  ;;  %v7346_v52 = vrot.slane %v2428_v58, 5  ;;  %v5242_v7 = vrot.slane %v5226_v13, 9  ;;  %v6062_v53 = vld [vmem:[%s6261_s9 + $0x84] sm:$0xff]   ;;  %v5231_v13 = vld [vmem:[%s6261_s9 + $0x60] sm:$0xe] }
  0xc5   : > { %v7349_v54 = vcombine.low %v2349_v25, %v2359_v10  ;;  %v7351_v42 = vcombine.low %v2373_v3, %v2383_v20  ;;  %v5240_v37 = vrot.slane %v7331_v12, 9  ;;  %v2806_v24 = vrot.slane %v6871_v44, 5  ;;  %v6068_v49 = vld [vmem:[%s6261_s9 + $0x18] sm:$0xff]  }
  0xc6   : > { %5777 = vmatmul.mubr.msk.bf16.gmra.mxu1 %vm675_vm3, %v6059_v23  ;;  %v7357_v15 = vcombine.low %v2397_v62, %v2407_v38  ;;  %v2795_v34 = vrot.slane %v6858_v47, 5  ;;  %v2809_v29 = vrot.slane %v6886_v21, 5  ;;  %v5243_v56 = vrot.slane %v5227_v55, 9  ;;  %v5233_v55 = vld [vmem:[%s6261_s9 + $0x78] sm:$0xe] }
  0xc7   : > { %5780 = vmatprep.mubr.msk.bf16.mxu1 %vm675_vm3, %v6060_v63  ;;  %v2421_v16 = vsel %vm6305_vm4, %v7338_v9, %v7278_v39  ;;  %v7368_v44 = vrot.slane %v2792_v46, 4  ;;  %v7372_v18 = vsel %vm6591_vm7, %v5242_v7, %v2806_v24  ;;  %v2808_v19 = vrot.slane %v2806_v24, 4 }
  0xc8   : > { %v2431_v21 = vsel %vm6305_vm4, %v7344_v32, %v7346_v52  ;;  %v2813_v33 = vrot.slane %v6909_v5, 5  ;;  %v2816_v2 = vrot.slane %v6917_v41, 5  ;;  %v5244_v59 = vrot.slane %v5228_v14, 9  ;;  %v6067_v52 = vld [vmem:[%s6261_s9 + $0xc0] sm:$0xff]  }
  0xc9   : > { %v7384_v11 = vsel %vm6591_vm7, %v2808_v19, %v2809_v29  ;;  %v2820_v58 = vrot.slane %v6926_v61, 5  ;;  %v2823_v23 = vrot.slane %v6978_v50, 5  ;;  %v5245_v36 = vrot.slane %v5229_v26, 9  ;;  %v5234_v19 = vld [vmem:[%s6261_s9 + $0x84] sm:$0xe] }
  0xca   : > { %v5259_v5 = vcombine.low %v7372_v18, %v7384_v11  ;;  %v7394_v41 = vsel %vm6591_vm7, %v5243_v56, %v2813_v33  ;;  %v2815_v60 = vrot.slane %v2813_v33, 4  ;;  %v2827_v25 = vrot.slane %v6944_v1, 5 }
  0xcb   : > { %5815 = vmatmul.mubr.msk.bf16.gmra.mxu0 %vm675_vm3, %v5201_v17  ;;  %v7401_v61 = vsel %vm6591_vm7, %v5244_v59, %v2820_v58  ;;  %v2822_v50 = vrot.slane %v2820_v58, 4  ;;  %v2830_v17 = vrot.slane %v6992_v8, 5  ;;  %v5246_v63 = vrot.slane %v5230_v6, 9  ;;  %v9033_v59 = vld [vmem:[#allocation7_spill] sm:$0xff] }
  0xcc   : > { %5818 = vmatprep.mubr.msk.bf16.mxu0 %vm675_vm3, %v5202_v51  ;;  %v7406_v10 = vsel %vm6591_vm7, %v2815_v60, %v2816_v2  ;;  %v7410_v3 = vsel %vm6591_vm7, %v5245_v36, %v2827_v25  ;;  %v2829_v1 = vrot.slane %v2827_v25, 4  ;;  %v2834_v20 = vrot.slane %v6987_v40, 5  ;;  %v5232_v51 = vld [vmem:[%s6261_s9 + $0x6c] sm:$0xe]  ;;  %v6063_v58 = vld [vmem:[%s6261_s9 + $0x90] sm:$0xff]  }
  0xcd   : > { %v5260_v48 = vcombine.low %v7394_v41, %v7406_v10  ;;  %v7419_v8 = vsel %vm6591_vm7, %v2822_v50, %v2823_v23  ;;  %v2837_v62 = vrot.slane %v7009_v35, 5  ;;  %v5247_v38 = vrot.slane %v5231_v13, 9  ;;  %v9034_v36 = vld [vmem:[#allocation6_spill] sm:$0xff]  ;;  %v5235_v60 = vld [vmem:[%s6261_s9 + $0x90] sm:$0xe]  ;;  %v9035_v50 = vld [vmem:[#allocation9_spill] sm:$0xff] }
  0xce   : > { %5781 = vmatmul.mubr.msk.bf16.gmra.mxu1 %vm675_vm3, %v6061_v57  ;;  %v5261_v40 = vcombine.low %v7401_v61, %v7419_v8  ;;  %v7428_v7 = vsel %vm6591_vm7, %v2829_v1, %v2830_v17  ;;  %v7432_v24 = vsel %vm6591_vm7, %v5246_v63, %v2834_v20  ;;  %v2836_v14 = vrot.slane %v2834_v20, 4 }
  0xcf   : > { %5784 = vmatprep.mubr.msk.bf16.mxu1 %vm675_vm3, %v6062_v53  ;;  %v5262_v35 = vcombine.low %v7410_v3, %v7428_v7  ;;  %v2841_v29 = vrot.slane %v7022_v28, 5  ;;  %v2844_v56 = vrot.slane %v7044_v30, 5  ;;  %v5248_v26 = vrot.slane %v5232_v51, 9  ;;  %v9036_v51 = vld [vmem:[#allocation8_spill] sm:$0xff]  ;;  %v5366_v3 = vld [vmem:[%s6261_s9 + $0x48] sm:$0xf] }
  0xd0   : > { %v7441_v33 = vsel %vm6591_vm7, %v2836_v14, %v2837_v62  ;;  %v2848_v2 = vrot.slane %v7041_v27, 5  ;;  %v2851_v6 = vrot.slane %v9033_v59, 5  ;;  %v5249_v57 = vrot.slane %v5233_v55, 9  ;;  %v6064_v27 = vld [vmem:[%s6261_s9 + $0x9c] sm:$0xff]   ;;  %v9044_v55 = vld [vmem:[#allocation18_spill] sm:$0xff] }
  0xd1   : > { %v5263_v23 = vcombine.low %v7432_v24, %v7441_v33  ;;  %v7450_v28 = vsel %vm6591_vm7, %v5247_v38, %v2841_v29  ;;  %v2843_v30 = vrot.slane %v2841_v29, 4  ;;  %v2855_v53 = vrot.slane %v9034_v36, 5  ;;  %v5236_v38 = vld [vmem:[%s6261_s9 + $0x9c] sm:$0xe]  ;;  %v9039_v36 = vld [vmem:[#allocation15_spill] sm:$0xff] }
  0xd2   : > { %v7459_v25 = vsel %vm6591_vm7, %v5248_v26, %v2848_v2  ;;  %v2850_v13 = vrot.slane %v2848_v2, 4  ;;  %v2858_v17 = vrot.slane %v9035_v50, 5  ;;  %v5250_v63 = vrot.slane %v5234_v19, 9  ;;  %v5237_v26 = vld [vmem:[%s6261_s9 + $0xa8] sm:$0xe] }
  0xd3   : > { %5819 = vmatmul.mubr.msk.bf16.gmra.mxu0 %vm675_vm3, %v7342_v43  ;;  %v7466_v1 = vsel %vm6591_vm7, %v2843_v30, %v2844_v56  ;;  %v7470_v43 = vsel %vm6591_vm7, %v5249_v57, %v2855_v53  ;;  %v2857_v20 = vrot.slane %v2855_v53, 4  ;;  %v2862_v62 = vrot.slane %v9036_v51, 5  ;;  %v5239_v57 = vld [vmem:[%s6261_s9 + $0xc0] sm:$0xe]  ;;  %v6065_v19 = vld [vmem:[%s6261_s9 + $0xa8] sm:$0xff]  }
  0xd4   : > { %5822 = vmatprep.mubr.msk.bf16.mxu0 %vm675_vm3, %v7349_v54  ;;  %v7478_v14 = vsel %vm6591_vm7, %v2850_v13, %v2851_v6  ;;  %v9037_v54 = vld [vmem:[#allocation11_spill] sm:$0xff]  ;;  %v5251_v56 = vrot.slane %v5235_v60, 9  ;;  %v2872_v53 = vrot.slane %v9039_v36, 5  ;;  %v5252_v60 = vrot.slane %v5236_v38, 9  ;;  %v9042_v38 = vld [vmem:[#allocation16_spill] sm:$0xff] }
  0xd5   : > { %v2865_v29 = vrot.slane %v9037_v54, 5  ;;  %v7487_v2 = vsel %vm6591_vm7, %v2857_v20, %v2858_v17  ;;  %v7491_v59 = vsel %vm6591_vm7, %v5250_v63, %v2862_v62  ;;  %v2864_v6 = vrot.slane %v2862_v62, 4  ;;  %v5238_v13 = vld [vmem:[%s6261_s9 + $0xb4] sm:$0xe]  ;;  %v9040_v17 = vld [vmem:[#allocation13_spill] sm:$0xff] }
  0xd6   : > { %5785 = vmatmul.mubr.msk.bf16.gmra.mxu1 %vm675_vm3, %v6063_v58  ;;  %v9038_v58 = vld [vmem:[#allocation10_spill] sm:$0xff]  ;;  %v2876_v63 = vrot.slane %v9040_v17, 5  ;;  %v9041_v20 = vld [vmem:[#allocation5_spill] sm:$0xff]  ;;  %v5253_v62 = vrot.slane %v5237_v26, 9  ;;  %v2883_v36 = vrot.slane %v9042_v38, 5  ;;  %v5254_v26 = vrot.slane %v5238_v13, 9 }
  0xd7   : > { %5788 = vmatprep.mubr.msk.bf16.mxu1 %vm675_vm3, %v6064_v27  ;;  %v2869_v30 = vrot.slane %v9038_v58, 5  ;;  %v7501_v50 = vsel %vm6591_vm7, %v2864_v6, %v2865_v29  ;;  %v2879_v51 = vrot.slane %v9041_v20, 5  ;;  %v9043_v17 = vld [vmem:[#allocation17_spill] sm:$0xff]  ;;  %v6066_v27 = vld [vmem:[%s6261_s9 + $0xb4] sm:$0xff]   ;;  %v2796_v39 = vsel %vm6591_vm7, %v7368_v44, %v2795_v34  ;;  %v7718_v7 = vld [vmem:[%s6261_s9 + $0x4c] sm:$0xf] }
  0xd8   : > { %v7516_v29 = vsel %vm6591_vm7, %v5252_v60, %v2876_v63  ;;  %v2878_v6 = vrot.slane %v2876_v63, 4  ;;  %v2886_v20 = vrot.slane %v9043_v17, 5  ;;  %v2885_v38 = vrot.slane %v2883_v36, 4  ;;  %v6085_v44 = vld [vmem:[%s6261_s9 + $0x20] sm:$0x1] }
  0xd9   : > { %v7509_v54 = vsel %vm6591_vm7, %v5251_v56, %v2869_v30  ;;  %v2871_v58 = vrot.slane %v2869_v30, 4  ;;  %v7528_v30 = vsel %vm6591_vm7, %v5253_v62, %v2883_v36  ;;  %v2890_v60 = vrot.slane %v9044_v55, 5 }
  0xda   : > { %v5255_v63 = vrot.slane %v5239_v57, 9  ;;  %v7544_v55 = vsel %vm6591_vm7, %v2885_v38, %v2886_v20  ;;  %v2897_v57 = vrot.slane %v7263_v22, 5  ;;  %v2793_v22 = vsel %vm6591_vm7, %v5240_v37, %v2792_v46  ;;  %v6070_v38 = vld [vmem:[%s6261_s9 + $0x30] sm:$0xff]  }
  0xdb   : > { %5823 = vmatmul.mubr.msk.bf16.gmra.mxu0 %vm675_vm3, %v7351_v42  ;;  %v7524_v56 = vsel %vm6591_vm7, %v2871_v58, %v2872_v53  ;;  %v7537_v42 = vsel %vm6591_vm7, %v2878_v6, %v2879_v51  ;;  %v2893_v53 = vrot.slane %v7254_v4, 5  ;;  %v2892_v58 = vrot.slane %v2890_v60, 4 }
  0xdc   : > { %5826 = vmatprep.mubr.msk.bf16.mxu0 %vm675_vm3, %v7357_v15  ;;  %v7548_v15 = vsel %vm6591_vm7, %v5254_v26, %v2890_v60  ;;  %v2900_v51 = vrot.slane %v7275_v45, 5  ;;  %v5225_v45 = vld [vmem:[%s6261_s9 + $0x18] sm:$0xe]  ;;  %v7588_v9 = vsel %vm6591_vm7, %v5255_v63, %v2897_v57  ;;  %v2899_v46 = vrot.slane %v2897_v57, 4  ;;  %v6069_v26 = vld [vmem:[%s6261_s9 + $0x24] sm:$0xff]  }
  0xdd   : > { %v7576_v32 = vsel %vm6591_vm7, %v2892_v58, %v2893_v53  ;;  %v5241_v37 = vrot.slane %v5225_v45, 9  ;;  %v5257_v34 = vcombine.low %v2793_v22, %v2796_v39  ;;  %v9045_v60 = vld [vmem:[#allocation12_spill] sm:$0xff] }
  0xde   : > { %5789 = vmatmul.mubr.msk.bf16.gmra.mxu1 %vm675_vm3, %v6065_v19  ;;  %v5207_v19 = vcombine.low %v2421_v16, %v2431_v21  ;;  %v7593_v47 = vsel %vm6591_vm7, %v2899_v46, %v2900_v51  ;;  %v2802_v21 = vrot.slane %v6085_v44, 5  ;;  %v4559_v53 = vsel %vm724_vm0, %v9045_v60, 0  ;;  %v5354_v63 = vld [vmem:[%s6261_s9 + $0x18] sm:$0xf]  ;;  %v5355_v57 = vld [vmem:[%s6261_s9 + $0x1c] sm:$0xf] }
  0xdf   : > { %5792 = vmatprep.mubr.msk.bf16.mxu1 %vm675_vm3, %v6066_v27  ;;  %v6084_v27 = vld [vmem:[%s6261_s9 + $0x1c] sm:$0xf]  ;;  %v5357_v51 = vld [vmem:[%s6261_s9 + $0x24] sm:$0xf]  ;;  %v3607_v45 = vshrl.u32 %v5354_v63, 16  ;;  %v3616_v39 = vshll.u32 %v5355_v57, 16 }
  0xe0   : > { %v2799_v36 = vrot.slane %v6084_v27, 5  ;;  %v3610_v27 = vshll.u32 %v5354_v63, 16  ;;  %v3631_v46 = vshrl.u32 %v5357_v51, 16  ;;  %v6072_v44 = vld [vmem:[%s6261_s9 + $0x48] sm:$0xff]   ;;  %v5435_v60 = vld [vmem:[%s6261_s9 + $0x18] sm:$0xe] }
  0xe1   : > { %v7634_v63 = vld [vmem:[%s6261_s9 + $0x2c] sm:$0x1] }
  0xe2   : > { %v2801_v16 = vrot.slane %v2799_v36, 4  ;;  %v2800_v17 = vsel %vm6591_vm7, %v5241_v37, %v2799_v36  ;;  %v7618_v36 = vld [vmem:[%s6261_s9 + $0x28] sm:$0xf]  ;;  %v6071_v37 = vld [vmem:[%s6261_s9 + $0x3c] sm:$0xff]   ;;  %v3633_v18 = vrot.slane %v3631_v46, 4 }
  0xe3   : > { %5827 = vmatmul.mubr.msk.bf16.gmra.mxu0 %vm675_vm3, %v5207_v19  ;;  %v9046_v19 = vld [vmem:[#allocation14_spill] sm:$0xff] }
  0xe4   : > { %5866 = vmatprep.mubr.msk.bf16.mxu0 %vm675_vm3, %v6068_v49  ;;  %v2803_v20 = vsel %vm6591_vm7, %v2801_v16, %v2802_v21  ;;  %v4089_v22 = vsel %vm724_vm0, %v9046_v19, 0  ;;  %v3620_v49 = vshrl.u32 %v5355_v57, 16  ;;  %v3644_v16 = vshrl.u32 %v7618_v36, 16  ;;  %v5356_v21 = vld [vmem:[%s6261_s9 + $0x20] sm:$0x1] }
  0xe5   : > { %v5258_v58 = vcombine.low %v2800_v17, %v2803_v20  ;;  %v3609_v17 = vrot.slane %v3607_v45, 4  ;;  %v3612_v20 = vrot.slane %v3610_v27, 5  ;;  %v5360_v19 = vld [vmem:[%s6261_s9 + $0x30] sm:$0xf]  ;;  %v3626_v45 = vshll.u32 %v5356_v21, 16 }
  0xe6   : > { %5793 = vmatmul.mubr.msk.bf16.gmra.mxu1 %vm675_vm3, %v6067_v52  ;;  %v3634_v52 = vshll.u32 %v5357_v51, 16  ;;  %v3646_v51 = vrot.slane %v3644_v16, 4  ;;  %v5451_v27 = vrot.slane %v5435_v60, 9  ;;  %v4353_v46 = vrot.slane %v5356_v21, 5  ;;  %v5436_v16 = vld [vmem:[%s6261_s9 + $0x24] sm:$0xe] }
  0xe7   : > { %5832 = vmatprep.mubr.msk.bf16.mxu1 %vm675_vm3, %v5257_v34  ;;  %v3640_v34 = vshll.u32 %v7618_v36, 16  ;;  %v6073_v21 = vld [vmem:[%s6261_s9 + $0x54] sm:$0xff]   ;;  %v3658_v10 = vshll.u32 %v5360_v19, 16  ;;  %v6074_v60 = vld [vmem:[%s6261_s9 + $0x60] sm:$0xff]  }
  0xe8   : > { %v3636_v11 = vrot.slane %v3634_v52, 5  ;;  %v3650_v52 = vshll.u32 %v7634_v63, 16 }
  0xeb   : > { %5867 = vmatmul.mubr.msk.bf16.vlgmr.msra.gmra.mxu0 %vm675_vm3, %v6069_v26  ;;  %v7630_v26 = vrot.slane %v3616_v39, 5 }
  0xec   : > { %5933 = vmatpush3.bf16.msra.mxu0 %v4559_v53  ;;  %5870 = vmatprep.mubr.msk.bf16.mxu0 %vm675_vm3, %v6070_v38  ;;  %v3622_v38 = vrot.slane %v3620_v49, 4  ;;  %v4350_v53 = vrot.slane %v5355_v57, 5  ;;  %v7644_v57 = vld [vmem:[%s6261_s9 + $0x34] sm:$0xf] }
  0xee   : > { %5833 = vmatmul.mubr.msk.bf16.vlgmr.msra.gmra.mxu1 %vm675_vm3, %v5258_v58  ;;  %v7639_v58 = vrot.slane %v3640_v34, 5  ;;  %v3623_v39 = vor.u32 %v3622_v38, %v7630_v26  ;;  %v4352_v49 = vrot.slane %v4350_v53, 4  ;;  %v3637_v34 = vor.u32 %v3636_v11, %v3633_v18 }
  0xef   : > { %5899 = vmatpush3.bf16.msra.mxu1 %v4089_v22  ;;  %5836 = vmatprep.mubr.msk.bf16.mxu1 %vm675_vm3, %v5259_v5  ;;  %v7637_v5 = vpop.f32.mrf.mxu0  ;;  %v3613_v22 = vor.u32 %v3612_v20, %v3609_v17  ;;  %v3655_v17 = vshrl.u32 %v5360_v19, 16  ;;  %v3668_v38 = vshrl.u32 %v7644_v57, 16  ;;  %v7669_v61 = vsel %vm6591_vm7, %v5451_v27, %v4350_v53  ;;  %v5363_v19 = vld [vmem:[%s6261_s9 + $0x3c] sm:$0xf] }
  0xf0   : > { %v3647_v41 = vor.u32 %v3646_v51, %v7639_v58  ;;  %v3624_v8 = vrot.slane %v3623_v39, 4  ;;  %v3652_v11 = vrot.slane %v3650_v52, 5  ;;  %v5452_v51 = vrot.slane %v5436_v16, 9  ;;  %v7683_v39 = vld [vmem:[%s6261_s9 + $0x38] sm:$0x1] }
  0xf1   : > { %v7661_v20 = vpop.f32.mrf.mxu0  ;;  %v3614_v18 = vrot.slane %v3613_v22, 4  ;;  %v3638_v12 = vrot.slane %v3637_v34, 4  ;;  %v4360_v22 = vrot.slane %v7634_v63, 5  ;;  %v3670_v52 = vrot.slane %v3668_v38, 4 }
  0xf2   : > { %v3648_v27 = vrot.slane %v3647_v41, 4  ;;  %v3679_v34 = vshrl.u32 %v5363_v19, 16  ;;  %v3682_v16 = vshll.u32 %v5363_v19, 16  ;;  %v7696_v41 = vld [vmem:[%s6261_s9 + $0x40] sm:$0xf] }
  0xf3   : > { %5871 = vmatmul.mubr.msk.bf16.gmra.mxu0 %vm675_vm3, %v6071_v37  ;;  %v7680_v53 = vpop.f32.mrf.mxu0  ;;  %v3619_v63 = vsel %vm6305_vm4, %v3614_v18, %v7630_v26  ;;  %v3643_v26 = vsel %vm6305_vm4, %v3638_v12, %v7639_v58  ;;  %v5437_v18 = vld [vmem:[%s6261_s9 + $0x30] sm:$0xe]  ;;  %v3688_v24 = vshll.u32 %v7696_v41, 16  ;;  %v3692_v33 = vshrl.u32 %v7696_v41, 16 }
  0xf4   : > { %5874 = vmatprep.mubr.msk.bf16.mxu0 %vm675_vm3, %v6072_v44  ;;  %v7652_v37 = vpop.f32.mrf.mxu1  ;;  %v4357_v44 = vrot.slane %v7618_v36, 5  ;;  %v3628_v36 = vrot.slane %v3626_v45, 5  ;;  %v3657_v45 = vrot.slane %v3655_v17, 4  ;;  %v3653_v58 = vsel %vm6305_vm4, %v3648_v27, %v3652_v11 }
  0xf5   : > { %9047 = vst [vmem:[#allocation7_spill] sm:$0xff] %v7652_v37  ;;  %v7725_v12 = vpop.f32.mrf.mxu0  ;;  %v3684_v19 = vrot.slane %v3682_v16, 5  ;;  %v3716_v11 = vshrl.u32 %v7718_v7, 16 }
  0xf6   : > { %5837 = vmatmul.mubr.msk.bf16.gmra.mxu1 %vm675_vm3, %v5260_v48  ;;  %v3664_v48 = vshll.u32 %v7644_v57, 16  ;;  %v7676_v6 = vpop.f32.mrf.mxu1  ;;  %v4359_v4 = vrot.slane %v4357_v44, 4  ;;  %v3629_v17 = vsel %vm6305_vm4, %v3624_v8, %v3628_v36  ;;  %v4364_v36 = vrot.slane %v7644_v57, 5  ;;  %v6076_v8 = vld [vmem:[%s6261_s9 + $0x78] sm:$0xff]  }
  0xf7   : > { %5840 = vmatprep.mubr.msk.bf16.mxu1 %vm675_vm3, %v5261_v40  ;;  %v7673_v40 = vsel %vm6591_vm7, %v4352_v49, %v4353_v46  ;;  %9048 = vst [vmem:[#allocation6_spill] sm:$0xff] %v7676_v6  ;;  %v3660_v49 = vrot.slane %v3658_v10, 5  ;;  %v7739_v27 = vcombine.low %v3619_v63, %v3629_v17  ;;  %v7741_v57 = vcombine.low %v3643_v26, %v3653_v58  ;;  %v7755_v17 = vld [vmem:[%s6261_s9 + $0x58] sm:$0xf]  ;;  %v7761_v58 = vld [vmem:[%s6261_s9 + $0x44] sm:$0x1] }
  0xf8   : > { %v7685_v46 = vrot.slane %v3664_v48, 5  ;;  %v7702_v10 = vpop.f32.mrf.mxu1  ;;  %v7709_v48 = vsel %vm6591_vm7, %v5452_v51, %v4357_v44  ;;  %v7713_v38 = vsel %vm6591_vm7, %v4359_v4, %v4360_v22  ;;  %v3681_v51 = vrot.slane %v3679_v34, 4  ;;  %v5369_v34 = vld [vmem:[%s6261_s9 + $0x54] sm:$0xf] }
  0xf9   : > { %9049 = vst [vmem:[#allocation9_spill] sm:$0xff] %v7702_v10  ;;  %v3661_v44 = vor.u32 %v3660_v49, %v3657_v45  ;;  %v3706_v22 = vshll.u32 %v5366_v3, 16  ;;  %v4366_v13 = vrot.slane %v4364_v36, 4  ;;  %v4367_v63 = vrot.slane %v7683_v39, 5  ;;  %v5438_v49 = vld [vmem:[%s6261_s9 + $0x3c] sm:$0xe] }
  0xfa   : > { %v3671_v4 = vor.u32 %v3670_v52, %v7685_v46  ;;  %v7737_v45 = vpop.f32.mrf.mxu1  ;;  %v5453_v52 = vrot.slane %v5437_v18, 9  ;;  %v3685_v18 = vor.u32 %v3684_v19, %v3681_v51  ;;  %v9052_v6 = vcombine.low %v7450_v28, %v7466_v1 }
  0xfb   : > { %5875 = vmatmul.mubr.msk.bf16.gmra.mxu0 %vm675_vm3, %v6073_v21  ;;  %v3712_v21 = vshll.u32 %v7718_v7, 16  ;;  %9050 = vst [vmem:[#allocation8_spill] sm:$0xff] %v7737_v45  ;;  %v3708_v45 = vrot.slane %v3706_v22, 5  ;;  %v3727_v51 = vshrl.u32 %v5369_v34, 16  ;;  %v3730_v19 = vshll.u32 %v5369_v34, 16 }
  0xfc   : > { %5878 = vmatprep.mubr.msk.bf16.mxu0 %vm675_vm3, %v6074_v60  ;;  %v3674_v60 = vshll.u32 %v7683_v39, 16  ;;  %v7758_v26 = vrot.slane %v3671_v4, 4  ;;  %v3718_v39 = vrot.slane %v3716_v11, 4  ;;  %v7796_v22 = vsel %vm6591_vm7, %v4366_v13, %v4367_v63 }
  0xfd   : > { %v7766_v10 = vrot.slane %v3712_v21, 5  ;;  %v9054_v21 = vcombine.low %v7459_v25, %v7478_v14  ;;  %v4371_v25 = vrot.slane %v7696_v41, 5  ;;  %v6078_v14 = vld [vmem:[%s6261_s9 + $0x90] sm:$0xff]   ;;  %v5454_v1 = vrot.slane %v5438_v49, 9  ;;  %v5372_v41 = vld [vmem:[%s6261_s9 + $0x60] sm:$0xf] }
  0xfe   : > { %5841 = vmatmul.mubr.msk.bf16.gmra.mxu1 %vm675_vm3, %v5262_v35  ;;  %v6075_v35 = vld [vmem:[%s6261_s9 + $0x6c] sm:$0xff]   ;;  %v7751_v62 = vrot.slane %v3674_v60, 5  ;;  %v3729_v37 = vrot.slane %v3727_v51, 4 }
  0xff   : > { %5844 = vmatprep.mubr.msk.bf16.mxu1 %vm675_vm3, %v5263_v23  ;;  %v3703_v23 = vshrl.u32 %v5366_v3, 16  ;;  %v7749_v3 = vrot.slane %v3661_v44, 4  ;;  %v3694_v44 = vrot.slane %v3692_v33, 4  ;;  %v3740_v33 = vshrl.u32 %v7755_v17, 16 }
 0x100   : > { %v7747_v16 = vpop.f32.mrf.mxu0  ;;  %v3719_v13 = vor.u32 %v3718_v39, %v7766_v10  ;;  %v4378_v39 = vrot.slane %v7718_v7, 5  ;;  %v9058_v7 = vcombine.low %v7470_v43, %v7487_v2  ;;  %v9060_v43 = vcombine.low %v7491_v59, %v7501_v50  ;;  %v6079_v2 = vld [vmem:[%s6261_s9 + $0x9c] sm:$0xff]  }
 0x101   : > { %9051 = vst [vmem:[#allocation11_spill] sm:$0xff] %v7747_v16  ;;  %v3705_v60 = vrot.slane %v3703_v23, 4  ;;  %v6077_v23 = vld [vmem:[%s6261_s9 + $0x84] sm:$0xff]   ;;  %v7823_v16 = vld [vmem:[%s6261_s9 + $0x5c] sm:$0x1]  ;;  %v4385_v59 = vrot.slane %v7755_v17, 5 }
 0x102   : > { %v7784_v28 = vpop.f32.mrf.mxu0 }
 0x103   : > { %5879 = vmatmul.mubr.msk.bf16.gmra.mxu0 %vm675_vm3, %v6075_v35  ;;  %v7763_v35 = vrot.slane %v3688_v24, 5  ;;  %v3736_v24 = vshll.u32 %v7755_v17, 16  ;;  %9055 = vst [vmem:[#allocation15_spill] sm:$0xff] %v7784_v28  ;;  %v3732_v28 = vrot.slane %v3730_v19, 5 }
 0x104   : > { %5882 = vmatprep.mubr.msk.bf16.mxu0 %vm675_vm3, %v6076_v8  ;;  %v7772_v4 = vpop.f32.mrf.mxu1  ;;  %v7775_v8 = vld [vmem:[%s6261_s9 + $0x50] sm:$0x1]  ;;  %v7816_v49 = vpop.f32.mrf.mxu0 }
 0x105   : > { %9053 = vst [vmem:[#allocation10_spill] sm:$0xff] %v7772_v4  ;;  %v3695_v34 = vor.u32 %v3694_v44, %v7763_v35  ;;  %v7806_v4 = vrot.slane %v3685_v18, 4  ;;  %v7813_v11 = vrot.slane %v3736_v24, 5  ;;  %v3742_v44 = vrot.slane %v3740_v33, 4  ;;  %9057 = vst [vmem:[#allocation5_spill] sm:$0xff] %v7816_v49 }
 0x106   : > { %5845 = vmatmul.mubr.msk.bf16.gmra.mxu1 %vm675_vm3, %v9052_v6  ;;  %v7792_v6 = vsel %vm6591_vm7, %v5453_v52, %v4364_v36  ;;  %v3709_v36 = vor.u32 %v3708_v45, %v3705_v60  ;;  %v3722_v52 = vshll.u32 %v7775_v8, 16  ;;  %v7811_v63 = vpop.f32.mrf.mxu1  ;;  %v4373_v18 = vrot.slane %v4371_v25, 4  ;;  %v5439_v24 = vld [vmem:[%s6261_s9 + $0x48] sm:$0xe] }
 0x107   : > { %5848 = vmatprep.mubr.msk.bf16.mxu1 %vm675_vm3, %v9054_v21  ;;  %v3698_v21 = vshll.u32 %v7761_v58, 16  ;;  %9056 = vst [vmem:[#allocation13_spill] sm:$0xff] %v7811_v63  ;;  %v4374_v60 = vrot.slane %v7761_v58, 5  ;;  %v3696_v51 = vrot.slane %v3695_v34, 4  ;;  %v3751_v33 = vshrl.u32 %v5372_v41, 16 }
 0x108   : > { %v7829_v63 = vsel %vm6591_vm7, %v5454_v1, %v4371_v25  ;;  %v3710_v45 = vrot.slane %v3709_v36, 4  ;;  %v3720_v49 = vrot.slane %v3719_v13, 4  ;;  %v3724_v58 = vrot.slane %v3722_v52, 5  ;;  %v7844_v36 = vld [vmem:[%s6261_s9 + $0x64] sm:$0xf]  ;;  %v7851_v13 = vpop.f32.mrf.mxu0 }
 0x109   : > { %v3700_v19 = vrot.slane %v3698_v21, 5  ;;  %v3691_v34 = vsel %vm6305_vm4, %v7806_v4, %v7763_v35  ;;  %v3733_v21 = vor.u32 %v3732_v28, %v3729_v37  ;;  %v3743_v1 = vor.u32 %v3742_v44, %v7813_v11  ;;  %9061 = vst [vmem:[#allocation17_spill] sm:$0xff] %v7851_v13  ;;  %v5440_v28 = vld [vmem:[%s6261_s9 + $0x54] sm:$0xe]  ;;  %v6083_v13 = vld [vmem:[%s6261_s9 + $0xcc] sm:$0xff]  }
 0x10a   : > { %v3746_v25 = vshll.u32 %v7823_v16, 16  ;;  %v7855_v52 = vsel %vm6591_vm7, %v4373_v18, %v4374_v60  ;;  %v5455_v35 = vrot.slane %v5439_v24, 9  ;;  %v4380_v37 = vrot.slane %v4378_v39, 4 }
 0x10b   : > { %5883 = vmatmul.mubr.msk.bf16.gmra.mxu0 %vm675_vm3, %v6077_v23  ;;  %v3754_v23 = vshll.u32 %v5372_v41, 16  ;;  %v4381_v4 = vrot.slane %v7775_v8, 5  ;;  %v6080_v41 = vld [vmem:[%s6261_s9 + $0xa8] sm:$0xff]   ;;  %v3701_v44 = vsel %vm6305_vm4, %v3696_v51, %v3700_v19  ;;  %v3753_v50 = vrot.slane %v3751_v33, 4 }
 0x10c   : > { %5886 = vmatprep.mubr.msk.bf16.mxu0 %vm675_vm3, %v6078_v14  ;;  %v7835_v14 = vpop.f32.mrf.mxu1  ;;  %v3725_v18 = vsel %vm6305_vm4, %v3720_v49, %v3724_v58  ;;  %v3760_v60 = vshll.u32 %v7844_v36, 16  ;;  %v3764_v8 = vshrl.u32 %v7844_v36, 16  ;;  %v3744_v51 = vrot.slane %v3743_v1, 4  ;;  %v7873_v33 = vld [vmem:[%s6261_s9 + $0x68] sm:$0x1] }
 0x10d   : > { %9059 = vst [vmem:[#allocation16_spill] sm:$0xff] %v7835_v14  ;;  %v3734_v14 = vrot.slane %v3733_v21, 4  ;;  %v3748_v17 = vrot.slane %v3746_v25, 5  ;;  %v5456_v19 = vrot.slane %v5440_v28, 9  ;;  %v9064_v49 = vsel %vm6305_vm4, %v7758_v26, %v7751_v62  ;;  %v5375_v25 = vld [vmem:[%s6261_s9 + $0x6c] sm:$0xf] }
 0x10e   : > { %5849 = vmatmul.mubr.msk.bf16.gmra.mxu1 %vm675_vm3, %v9058_v7  ;;  %v3756_v7 = vrot.slane %v3754_v23, 5  ;;  %v7870_v24 = vpop.f32.mrf.mxu1  ;;  %v7894_v21 = vsel %vm6591_vm7, %v5455_v35, %v4378_v39  ;;  %v7898_v1 = vsel %vm6591_vm7, %v4380_v37, %v4381_v4  ;;  %v7901_v62 = vcombine.low %v3691_v34, %v3701_v44  ;;  %v5441_v4 = vld [vmem:[%s6261_s9 + $0x60] sm:$0xe]  ;;  %v5381_v44 = vld [vmem:[%s6261_s9 + $0x84] sm:$0xf] }
 0x10f   : > { %5852 = vmatprep.mubr.msk.bf16.mxu1 %vm675_vm3, %v9060_v43  ;;  %v3715_v43 = vsel %vm6305_vm4, %v3710_v45, %v7766_v10  ;;  %9062 = vst [vmem:[#allocation18_spill] sm:$0xff] %v7870_v24  ;;  %v9065_v45 = vsel %vm6305_vm4, %v7749_v3, %v7685_v46  ;;  %v4387_v46 = vrot.slane %v4385_v59, 4  ;;  %v4388_v3 = vrot.slane %v7823_v16, 5 }
 0x110   : > { %v7888_v23 = vcombine.low %v9065_v45, %v9064_v49  ;;  %9066 = vst [vmem:[#allocation14_spill] sm:$0xff] %v7901_v62  ;;  %v3757_v26 = vor.u32 %v3756_v7, %v3753_v50  ;;  %v7908_v28 = vcombine.low %v3715_v43, %v3725_v18  ;;  %v7910_v39 = vrot.slane %v3760_v60, 5 }
 0x111   : > { %v7876_v10 = vpop.f32.mrf.mxu0  ;;  %v7912_v35 = vrot.slane %v3764_v8, 4  ;;  %v3770_v37 = vshll.u32 %v7873_v33, 16  ;;  %v9068_v34 = vcombine.low %v7509_v54, %v7524_v56  ;;  %v3739_v50 = vsel %vm6305_vm4, %v3734_v14, %v7813_v11  ;;  %v5378_v54 = vld [vmem:[%s6261_s9 + $0x78] sm:$0xf] }
 0x112   : > { %9063 = vst [vmem:[#allocation12_spill] sm:$0xff] %v7876_v10  ;;  %9067 = vst [vmem:[#allocation19_spill] sm:$0xff] %v7908_v28  ;;  %v3749_v7 = vsel %vm6305_vm4, %v3744_v51, %v3748_v17  ;;  %v7932_v43 = vsel %vm6591_vm7, %v5456_v19, %v4385_v59  ;;  %v9070_v56 = vcombine.low %v7516_v29, %v7537_v42  ;;  %v3775_v60 = vshrl.u32 %v5375_v25, 16  ;;  %v7944_v51 = vld [vmem:[%s6261_s9 + $0x7c] sm:$0xf]  ;;  %v6082_v59 = vld [vmem:[%s6261_s9 + $0xc0] sm:$0xff]  }
 0x113   : > { %5887 = vmatmul.mubr.msk.bf16.gmra.mxu0 %vm675_vm3, %v6079_v2  ;;  %v7906_v2 = vld [vmem:[%s6261_s9 + $0x70] sm:$0xf]  ;;  %v7939_v18 = vpop.f32.mrf.mxu0  ;;  %v3778_v8 = vshll.u32 %v5375_v25, 16  ;;  %v7949_v17 = vsel %vm6591_vm7, %v4387_v46, %v4388_v3  ;;  %v7951_v29 = vrot.slane %v3757_v26, 4  ;;  %v5457_v42 = vrot.slane %v5441_v4, 9 }
 0x114   : > { %5890 = vmatprep.mubr.msk.bf16.mxu0 %vm675_vm3, %v6080_v41  ;;  %v6081_v41 = vld [vmem:[%s6261_s9 + $0xb4] sm:$0xff]   ;;  %9071 = vst [vmem:[#allocation21_spill] sm:$0xff] %v7939_v18  ;;  %v3784_v11 = vshll.u32 %v7906_v2, 16  ;;  %v3788_v14 = vshrl.u32 %v7906_v2, 16  ;;  %v4392_v19 = vrot.slane %v7844_v36, 5  ;;  %v7954_v49 = vcombine.low %v3739_v50, %v3749_v7 }
 0x115   : > { %v3767_v45 = vor.u32 %v7912_v35, %v7910_v39  ;;  %v7958_v25 = vrot.slane %v3770_v37, 5  ;;  %v3799_v46 = vshrl.u32 %v5378_v54, 16  ;;  %v3802_v3 = vshll.u32 %v5378_v54, 16  ;;  %v7970_v4 = vld [vmem:[%s6261_s9 + $0x88] sm:$0xf]  ;;  %v7973_v35 = vpop.f32.mrf.mxu0 }
 0x116   : > { %5853 = vmatmul.mubr.msk.bf16.gmra.mxu1 %vm675_vm3, %v9068_v34  ;;  %v7920_v16 = vpop.f32.mrf.mxu1  ;;  %9072 = vst [vmem:[#allocation22_spill] sm:$0xff] %v7954_v49  ;;  %v4395_v34 = vrot.slane %v7873_v33, 5  ;;  %v3808_v36 = vshll.u32 %v7944_v51, 16  ;;  %v3812_v26 = vshrl.u32 %v7944_v51, 16  ;;  %9074 = vst [vmem:[#allocation24_spill] sm:$0xff] %v7973_v35  ;;  %v3777_v33 = vrot.slane %v3775_v60, 4 }
 0x117   : > { %9069 = vst [vmem:[#allocation20_spill] sm:$0xff] %v7920_v16  ;;  %5856 = vmatprep.mubr.msk.bf16.mxu1 %vm675_vm3, %v9070_v56  ;;  %v7962_v56 = vld [vmem:[%s6261_s9 + $0x74] sm:$0x1]  ;;  %v3780_v37 = vrot.slane %v3778_v8, 5  ;;  %v7975_v50 = vrot.slane %v3784_v11, 5  ;;  %v3790_v7 = vrot.slane %v3788_v14, 4  ;;  %v9075_v54 = vcombine.low %v7528_v30, %v7544_v55  ;;  %v8003_v49 = vpop.f32.mrf.mxu0 }
 0x118   : > { %v7965_v58 = vpop.f32.mrf.mxu1  ;;  %v4394_v16 = vrot.slane %v4392_v19, 4  ;;  %v7988_v60 = vld [vmem:[%s6261_s9 + $0x80] sm:$0x1]  ;;  %v7991_v8 = vld [vmem:[%s6261_s9 + $0x6c] sm:$0xe]  ;;  %v3823_v11 = vshrl.u32 %v5381_v44, 16 }
 0x119   : > { %9073 = vst [vmem:[#allocation23_spill] sm:$0xff] %v7965_v58  ;;  %v7984_v58 = vsel %vm6591_vm7, %v5457_v42, %v4392_v19  ;;  %v3826_v14 = vshll.u32 %v5381_v44, 16  ;;  %v3836_v24 = vshrl.u32 %v7970_v4, 16  ;;  %v3801_v19 = vrot.slane %v3799_v46, 4  ;;  %9077 = vst [vmem:[#allocation26_spill] sm:$0xff] %v8003_v49 }
 0x11a   : > { %v7999_v42 = vpop.f32.mrf.mxu1  ;;  %v3804_v35 = vrot.slane %v3802_v3, 5  ;;  %v8001_v18 = vrot.slane %v3808_v36, 5  ;;  %v3814_v10 = vrot.slane %v3812_v26, 4  ;;  %v9078_v44 = vcombine.low %v7548_v15, %v7576_v32  ;;  %v8022_v32 = vld [vmem:[%s6261_s9 + $0x8c] sm:$0x1] }
 0x11b   : > { %5891 = vmatmul.mubr.msk.bf16.gmra.mxu0 %vm675_vm3, %v6081_v41  ;;  %v3794_v41 = vshll.u32 %v7962_v56, 16  ;;  %9076 = vst [vmem:[#allocation25_spill] sm:$0xff] %v7999_v42  ;;  %v3781_v30 = vor.u32 %v3780_v37, %v3777_v33  ;;  %v3791_v55 = vor.u32 %v3790_v7, %v7975_v50  ;;  %v3818_v46 = vshll.u32 %v7988_v60, 16  ;;  %v5443_v33 = vld [vmem:[%s6261_s9 + $0x78] sm:$0xe] }
 0x11c   : > { %5894 = vmatprep.mubr.msk.bf16.mxu0 %vm675_vm3, %v6082_v59  ;;  %v3832_v59 = vshll.u32 %v7970_v4, 16  ;;  %v8013_v3 = vrot.slane %v3767_v45, 4  ;;  %v8017_v36 = vsel %vm6591_vm7, %v4394_v16, %v4395_v34  ;;  %v5458_v26 = vrot.slane %v7991_v8, 9  ;;  %v8027_v42 = vpop.f32.mrf.mxu1  ;;  %v5384_v8 = vld [vmem:[%s6261_s9 + $0x90] sm:$0xf] }
 0x11d   : > { %v4406_v15 = vrot.slane %v7944_v51, 5  ;;  %v3825_v37 = vrot.slane %v3823_v11, 4  ;;  %v3828_v7 = vrot.slane %v3826_v14, 5  ;;  %9079 = vst [vmem:[#allocation27_spill] sm:$0xff] %v8027_v42  ;;  %v3796_v45 = vrot.slane %v3794_v41, 5 }
 0x11e   : > { %5857 = vmatmul.mubr.msk.bf16.gmra.mxu1 %vm675_vm3, %v9075_v54  ;;  %v4399_v54 = vrot.slane %v7906_v2, 5  ;;  %v8025_v2 = vrot.slane %v3832_v59, 5  ;;  %v4402_v49 = vrot.slane %v7962_v56, 5  ;;  %v3805_v16 = vor.u32 %v3804_v35, %v3801_v19  ;;  %v8036_v59 = vld [vmem:[%s6261_s9 + $0x94] sm:$0xf] }
 0x11f   : > { %5860 = vmatprep.mubr.msk.bf16.mxu1 %vm675_vm3, %v9078_v44  ;;  %v3838_v44 = vrot.slane %v3836_v24, 4  ;;  %v3815_v34 = vor.u32 %v3814_v10, %v8001_v18  ;;  %v3782_v51 = vrot.slane %v3781_v30, 4  ;;  %v3792_v11 = vrot.slane %v3791_v55, 4 }
 0x120   : > { %v4401_v62 = vrot.slane %v4399_v54, 4  ;;  %v3820_v14 = vrot.slane %v3818_v46, 5  ;;  %v9080_v24 = vcombine.low %v7669_v61, %v7673_v40  ;;  %v5459_v56 = vrot.slane %v5443_v33, 9 }
 0x121   : > { %v4408_v35 = vrot.slane %v4406_v15, 4  ;;  %v4409_v10 = vrot.slane %v7988_v60, 5  ;;  %v3842_v41 = vshll.u32 %v8022_v32, 16  ;;  %v3839_v30 = vor.u32 %v3838_v44, %v8025_v2 }
 0x122   : > { %v3847_v55 = vshrl.u32 %v5384_v8, 16  ;;  %v3850_v46 = vshll.u32 %v5384_v8, 16  ;;  %v9082_v61 = vcombine.low %v7588_v9, %v7593_v47  ;;  %v3806_v40 = vrot.slane %v3805_v16, 4 }
 0x123   : > { %v8032_v28 = vpop.f32.mrf.mxu0  ;;  %5895 = vmatmul.mubr.msk.bf16.gmra.mxu0 %vm675_vm3, %v6083_v13  ;;  %v3829_v13 = vor.u32 %v3828_v7, %v3825_v37  ;;  %v3816_v33 = vrot.slane %v3815_v34, 4  ;;  %v3856_v60 = vshll.u32 %v8036_v59, 16  ;;  %v3773_v37 = vsel %vm6305_vm4, %v8013_v3, %v7958_v25 }
 0x124   : > { %5934 = vmatprep.mubr.msk.bf16.mxu0 %vm675_vm3, %v9080_v24  ;;  %v3860_v24 = vshrl.u32 %v8036_v59, 16  ;;  %v3787_v9 = vsel %vm6305_vm4, %v3782_v51, %v7975_v50  ;;  %v8068_v47 = vsel %vm6591_vm7, %v5458_v26, %v4399_v54  ;;  %v8072_v7 = vsel %vm6591_vm7, %v4401_v62, %v4402_v49  ;;  %v5444_v54 = vld [vmem:[%s6261_s9 + $0x84] sm:$0xe]  ;;  %v9121_v31 = vld [vmem:[#allocation27_spill] sm:$0xff] }
 0x125   : > { %v8044_v19 = vpop.f32.mrf.mxu0  ;;  %v8080_v25 = vsel %vm6591_vm7, %v5459_v56, %v4406_v15  ;;  %v8084_v50 = vsel %vm6591_vm7, %v4408_v35, %v4409_v10  ;;  %v3844_v3 = vrot.slane %v3842_v41, 5  ;;  %v3830_v62 = vrot.slane %v3829_v13, 4  ;;  %v8108_v13 = vld [vmem:[%s6261_s9 + $0x98] sm:$0x1] }
 0x126   : > { %9081 = vst [vmem:[#allocation28_spill] sm:$0xff] %v8044_v19  ;;  %v8047_v42 = vpop.f32.mrf.mxu1  ;;  %5861 = vmatmul.mubr.msk.bf16.gmra.mxu1 %vm675_vm3, %v9082_v61  ;;  %v3840_v49 = vrot.slane %v3839_v30, 4  ;;  %v3849_v16 = vrot.slane %v3847_v55, 4  ;;  %v3852_v34 = vrot.slane %v3850_v46, 5  ;;  %v3811_v15 = vsel %vm6305_vm4, %v3806_v40, %v8001_v18  ;;  %v5387_v30 = vld [vmem:[%s6261_s9 + $0x9c] sm:$0xf] }
 0x127   : > { %v8055_v19 = vpop.f32.mrf.mxu0  ;;  %5900 = vmatprep.mubr.msk.bf16.mxu1 %vm675_vm3, %v7739_v27  ;;  %v3797_v27 = vsel %vm6305_vm4, %v3792_v11, %v3796_v45  ;;  %v3821_v45 = vsel %vm6305_vm4, %v3816_v33, %v3820_v14  ;;  %v8096_v51 = vrot.slane %v3856_v60, 5  ;;  %v3862_v11 = vrot.slane %v3860_v24, 4  ;;  %v8139_v24 = vld [vmem:[%s6261_s9 + $0xa0] sm:$0xf] }
 0x128   : > { %v8074_v44 = vpop.f32.mrf.mxu1  ;;  %v9083_v35 = vcombine.low %v7709_v48, %v7713_v38  ;;  %v5473_v10 = vcombine.low %v7932_v43, %v7949_v17  ;;  %v5474_v41 = vcombine.low %v7984_v58, %v8017_v36  ;;  %v5460_v18 = vrot.slane %v5444_v54, 9 }
 0x129   : > { %v8087_v26 = vpop.f32.mrf.mxu0  ;;  %v4413_v14 = vrot.slane %v7970_v4, 5  ;;  %v9084_v48 = vcombine.low %v7792_v6, %v7796_v22  ;;  %v9085_v38 = vsel %vm6305_vm4, %v7951_v29, %v7910_v39  ;;  %v8124_v61 = vcombine.low %v3787_v9, %v3797_v27  ;;  %v5445_v29 = vld [vmem:[%s6261_s9 + $0x90] sm:$0xe]  ;;  %v9092_v4 = vld [vmem:[#allocation5_spill] sm:$0xff] }
 0x12a   : > { %v8089_v8 = vpop.f32.mrf.mxu1  ;;  %v8122_v46 = vcombine.low %v9085_v38, %v3773_v37  ;;  %v8130_v60 = vcombine.low %v3811_v15, %v3821_v45  ;;  %v3835_v6 = vsel %vm6305_vm4, %v3830_v62, %v8025_v2  ;;  %v3845_v22 = vsel %vm6305_vm4, %v3840_v49, %v3844_v3 }
 0x12b   : > { %v5732_v56 = vpop.f32.mrf.mxu0  ;;  %5935 = vmatmul.mubr.msk.bf16.vlgmr.msra.gmra.mxu0 %vm675_vm3, %v9083_v35  ;;  %v3853_v39 = vor.u32 %v3852_v34, %v3849_v16  ;;  %v3863_v9 = vor.u32 %v3862_v11, %v8096_v51  ;;  %v3866_v27 = vshll.u32 %v8108_v13, 16  ;;  %v3871_v54 = vshrl.u32 %v5387_v30, 16 }
 0x12c   : > { %v8111_v55 = vpop.f32.mrf.mxu1  ;;  %5938 = vmatprep.mubr.msk.bf16.mxu0 %vm675_vm3, %v9084_v48  ;;  %v3874_v15 = vshll.u32 %v5387_v30, 16  ;;  %v8150_v3 = vsel %vm6591_vm7, %v5460_v18, %v4413_v14  ;;  %v4415_v62 = vrot.slane %v4413_v14, 4  ;;  %v4416_v49 = vrot.slane %v8022_v32, 5 }
 0x12d   : > { %v1479_v33 = vpop.f32.mrf.mxu0  ;;  %v5461_v16 = vrot.slane %v5445_v29, 9  ;;  %v4420_v34 = vrot.slane %v8036_v59, 5  ;;  %v3880_v11 = vshll.u32 %v8139_v24, 16  ;;  %v3884_v35 = vshrl.u32 %v8139_v24, 16 }
 0x12e   : > { %v5698_v37 = vpop.f32.mrf.mxu1  ;;  %5901 = vmatmul.mubr.msk.bf16.vlgmr.msra.gmra.mxu1 %vm675_vm3, %v7741_v57  ;;  %v8159_v48 = vcombine.low %v3835_v6, %v3845_v22  ;;  %v8161_v18 = vrot.slane %v3853_v39, 4  ;;  %v3864_v32 = vrot.slane %v3863_v9, 4  ;;  %v3868_v38 = vrot.slane %v3866_v27, 5  ;;  %v5390_v22 = vld [vmem:[%s6261_s9 + $0xa8] sm:$0xf] }
 0x12f   : > { %v1063_v45 = vadd.f32 %v5698_v37, %v7637_v5  ;;  %v5733_v2 = vpop.f32.mrf.mxu0  ;;  %5904 = vmatprep.mubr.msk.bf16.mxu1 %vm675_vm3, %v7888_v23  ;;  %v3873_v29 = vrot.slane %v3871_v54, 4  ;;  %v3876_v59 = vrot.slane %v3874_v15, 5  ;;  %v4423_v6 = vrot.slane %v8108_v13, 5  ;;  %v8187_v27 = vld [vmem:[%s6261_s9 + $0xac] sm:$0xf] }
 0x130   : > { %v1054_v57 = vpop.f32.mrf.mxu1  ;;  %v3886_v9 = vrot.slane %v3884_v35, 4  ;;  %v9089_v35 = vld [vmem:[#allocation11_spill] sm:$0xff] }
 0x131   : > { %v8156_v5 = vadd.f32 %v5732_v56, %v1063_v45  ;;  %v1055_v23 = vadd.f32 %v1054_v57, %v7661_v20  ;;  %v1482_v30 = vpop.f32.mrf.mxu0  ;;  %v9086_v45 = vcombine.low %v7829_v63, %v7855_v52  ;;  %v8172_v20 = vsel %vm6591_vm7, %v4415_v62, %v4416_v49  ;;  %v5446_v62 = vld [vmem:[%s6261_s9 + $0x9c] sm:$0xe] }
 0x132   : > { %v5699_v14 = vpop.f32.mrf.mxu1  ;;  %v4422_v63 = vrot.slane %v4420_v34, 4  ;;  %v8184_v52 = vrot.slane %v3880_v11, 5  ;;  %v4427_v49 = vrot.slane %v8139_v24, 5  ;;  %v3904_v24 = vshll.u32 %v8187_v27, 16 }
 0x133   : > { %v8163_v37 = vadd.f32 %v1479_v33, %v1055_v23  ;;  %v1066_v40 = vadd.f32 %v5699_v14, %v7680_v53  ;;  %v5736_v56 = vpop.f32.mrf.mxu0  ;;  %5939 = vmatmul.mubr.msk.bf16.gmra.mxu0 %vm675_vm3, %v9086_v45  ;;  %v9087_v33 = vcombine.low %v7894_v21, %v7898_v1  ;;  %v8182_v53 = vsel %vm6591_vm7, %v5461_v16, %v4420_v34  ;;  %v5389_v1 = vld [vmem:[%s6261_s9 + $0xa4] sm:$0x1]  ;;  %v9088_v16 = vld [vmem:[#allocation14_spill] sm:$0xff] }
 0x134   : > { %v1057_v39 = vpop.f32.mrf.mxu1  ;;  %v3859_v21 = vsel %vm6305_vm4, %v8161_v18, %v8096_v51  ;;  %v3895_v34 = vshrl.u32 %v5390_v22, 16  ;;  %v9090_v51 = vld [vmem:[#allocation19_spill] sm:$0xff]  ;;  %v3908_v18 = vshrl.u32 %v8187_v27, 16 }
 0x135   : > { %5942 = vmatprep.mubr.msk.bf16.mxu0 %vm675_vm3, %v9087_v33  ;;  %v8189_v54 = vadd.f32 %v5733_v2, %v1066_v40  ;;  %v1058_v13 = vadd.f32 %v1057_v39, %v7725_v12  ;;  %v1495_v15 = vpop.f32.mrf.mxu0  ;;  %v3869_v40 = vsel %vm6305_vm4, %v3864_v32, %v3868_v38  ;;  %v3877_v2 = vor.u32 %v3876_v59, %v3873_v29  ;;  %v9091_v59 = vld [vmem:[#allocation15_spill] sm:$0xff] }
 0x136   : > { %v5702_v57 = vpop.f32.mrf.mxu1  ;;  %5905 = vmatmul.mubr.msk.bf16.gmra.mxu1 %vm675_vm3, %v9088_v16  ;;  %v3898_v12 = vshll.u32 %v5390_v22, 16  ;;  %v8212_v39 = vsel %vm6591_vm7, %v4422_v63, %v4423_v6  ;;  %v3887_v32 = vor.u32 %v3886_v9, %v8184_v52  ;;  %v3890_v38 = vshll.u32 %v5389_v1, 16 }
 0x137   : > { %v8203_v11 = vadd.f32 %v1482_v30, %v1058_v13  ;;  %v1079_v23 = vadd.f32 %v5702_v57, %v9089_v35  ;;  %v5737_v14 = vpop.f32.mrf.mxu0  ;;  %5908 = vmatprep.mubr.msk.bf16.mxu1 %vm675_vm3, %v9090_v51  ;;  %v5462_v30 = vrot.slane %v5446_v62, 9  ;;  %v4429_v13 = vrot.slane %v4427_v49, 4 }
 0x138   : > { %v1070_v45 = vpop.f32.mrf.mxu1  ;;  %v4430_v57 = vrot.slane %v5389_v1, 5  ;;  %v8220_v51 = vrot.slane %v3877_v2, 4  ;;  %v3897_v6 = vrot.slane %v3895_v34, 4  ;;  %v3900_v63 = vrot.slane %v3898_v12, 5  ;;  %v8230_v1 = vld [vmem:[%s6261_s9 + $0xb0] sm:$0x1] }
 0x139   : > { %v8215_v29 = vadd.f32 %v5736_v56, %v1079_v23  ;;  %v1071_v22 = vadd.f32 %v1070_v45, %v9091_v59  ;;  %v1498_v33 = vpop.f32.mrf.mxu0  ;;  %v8232_v23 = vrot.slane %v3904_v24, 5  ;;  %v3910_v2 = vrot.slane %v3908_v18, 4  ;;  %v9093_v12 = vld [vmem:[#allocation17_spill] sm:$0xff] }
 0x13a   : > { %v5703_v16 = vpop.f32.mrf.mxu1  ;;  %v8242_v43 = vrot.slane %v3887_v32, 4  ;;  %v8244_v17 = vrot.slane %v3890_v38, 5  ;;  %v8252_v58 = vsel %vm6591_vm7, %v5462_v30, %v4427_v49  ;;  %v8256_v36 = vsel %vm6591_vm7, %v4429_v13, %v4430_v57  ;;  %v8268_v30 = vld [vmem:[%s6261_s9 + $0xb8] sm:$0xf] }
 0x13b   : > { %v8222_v9 = vadd.f32 %v1495_v15, %v1071_v22  ;;  %v1082_v62 = vadd.f32 %v5703_v16, %v9092_v4  ;;  %v5740_v56 = vpop.f32.mrf.mxu0  ;;  %5943 = vmatmul.mubr.msk.bf16.gmra.mxu0 %vm675_vm3, %v5473_v10  ;;  %v8238_v15 = vcombine.low %v3859_v21, %v3869_v40  ;;  %v5447_v10 = vld [vmem:[%s6261_s9 + $0xa8] sm:$0xe]  ;;  %v3901_v32 = vor.u32 %v3900_v63, %v3897_v6  ;;  %v9095_v22 = vld [vmem:[#allocation12_spill] sm:$0xff] }
 0x13c   : > { %v1073_v45 = vpop.f32.mrf.mxu1  ;;  %5946 = vmatprep.mubr.msk.bf16.mxu0 %vm675_vm3, %v5474_v41  ;;  %v5393_v41 = vld [vmem:[%s6261_s9 + $0xb4] sm:$0xf]  ;;  %v9094_v40 = vld [vmem:[#allocation22_spill] sm:$0xff]  ;;  %v3914_v38 = vshll.u32 %v8230_v1, 16  ;;  %v4434_v49 = vrot.slane %v8187_v27, 5  ;;  %v3911_v16 = vor.u32 %v3910_v2, %v8232_v23  ;;  %v3893_v27 = vsel %vm6305_vm4, %v8242_v43, %v8244_v17 }
 0x13d   : > { %v8247_v34 = vadd.f32 %v5737_v14, %v1082_v62  ;;  %v1074_v24 = vadd.f32 %v1073_v45, %v9093_v12  ;;  %v1511_v18 = vpop.f32.mrf.mxu0  ;;  %v5463_v62 = vrot.slane %v5447_v10, 9  ;;  %v3919_v6 = vshrl.u32 %v5393_v41, 16 }
 0x13e   : > { %v5706_v21 = vpop.f32.mrf.mxu1  ;;  %5909 = vmatmul.mubr.msk.bf16.gmra.mxu1 %vm675_vm3, %v9094_v40  ;;  %v3922_v63 = vshll.u32 %v5393_v41, 16  ;;  %v3928_v2 = vshll.u32 %v8268_v30, 16  ;;  %v3932_v10 = vshrl.u32 %v8268_v30, 16  ;;  %v5396_v40 = vld [vmem:[%s6261_s9 + $0xc0] sm:$0xf]  ;;  %v3902_v4 = vrot.slane %v3901_v32, 4 }
 0x13f   : > { %v8270_v59 = vadd.f32 %v1498_v33, %v1074_v24  ;;  %v1095_v13 = vadd.f32 %v5706_v21, %v9095_v22  ;;  %v5741_v57 = vpop.f32.mrf.mxu0  ;;  %5912 = vmatprep.mubr.msk.bf16.mxu1 %vm675_vm3, %v8122_v46  ;;  %v9097_v24 = vld [vmem:[#allocation21_spill] sm:$0xff]  ;;  %v3916_v43 = vrot.slane %v3914_v38, 5  ;;  %v4436_v17 = vrot.slane %v4434_v49, 4 }
 0x140   : > { %v1086_v45 = vpop.f32.mrf.mxu1  ;;  %v4437_v33 = vrot.slane %v8230_v1, 5  ;;  %v8298_v14 = vsel %vm6591_vm7, %v5463_v62, %v4434_v49  ;;  %v8301_v32 = vld [vmem:[%s6261_s9 + $0xc4] sm:$0xf]  ;;  %v9101_v1 = vcombine.low %v8080_v25, %v8084_v50  ;;  %v8313_v62 = vrot.slane %v3928_v2, 5 }
 0x141   : > { %v8282_v12 = vadd.f32 %v5740_v56, %v1095_v13  ;;  %v1087_v21 = vadd.f32 %v1086_v45, %v9097_v24  ;;  %v1514_v46 = vpop.f32.mrf.mxu0  ;;  %v9099_v56 = vld [vmem:[#allocation24_spill] sm:$0xff]  ;;  %v9100_v45 = vcombine.low %v8068_v47, %v8072_v7  ;;  %v3912_v24 = vrot.slane %v3911_v16, 4  ;;  %v9102_v16 = vld [vmem:[#allocation26_spill] sm:$0xff] }
 0x142   : > { %v5707_v22 = vpop.f32.mrf.mxu1  ;;  %v3943_v47 = vshrl.u32 %v5396_v40, 16  ;;  %v3946_v7 = vshll.u32 %v5396_v40, 16  ;;  %v3907_v25 = vsel %vm6305_vm4, %v3902_v4, %v8232_v23  ;;  %v8322_v50 = vsel %vm6591_vm7, %v4436_v17, %v4437_v33  ;;  %v5448_v40 = vld [vmem:[%s6261_s9 + $0xb4] sm:$0xe] }
 0x143   : > { %9096 = vst [vmem:[#allocation14_spill] sm:$0xff] %v8282_v12  ;;  %v8289_v35 = vadd.f32 %v1511_v18, %v1087_v21  ;;  %v1098_v41 = vadd.f32 %v5707_v22, %v9099_v56  ;;  %v5744_v13 = vpop.f32.mrf.mxu0  ;;  %5947 = vmatmul.mubr.msk.bf16.gmra.mxu0 %vm675_vm3, %v9100_v45  ;;  %v8308_v18 = vld [vmem:[%s6261_s9 + $0xbc] sm:$0x1]  ;;  %v3921_v21 = vrot.slane %v3919_v6, 4  ;;  %v3924_v22 = vrot.slane %v3922_v63, 5 }
 0x144   : > { %v1089_v38 = vpop.f32.mrf.mxu1  ;;  %5950 = vmatprep.mubr.msk.bf16.mxu0 %vm675_vm3, %v9101_v1  ;;  %v3956_v6 = vshrl.u32 %v8301_v32, 16  ;;  %v3938_v23 = vshll.u32 %v8308_v18, 16  ;;  %v4441_v17 = vrot.slane %v8268_v30, 5  ;;  %v9103_v1 = vld [vmem:[#allocation28_spill] sm:$0xff] }
 0x145   : > { %9098 = vst [vmem:[#allocation11_spill] sm:$0xff] %v8289_v35  ;;  %v8310_v56 = vadd.f32 %v5741_v57, %v1098_v41  ;;  %v1090_v45 = vadd.f32 %v1089_v38, %v9102_v16  ;;  %v1527_v49 = vpop.f32.mrf.mxu0  ;;  %v3934_v35 = vrot.slane %v3932_v10, 4  ;;  %v3952_v57 = vshll.u32 %v8301_v32, 16 }
 0x146   : > { %v5710_v12 = vpop.f32.mrf.mxu1  ;;  %5913 = vmatmul.mubr.msk.bf16.gmra.mxu1 %vm675_vm3, %v8124_v61  ;;  %v3917_v61 = vsel %vm6305_vm4, %v3912_v24, %v3916_v43  ;;  %v3925_v33 = vor.u32 %v3924_v22, %v3921_v21  ;;  %v3945_v41 = vrot.slane %v3943_v47, 4  ;;  %v3948_v38 = vrot.slane %v3946_v7, 5 }
 0x147   : > { %v8326_v63 = vadd.f32 %v1514_v46, %v1090_v45  ;;  %v1111_v2 = vadd.f32 %v5710_v12, %v8032_v28  ;;  %v5745_v10 = vpop.f32.mrf.mxu0  ;;  %5916 = vmatprep.mubr.msk.bf16.mxu1 %vm675_vm3, %v8130_v60  ;;  %v9104_v60 = vsel %vm6305_vm4, %v8220_v51, %v8184_v52  ;;  %v3935_v24 = vor.u32 %v3934_v35, %v8313_v62 }
 0x148   : > { %v1102_v4 = vpop.f32.mrf.mxu1  ;;  %v8344_v43 = vcombine.low %v9104_v60, %v3893_v27  ;;  %v8347_v30 = vcombine.low %v3907_v25, %v3917_v61  ;;  %v8351_v22 = vrot.slane %v3952_v57, 5  ;;  %v3958_v47 = vrot.slane %v3956_v6, 4  ;;  %v5398_v27 = vld [vmem:[%s6261_s9 + $0xc8] sm:$0x1] }
 0x149   : > { %v8336_v46 = vadd.f32 %v5744_v13, %v1111_v2  ;;  %v1103_v28 = vadd.f32 %v1102_v4, %v9103_v1  ;;  %v1530_v12 = vpop.f32.mrf.mxu0  ;;  %v5480_v13 = vcombine.low %v8298_v14, %v8322_v50  ;;  %v9105_v52 = vcombine.low %v8150_v3, %v8172_v20  ;;  %v5399_v14 = vld [vmem:[%s6261_s9 + $0xcc] sm:$0xf]  ;;  %v8372_v20 = vld [vmem:[%s6261_s9 + $0xd0] sm:$0xf]  ;;  %v5449_v4 = vld [vmem:[%s6261_s9 + $0xc0] sm:$0xe] }
 0x14a   : > { %v5711_v21 = vpop.f32.mrf.mxu1  ;;  %v8360_v35 = vrot.slane %v3938_v23, 5  ;;  %v5464_v51 = vrot.slane %v5448_v40, 9  ;;  %v9106_v50 = vcombine.low %v8182_v53, %v8212_v39  ;;  %v4444_v57 = vrot.slane %v8308_v18, 5 }
 0x14b   : > { %v8353_v7 = vadd.f32 %v1527_v49, %v1103_v28  ;;  %v1114_v16 = vadd.f32 %v5711_v21, %v8055_v19  ;;  %v5748_v45 = vpop.f32.mrf.mxu0  ;;  %5951 = vmatmul.mubr.msk.bf16.gmra.mxu0 %vm675_vm3, %v9105_v52  ;;  %v8368_v49 = vrot.slane %v3925_v33, 4  ;;  %v4443_v19 = vrot.slane %v4441_v17, 4 }
 0x14c   : > { %v1105_v25 = vpop.f32.mrf.mxu1  ;;  %5954 = vmatprep.mubr.msk.bf16.mxu0 %vm675_vm3, %v9106_v50  ;;  %v3949_v3 = vor.u32 %v3948_v38, %v3945_v41  ;;  %v8377_v23 = vrot.slane %v3935_v24, 4  ;;  %v4448_v53 = vrot.slane %v8301_v32, 5  ;;  %v3959_v33 = vor.u32 %v3958_v47, %v8351_v22 }
 0x14d   : > { %v8374_v6 = vadd.f32 %v5745_v10, %v1114_v16  ;;  %v1106_v2 = vadd.f32 %v1105_v25, %v8087_v26  ;;  %v1543_v61 = vpop.f32.mrf.mxu0  ;;  %v3962_v18 = vshll.u32 %v5398_v27, 16  ;;  %v3967_v40 = vshrl.u32 %v5399_v14, 16  ;;  %v9109_v10 = vld [vmem:[#allocation7_spill] sm:$0xff]  ;;  %v9110_v16 = vld [vmem:[#allocation6_spill] sm:$0xff] }
 0x14e   : > { %v5714_v39 = vpop.f32.mrf.mxu1  ;;  %5917 = vmatmul.mubr.msk.bf16.gmra.mxu1 %vm675_vm3, %v8159_v48  ;;  %v3970_v41 = vshll.u32 %v5399_v14, 16  ;;  %v3976_v28 = vshll.u32 %v8372_v20, 16  ;;  %v3980_v32 = vshrl.u32 %v8372_v20, 16  ;;  %v4442_v48 = vsel %vm6591_vm7, %v5464_v51, %v4441_v17  ;;  %v9111_v17 = vld [vmem:[#allocation9_spill] sm:$0xff] }
 0x14f   : > { %9107 = vst [vmem:[#allocation19_spill] sm:$0xff] %v8374_v6  ;;  %v8384_v38 = vadd.f32 %v1530_v12, %v1106_v2  ;;  %v1127_v1 = vadd.f32 %v5714_v39, %v9109_v10  ;;  %v5749_v26 = vpop.f32.mrf.mxu0  ;;  %5920 = vmatprep.mubr.msk.bf16.mxu1 %vm675_vm3, %v8238_v15  ;;  %v4445_v24 = vsel %vm6591_vm7, %v4443_v19, %v4444_v57  ;;  %v3950_v21 = vrot.slane %v3949_v3, 4 }
 0x150   : > { %v1118_v60 = vpop.f32.mrf.mxu1  ;;  %v5465_v12 = vrot.slane %v5449_v4, 9  ;;  %v4450_v25 = vrot.slane %v4448_v53, 4  ;;  %v4451_v15 = vrot.slane %v5398_v27, 5  ;;  %v3960_v2 = vrot.slane %v3959_v33, 4  ;;  %v5401_v33 = vld [vmem:[%s6261_s9 + $0xd4] sm:$0x1] }
 0x151   : > { %9108 = vst [vmem:[#allocation15_spill] sm:$0xff] %v8384_v38  ;;  %v8395_v47 = vadd.f32 %v5748_v45, %v1127_v1  ;;  %v1119_v52 = vadd.f32 %v1118_v60, %v9110_v16  ;;  %v1546_v14 = vpop.f32.mrf.mxu0  ;;  %v3964_v39 = vrot.slane %v3962_v18, 5  ;;  %v3969_v10 = vrot.slane %v3967_v40, 4  ;;  %v9113_v18 = vld [vmem:[#allocation8_spill] sm:$0xff] }
 0x152   : > { %v5715_v50 = vpop.f32.mrf.mxu1  ;;  %v3972_v38 = vrot.slane %v3970_v41, 5  ;;  %v9112_v45 = vcombine.low %v8252_v58, %v8256_v36  ;;  %v8405_v57 = vrot.slane %v3976_v28, 5  ;;  %v3982_v27 = vrot.slane %v3980_v32, 4 }
 0x153   : > { %v8398_v6 = vadd.f32 %v1543_v61, %v1119_v52  ;;  %v1130_v51 = vadd.f32 %v5715_v50, %v9111_v17  ;;  %v5752_v19 = vpop.f32.mrf.mxu0  ;;  %v3931_v61 = vsel %vm6305_vm4, %v8368_v49, %v8313_v62  ;;  %v3941_v4 = vsel %vm6305_vm4, %v8377_v23, %v8360_v35  ;;  %v5450_v62 = vld [vmem:[%s6261_s9 + $0xcc] sm:$0xe]  ;;  %s8736_s9 = scalar_lea.vmem [#allocation2], %s4962_s8 }
 0x154   : > { %5955 = vmatmul.mubr.msk.bf16.gmra.mxu0 %vm675_vm3, %v9112_v45  ;;  %v1121_v3 = vpop.f32.mrf.mxu1  ;;  %v4455_v58 = vrot.slane %v8372_v20, 5  ;;  %v4452_v1 = vsel %vm6591_vm7, %v4450_v25, %v4451_v15  ;;  %v5481_v35 = vcombine.low %v4442_v48, %v4445_v24  ;;  %v3955_v20 = vsel %vm6305_vm4, %v3950_v21, %v8351_v22  ;;  %v9115_v25 = vld [vmem:[#allocation13_spill] sm:$0xff]  ;;  %s4874_s11 = sshll.u32 %s8736_s9, 4  ;;  %s8879_s11 = int_to_ptr.vmem [resolvable:$true] %s4874_s11 }
 0x155   : > { %5958 = vmatprep.mubr.msk.bf16.mxu0 %vm675_vm3, %v5480_v13  ;;  %v8418_v36 = vadd.f32 %v5749_v26, %v1130_v51  ;;  %v1122_v40 = vadd.f32 %v1121_v3, %v9113_v18  ;;  %v1559_v41 = vpop.f32.mrf.mxu0  ;;  %v4449_v13 = vsel %vm6591_vm7, %v5465_v12, %v4448_v53  ;;  %v3965_v23 = vsel %vm6305_vm4, %v3960_v2, %v3964_v39  ;;  %v9114_v53 = vld [vmem:[#allocation10_spill] sm:$0xff]  ;;  %s6086_s23 = scalar_lea.vmem %s8879_s11, 4096  ;;  %p6093_p1 = scmp.lt.s32.totalorder %s8879_s11, %s6091_s27 }
 0x156   : > { %v5718_v49 = vpop.f32.mrf.mxu1  ;;  %5921 = vmatmul.mubr.msk.bf16.gmra.mxu1 %vm675_vm3, %v8344_v43  ;;  %v3973_v26 = vor.u32 %v3972_v38, %v3969_v10  ;;  %v3983_v12 = vor.u32 %v3982_v27, %v8405_v57  ;;  %v3986_v43 = vshll.u32 %v5401_v33, 16  ;;  %v5482_v24 = vcombine.low %v4449_v13, %v4452_v1  ;;  %p6087_p12 = scmp.ne.s32.totalorder %s8879_s11, %s6086_s23  ;;  %p6094_p2 = scmp.lt.s32.totalorder %s6092_s28, %s6086_s23 }
 0x157   : > { %v8433_v28 = vadd.f32 %v1546_v14, %v1122_v40  ;;  %v1143_v32 = vadd.f32 %v5718_v49, %v9114_v53  ;;  %v5753_v60 = vpop.f32.mrf.mxu0  ;;  %5924 = vmatprep.mubr.msk.bf16.mxu1 %vm675_vm3, %v8347_v30  ;;  %v5466_v16 = vrot.slane %v5450_v62, 9  ;;  %v4457_v52 = vrot.slane %v4455_v58, 4  ;;  %v9116_v30 = vld [vmem:[#allocation16_spill] sm:$0xff] }
 0x158   : > { %v1134_v48 = vpop.f32.mrf.mxu1  ;;  %v4458_v22 = vrot.slane %v5401_v33, 5  ;;  %v5416_v50 = vcombine.low %v3931_v61, %v3941_v4  ;;  %v5417_v2 = vcombine.low %v3955_v20, %v3965_v23  ;;  %v3974_v39 = vrot.slane %v3973_v26, 4  ;;  %v9117_v33 = vld [vmem:[#allocation18_spill] sm:$0xff]  ;;  %v9118_v62 = vld [vmem:[#allocation20_spill] sm:$0xff]  ;;  %v9119_v26 = vld [vmem:[#allocation23_spill] sm:$0xff]  ;;  %p6088_p13 = pnand %p6087_p12, %p6227_p4  ;;  %p6095_p3 = por %p6094_p2, %p6093_p1 }
 0x159   : > { %v8439_v21 = vadd.f32 %v5752_v19, %v1143_v32  ;;  %v1135_v38 = vadd.f32 %v1134_v48, %v9115_v25  ;;  %v1562_v14 = vpop.f32.mrf.mxu0  ;;  %v3984_v45 = vrot.slane %v3983_v12, 4  ;;  %v3988_v27 = vrot.slane %v3986_v43, 5  ;;  %v9120_v43 = vld [vmem:[#allocation25_spill] sm:$0xff] }
 0x15a   : > { %v5719_v15 = vpop.f32.mrf.mxu1  ;;  %v4456_v19 = vsel %vm6591_vm7, %v5466_v16, %v4455_v58  ;;  %v4459_v61 = vsel %vm6591_vm7, %v4457_v52, %v4458_v22  ;;  %v3979_v13 = vsel %vm6305_vm4, %v3974_v39, %v8405_v57  ;;  %p6089_p0 = pneg %p6088_p13 }
 0x15b   : > { %v8442_v10 = vadd.f32 %v1559_v41, %v1135_v38  ;;  %v1146_v17 = vadd.f32 %v5719_v15, %v9116_v30  ;;  %v5756_v51 = vpop.f32.mrf.mxu0  ;;  %v3989_v0 = vsel %vm6305_vm4, %v3984_v45, %v3988_v27 }
 0x15c   : > { %5959 = vmatmul.mubr.msk.bf16.gmra.mxu0 %vm675_vm3, %v5481_v35  ;;  %v1137_v3 = vpop.f32.mrf.mxu1  ;;  %v5483_v35 = vcombine.low %v4456_v19, %v4459_v61  ;;  %v5418_v12 = vcombine.low %v3979_v13, %v3989_v0  ;;  %p6096_p5 = pnand %p6095_p3, %p6089_p0 }
 0x15d   : > { %5962 = vmatprep.mubr.msk.bf16.mxu0 %vm675_vm3, %v5482_v24  ;;  %v8451_v4 = vadd.f32 %v5753_v60, %v1146_v17  ;;  %v1138_v18 = vadd.f32 %v1137_v3, %v9117_v33  ;;  %v1575_v40 = vpop.f32.mrf.mxu0 }
 0x15e   : > { %v5722_v41 = vpop.f32.mrf.mxu1  ;;  %5925 = vmatmul.mubr.msk.bf16.gmra.mxu1 %vm675_vm3, %v5416_v50 }
 0x15f   : > { %v8458_v1 = vadd.f32 %v1562_v14, %v1138_v18  ;;  %v1159_v49 = vadd.f32 %v5722_v41, %v9118_v62  ;;  %v5757_v58 = vpop.f32.mrf.mxu0  ;;  %5928 = vmatprep.mubr.msk.bf16.mxu1 %vm675_vm3, %v5417_v2 }
 0x160   : > { %v1150_v20 = vpop.f32.mrf.mxu1 }
 0x161   : > { %v8464_v23 = vadd.f32 %v5756_v51, %v1159_v49  ;;  %v1151_v53 = vadd.f32 %v1150_v20, %v9119_v26  ;;  %v1578_v32 = vpop.f32.mrf.mxu0 }
 0x162   : > { %v5723_v60 = vpop.f32.mrf.mxu1 }
 0x163   : > { %v8467_v57 = vadd.f32 %v1575_v40, %v1151_v53  ;;  %v1162_v48 = vadd.f32 %v5723_v60, %v9120_v43  ;;  %v5760_v24 = vpop.f32.mrf.mxu0 }
 0x164   : > { %5963 = vmatmul.mubr.msk.bf16.gmra.mxu0 %vm675_vm3, %v5483_v35  ;;  %v1153_v16 = vpop.f32.mrf.mxu1 }
 0x165   : > { %v8471_v52 = vadd.f32 %v5757_v58, %v1162_v48  ;;  %v1154_v22 = vadd.f32 %v1153_v16, %v9121_v31  ;;  %v1591_v25 = vpop.f32.mrf.mxu0 }
 0x166   : > { %v5726_v38 = vpop.f32.mrf.mxu1  ;;  %5929 = vmatmul.mubr.msk.bf16.gmra.mxu1 %vm675_vm3, %v5418_v12 }
 0x167   : > { %v8475_v14 = vadd.f32 %v1578_v32, %v1154_v22  ;;  %v1175_v15 = vadd.f32 %v5726_v38, %v8047_v42  ;;  %v5761_v50 = vpop.f32.mrf.mxu0 }
 0x168   : > { %v1166_v2 = vpop.f32.mrf.mxu1 }
 0x169   : > { %v8478_v39 = vadd.f32 %v5760_v24, %v1175_v15  ;;  %v1167_v30 = vadd.f32 %v1166_v2, %v8074_v44  ;;  %v1594_v17 = vpop.f32.mrf.mxu0 }
 0x16a   : > { %v5727_v51 = vpop.f32.mrf.mxu1 }
 0x16b   : > { %v8481_v45 = vadd.f32 %v1591_v25, %v1167_v30  ;;  %v1178_v27 = vadd.f32 %v5727_v51, %v8089_v8  ;;  %v5800_v3 = vpop.f32.mrf.mxu0  ;;  %v9122_v30 = vld [vmem:[#allocation14_spill] sm:$0xff] }
 0x16c   : > { %v1169_v19 = vpop.f32.mrf.mxu1 }
 0x16d   : > { %v8484_v61 = vadd.f32 %v5761_v50, %v1178_v27  ;;  %v1170_v33 = vadd.f32 %v1169_v19, %v8111_v55  ;;  %v2567_v18 = vpop.f32.mrf.mxu0 }
 0x16e   : > { %v5766_v42 = vpop.f32.mrf.mxu1 }
 0x16f   : > { %v8487_v40 = vadd.f32 %v1594_v17, %v1170_v33  ;;  %v1970_v41 = vadd.f32 %v5766_v42, %v8156_v5  ;;  %v5801_v13 = vpop.f32.mrf.mxu0 }
 0x170   : > { %v1841_v44 = vpop.f32.mrf.mxu1 }
 0x171   : > { %v8490_v62 = vadd.f32 %v5800_v3, %v1970_v41  ;;  %v1968_v49 = vadd.f32 %v1841_v44, %v8163_v37  ;;  %v2570_v58 = vpop.f32.mrf.mxu0  ;;  %v9123_v3 = vld [vmem:[#allocation11_spill] sm:$0xff] }
 0x172   : > { %v5767_v8 = vpop.f32.mrf.mxu1 }
 0x173   : > { %v8493_v0 = vadd.f32 %v2567_v18, %v1968_v49  ;;  %v1971_v35 = vadd.f32 %v5767_v8, %v8189_v54  ;;  %v5804_v20 = vpop.f32.mrf.mxu0 }
 0x174   : > { %v1844_v55 = vpop.f32.mrf.mxu1 }
 0x175   : > { %v8496_v26 = vadd.f32 %v5801_v13, %v1971_v35  ;;  %v1969_v53 = vadd.f32 %v1844_v55, %v8203_v11  ;;  %v2583_v32 = vpop.f32.mrf.mxu0 }
 0x176   : > { %v5770_v5 = vpop.f32.mrf.mxu1 }
 0x177   : > { %v8499_v60 = vadd.f32 %v2570_v58, %v1969_v53  ;;  %v1974_v12 = vadd.f32 %v5770_v5, %v8215_v29  ;;  %v5805_v43 = vpop.f32.mrf.mxu0 }
 0x178   : > { %v1857_v37 = vpop.f32.mrf.mxu1 }
 0x179   : > { %v8502_v48 = vadd.f32 %v5804_v20, %v1974_v12  ;;  %v1972_v24 = vadd.f32 %v1857_v37, %v8222_v9  ;;  %v2586_v16 = vpop.f32.mrf.mxu0 }
 0x17a   : > { %v5771_v54 = vpop.f32.mrf.mxu1 }
 0x17b   : > { %v8505_v31 = vadd.f32 %v2583_v32, %v1972_v24  ;;  %v1975_v22 = vadd.f32 %v5771_v54, %v8247_v34  ;;  %v5808_v25 = vpop.f32.mrf.mxu0  ;;  %v9125_v54 = vld [vmem:[#allocation15_spill] sm:$0xff] }
 0x17c   : > { %v1860_v11 = vpop.f32.mrf.mxu1 }
 0x17d   : > { %v8508_v38 = vadd.f32 %v5805_v43, %v1975_v22  ;;  %v1973_v15 = vadd.f32 %v1860_v11, %v8270_v59  ;;  %v2599_v50 = vpop.f32.mrf.mxu0  ;;  %v9124_v43 = vld [vmem:[#allocation19_spill] sm:$0xff] }
 0x17e   : > { %v5774_v29 = vpop.f32.mrf.mxu1 }
 0x17f   : > { %v8511_v2 = vadd.f32 %v2586_v16, %v1973_v15  ;;  %v1978_v17 = vadd.f32 %v5774_v29, %v9122_v30  ;;  %v5809_v51 = vpop.f32.mrf.mxu0 }
 0x180   : > { %v1873_v9 = vpop.f32.mrf.mxu1 }
 0x181   : > { %v8514_v27 = vadd.f32 %v5808_v25, %v1978_v17  ;;  %v1976_v19 = vadd.f32 %v1873_v9, %v9123_v3  ;;  %v2602_v33 = vpop.f32.mrf.mxu0 }
 0x182   : > { %v5775_v34 = vpop.f32.mrf.mxu1 }
 0x183   : > { %v8517_v18 = vadd.f32 %v2599_v50, %v1976_v19  ;;  %v1979_v42 = vadd.f32 %v5775_v34, %v8310_v56  ;;  %v5812_v41 = vpop.f32.mrf.mxu0 }
 0x184   : > { %v1876_v59 = vpop.f32.mrf.mxu1 }
 0x185   : > { %v8520_v13 = vadd.f32 %v5809_v51, %v1979_v42  ;;  %v1977_v44 = vadd.f32 %v1876_v59, %v8326_v63  ;;  %v2615_v49 = vpop.f32.mrf.mxu0 }
 0x186   : > { %v5778_v58 = vpop.f32.mrf.mxu1 }
 0x187   : > { %v8523_v8 = vadd.f32 %v2602_v33, %v1977_v44  ;;  %v1982_v35 = vadd.f32 %v5778_v58, %v8336_v46  ;;  %v5813_v20 = vpop.f32.mrf.mxu0 }
 0x188   : > { %v1889_v55 = vpop.f32.mrf.mxu1 }
 0x189   : > { %v8526_v53 = vadd.f32 %v5812_v41, %v1982_v35  ;;  %v1980_v32 = vadd.f32 %v1889_v55, %v8353_v7  ;;  %v2618_v5 = vpop.f32.mrf.mxu0 }
 0x18a   : > { %v5779_v56 = vpop.f32.mrf.mxu1 }
 0x18b   : > { %v8529_v12 = vadd.f32 %v2615_v49, %v1980_v32  ;;  %v1983_v37 = vadd.f32 %v5779_v56, %v9124_v43  ;;  %v5816_v24 = vpop.f32.mrf.mxu0 }
 0x18c   : > { %v1892_v63 = vpop.f32.mrf.mxu1 }
 0x18d   : > { %v8532_v16 = vadd.f32 %v5813_v20, %v1983_v37  ;;  %v1981_v22 = vadd.f32 %v1892_v63, %v9125_v54  ;;  %v2631_v25 = vpop.f32.mrf.mxu0 }
 0x18e   : > { %v5782_v46 = vpop.f32.mrf.mxu1 }
 0x18f   : > { %v8535_v11 = vadd.f32 %v2618_v5, %v1981_v22  ;;  %v1986_v15 = vadd.f32 %v5782_v46, %v8395_v47  ;;  %v5817_v50 = vpop.f32.mrf.mxu0 }
 0x190   : > { %v1905_v7 = vpop.f32.mrf.mxu1 }
 0x191   : > { %v8538_v29 = vadd.f32 %v5816_v24, %v1986_v15  ;;  %v1984_v30 = vadd.f32 %v1905_v7, %v8398_v6  ;;  %v2634_v17 = vpop.f32.mrf.mxu0 }
 0x192   : > { %v5783_v51 = vpop.f32.mrf.mxu1 }
 0x193   : > { %v8541_v9 = vadd.f32 %v2631_v25, %v1984_v30  ;;  %v1987_v3 = vadd.f32 %v5783_v51, %v8418_v36  ;;  %v5820_v19 = vpop.f32.mrf.mxu0 }
 0x194   : > { %v1908_v33 = vpop.f32.mrf.mxu1 }
 0x195   : > { %v8544_v34 = vadd.f32 %v5817_v50, %v1987_v3  ;;  %v1985_v42 = vadd.f32 %v1908_v33, %v8433_v28  ;;  %v2647_v41 = vpop.f32.mrf.mxu0 }
 0x196   : > { %v5786_v47 = vpop.f32.mrf.mxu1 }
 0x197   : > { %9126 = vst [vmem:[#allocation5_spill] sm:$0xff] %v8544_v34  ;;  %v8547_v59 = vadd.f32 %v2634_v17, %v1985_v42  ;;  %v1990_v44 = vadd.f32 %v5786_v47, %v8439_v21  ;;  %v5821_v49 = vpop.f32.mrf.mxu0 }
 0x198   : > { %v1921_v6 = vpop.f32.mrf.mxu1 }
 0x199   : > { %9127 = vst [vmem:[#allocation17_spill] sm:$0xff] %v8547_v59  ;;  %v8550_v58 = vadd.f32 %v5820_v19, %v1990_v44  ;;  %v1988_v35 = vadd.f32 %v1921_v6, %v8442_v10  ;;  %v2650_v20 = vpop.f32.mrf.mxu0 }
 0x19a   : > { %v5787_v36 = vpop.f32.mrf.mxu1 }
 0x19b   : > { %9128 = vst [vmem:[#allocation22_spill] sm:$0xff] %v8550_v58  ;;  %v8553_v55 = vadd.f32 %v2647_v41, %v1988_v35  ;;  %v1991_v32 = vadd.f32 %v5787_v36, %v8451_v4  ;;  %v5824_v5 = vpop.f32.mrf.mxu0 }
 0x19c   : > { %v1924_v28 = vpop.f32.mrf.mxu1 }
 0x19d   : > { %9129 = vst [vmem:[#allocation12_spill] sm:$0xff] %v8553_v55  ;;  %v8556_v56 = vadd.f32 %v5821_v49, %v1991_v32  ;;  %v1989_v43 = vadd.f32 %v1924_v28, %v8458_v1  ;;  %v2663_v37 = vpop.f32.mrf.mxu0 }
 0x19e   : > { %v5790_v21 = vpop.f32.mrf.mxu1 }
 0x19f   : > { %9130 = vst [vmem:[#allocation21_spill] sm:$0xff] %v8556_v56  ;;  %v8559_v24 = vadd.f32 %v2650_v20, %v1989_v43  ;;  %v1994_v63 = vadd.f32 %v5790_v21, %v8464_v23  ;;  %v5825_v54 = vpop.f32.mrf.mxu0 }
 0x1a0   : > { %v1937_v10 = vpop.f32.mrf.mxu1 }
 0x1a1   : > { %9131 = vst [vmem:[#allocation24_spill] sm:$0xff] %v8559_v24  ;;  %v8562_v22 = vadd.f32 %v5824_v5, %v1994_v63  ;;  %v1992_v25 = vadd.f32 %v1937_v10, %v8467_v57  ;;  %v2666_v46 = vpop.f32.mrf.mxu0 }
 0x1a2   : > { %v5791_v4 = vpop.f32.mrf.mxu1 }
 0x1a3   : > { %9132 = vst [vmem:[#allocation26_spill] sm:$0xff] %v8562_v22  ;;  %v8565_v15 = vadd.f32 %v2663_v37, %v1992_v25  ;;  %v1995_v50 = vadd.f32 %v5791_v4, %v8471_v52  ;;  %v5828_v7 = vpop.f32.mrf.mxu0 }
 0x1a4   : > { %v1940_v1 = vpop.f32.mrf.mxu1 }
 0x1a5   : > { %9133 = vst [vmem:[#allocation28_spill] sm:$0xff] %v8565_v15  ;;  %v8568_v30 = vadd.f32 %v5825_v54, %v1995_v50  ;;  %v1993_v17 = vadd.f32 %v1940_v1, %v8475_v14  ;;  %v2679_v51 = vpop.f32.mrf.mxu0 }
 0x1a6   : > { %v5794_v23 = vpop.f32.mrf.mxu1 }
 0x1a7   : > { %9134 = vst [vmem:[#allocation7_spill] sm:$0xff] %v8568_v30  ;;  %v8571_v3 = vadd.f32 %v2666_v46, %v1993_v17  ;;  %v1998_v19 = vadd.f32 %v5794_v23, %v8478_v39  ;;  %v5829_v33 = vpop.f32.mrf.mxu0 }
 0x1a8   : > { %v1953_v57 = vpop.f32.mrf.mxu1 }
 0x1a9   : > { %9135 = vst [vmem:[#allocation6_spill] sm:$0xff] %v8571_v3  ;;  %v8574_v42 = vadd.f32 %v5828_v7, %v1998_v19  ;;  %v1996_v41 = vadd.f32 %v1953_v57, %v8481_v45  ;;  %v2682_v47 = vpop.f32.mrf.mxu0 }
 0x1aa   : > { %v5795_v52 = vpop.f32.mrf.mxu1 }
 0x1ab   : > { %9136 = vst [vmem:[#allocation9_spill] sm:$0xff] %v8574_v42  ;;  %v8577_v44 = vadd.f32 %v2679_v51, %v1996_v41  ;;  %v1999_v49 = vadd.f32 %v5795_v52, %v8484_v61  ;;  %v8580_v6 = vpop.f32.mrf.mxu0 }
 0x1ac   : > { %v1956_v14 = vpop.f32.mrf.mxu1 }
 0x1ad   : > { %9137 = vst [vmem:[#allocation8_spill] sm:$0xff] %v8577_v44  ;;  %v8582_v35 = vadd.f32 %v5829_v33, %v1999_v49  ;;  %v1997_v20 = vadd.f32 %v1956_v14, %v8487_v40  ;;  %v8585_v39 = vpop.f32.mrf.mxu0 }
 0x1ae   : > { %v5834_v36 = vpop.f32.mrf.mxu1 }
 0x1af   : > { %9138 = vst [vmem:[#allocation10_spill] sm:$0xff] %v8582_v35  ;;  %v8587_v32 = vadd.f32 %v2682_v47, %v1997_v20  ;;  %v8589_v5 = vpop.f32.mrf.mxu0 }
 0x1b0   : > { %v3037_v45 = vpop.f32.mrf.mxu1 }
 0x1b1   : > { %9139 = vst [vmem:[#allocation13_spill] sm:$0xff] %v8587_v32  ;;  %v8591_v28 = vpop.f32.mrf.mxu0 }
 0x1b2   : > { %v5835_v43 = vpop.f32.mrf.mxu1 }
 0x1b3   : > { %v8593_v37 = vpop.f32.mrf.mxu0 }
 0x1b4   : > { %v8595_v61 = vpop.f32.mrf.mxu1 }
 0x1b5   : > { %v8597_v21 = vpop.f32.mrf.mxu0 }
 0x1b6   : > { %v8599_v63 = vpop.f32.mrf.mxu1 }
 0x1b7   : > { %v8601_v40 = vpop.f32.mrf.mxu0 }
 0x1b8   : > { %v8603_v54 = vpop.f32.mrf.mxu1 }
 0x1b9   : > { %v8605_v10 = vpop.f32.mrf.mxu0 }
 0x1ba   : > { %v8607_v25 = vpop.f32.mrf.mxu1 }
 0x1bb   : > { %v8609_v46 = vpop.f32.mrf.mxu0 }
 0x1bc   : > { %v8611_v4 = vpop.f32.mrf.mxu1 }
 0x1bd   : > { %v8613_v50 = vpop.f32.mrf.mxu0 }
 0x1be   : > { %v8615_v7 = vpop.f32.mrf.mxu1 }
 0x1bf   : > { %v8617_v1 = vpop.f32.mrf.mxu0 }
 0x1c0   : > { %v8619_v17 = vpop.f32.mrf.mxu1 }
 0x1c1   : > { %v8621_v51 = vpop.f32.mrf.mxu0 }
 0x1c2   : > { %v8623_v23 = vpop.f32.mrf.mxu1 }
 0x1c3   : > { %v8625_v19 = vpop.f32.mrf.mxu0 }
 0x1c4   : > { %v8627_v33 = vpop.f32.mrf.mxu1 }
 0x1c5   : > { %v8629_v57 = vpop.f32.mrf.mxu0 }
 0x1c6   : > { %v8631_v41 = vpop.f32.mrf.mxu1 }
 0x1c7   : > { %v8633_v47 = vpop.f32.mrf.mxu0 }
 0x1c8   : > { %v8635_v52 = vpop.f32.mrf.mxu1 }
 0x1c9   : > { %v8637_v49 = vpop.f32.mrf.mxu0 }
 0x1ca   : > { %v8639_v14 = vpop.f32.mrf.mxu1 }
 0x1cb   : > { %v8641_v20 = vpop.f32.mrf.mxu0 }
 0x1cc   : > { %v8643_v32 = vpop.f32.mrf.mxu1 }
 0x1cd   : > { %v8645_v35 = vpop.f32.mrf.mxu0 }
 0x1ce   : > { %9140 = vst [vmem:[#allocation16_spill] sm:$0xff] %v8645_v35  ;;  %v8647_v44 = vpop.f32.mrf.mxu1 }
 0x1cf   : > { %v8649_v42 = vpop.f32.mrf.mxu0 }
 0x1d0   : > { %9141 = vst [vmem:[#allocation18_spill] sm:$0xff] %v8649_v42  ;;  %v8651_v3 = vpop.f32.mrf.mxu1 }
 0x1d1   : > { %v8653_v30 = vpop.f32.mrf.mxu0 }
 0x1d2   : > { %9142 = vst [vmem:[#allocation20_spill] sm:$0xff] %v8653_v30  ;;  %v8655_v15 = vpop.f32.mrf.mxu1 }
 0x1d3   : > { %9143 = vst [vmem:[#allocation23_spill] sm:$0xff] %v8655_v15  ;;  %v8657_v22 = vpop.f32.mrf.mxu0 }
 0x1d4   : > { %9144 = vst [vmem:[#allocation25_spill] sm:$0xff] %v8657_v22  ;;  %v8659_v24 = vpop.f32.mrf.mxu1 }
 0x1d5   : > { %9145 = vst [vmem:[#allocation27_spill] sm:$0xff] %v8659_v24  ;;  %v8661_v56 = vpop.f32.mrf.mxu0 }
 0x1d6   : > { %9146 = vst [vmem:[#allocation14_spill] sm:$0xff] %v8661_v56  ;;  %v8663_v55 = vpop.f32.mrf.mxu1 }
 0x1d7   : > { %9147 = vst [vmem:[#allocation11_spill] sm:$0xff] %v8663_v55  ;;  %v8665_v58 = vpop.f32.mrf.mxu0 }
 0x1d8   : > { %9148 = vst [vmem:[#allocation19_spill] sm:$0xff] %v8665_v58  ;;  %v8667_v59 = vpop.f32.mrf.mxu1 }
 0x1d9   : > { %9149 = vst [vmem:[#allocation15_spill] sm:$0xff] %v8667_v59  ;;  %v8669_v35 = vpop.f32.mrf.mxu0 }
 0x1da   : > { %9150 = vst [vmem:[#allocation29_spill] sm:$0xff] %v8669_v35  ;;  %v8671_v42 = vpop.f32.mrf.mxu1 }
 0x1db   : > { %9151 = vst [vmem:[#allocation30_spill] sm:$0xff] %v8671_v42  ;;  %v8673_v34 = vpop.f32.mrf.mxu0 }
 0x1dc   : > { %9152 = vst [vmem:[#allocation31_spill] sm:$0xff] %v8673_v34  ;;  %v8675_v30 = vpop.f32.mrf.mxu1 }
 0x1dd   : > { %9153 = vst [vmem:[#allocation32_spill] sm:$0xff] %v8675_v30  ;;  %v8677_v15 = vpop.f32.mrf.mxu0 }
 0x1de   : > { %9154 = vst [vmem:[#allocation33_spill] sm:$0xff] %v8677_v15  ;;  %v8679_v22 = vpop.f32.mrf.mxu1 }
 0x1df   : > { %9155 = vst [vmem:[#allocation34_spill] sm:$0xff] %v8679_v22  ;;  %v8681_v24 = vpop.f32.mrf.mxu0 }
 0x1e0   : > { %9156 = vst [vmem:[#allocation35_spill] sm:$0xff] %v8681_v24  ;;  %v8683_v56 = vpop.f32.mrf.mxu1  ;;  %v3166_v24 = vadd.f32 %v5834_v36, %v8490_v62  ;;  %v3165_v62 = vadd.f32 %v8595_v61, %v8499_v60  ;;  %v3168_v60 = vadd.f32 %v8603_v54, %v8505_v31 }
 0x1e1   : > { %9157 = vst [vmem:[#allocation36_spill] sm:$0xff] %v8683_v56  ;;  %v8685_v55 = vpop.f32.mrf.mxu0 }
 0x1e2   : > { %9158 = vst [vmem:[#allocation37_spill] sm:$0xff] %v8685_v55  ;;  %v8687_v58 = vpop.f32.mrf.mxu1  ;;  %v3530_v54 = vadd.f32 %v8597_v21, %v3168_v60  ;;  %v3174_v21 = vadd.f32 %v8615_v7, %v8514_v27 }
 0x1e3   : > { %9159 = vst [vmem:[#allocation38_spill] sm:$0xff] %v8687_v58  ;;  %v8689_v59 = vpop.f32.mrf.mxu0  ;;  %v3164_v58 = vadd.f32 %v3037_v45, %v8493_v0  ;;  %v3170_v0 = vadd.f32 %v8599_v63, %v8502_v48  ;;  %v8720_v45 = vld [vmem:[%s8932_s2] ss:$0 sm:$0xff] }
 0x1e4   : > { %9160 = vst [vmem:[#allocation39_spill] sm:$0xff] %v8689_v59  ;;  %v8691_v35 = vpop.f32.mrf.mxu1 }
 0x1e5   : > { %9161 = vst [vmem:[#allocation40_spill] sm:$0xff] %v8691_v35  ;;  %v8693_v34 = vpop.f32.mrf.mxu0 }
 0x1e6   : > { %9162 = vst [vmem:[#allocation41_spill] sm:$0xff] %v8693_v34  ;;  %v8695_v30 = vpop.f32.mrf.mxu1  ;;  %v3528_v34 = vadd.f32 %v8580_v6, %v3166_v24 }
 0x1e7   : > { %9163 = vst [vmem:[#allocation42_spill] sm:$0xff] %v8695_v30  ;;  %v8697_v15 = vpop.f32.mrf.mxu0  ;;  %v3167_v30 = vadd.f32 %v5835_v43, %v8496_v26 }
 0x1e8   : > { %9164 = vst [vmem:[#allocation43_spill] sm:$0xff] %v8697_v15  ;;  %v8699_v22 = vpop.f32.mrf.mxu1 }
 0x1e9   : > { %9165 = vst [vmem:[#allocation44_spill] sm:$0xff] %v8699_v22  ;;  %v8702_v56 = vpop.f32.mrf.mxu0  ;;  %v3526_v22 = vadd.f32 %v8585_v39, %v3164_v58  ;;  %v3529_v26 = vadd.f32 %v8589_v5, %v3167_v30  ;;  %v3171_v30 = vadd.f32 %v8607_v25, %v8508_v38 }
 0x1ea   : > { %9166 = vst [vmem:[#allocation45_spill] sm:$0xff] %v8702_v56  ;;  %v8704_v55 = vpop.f32.mrf.mxu1 }
 0x1eb   : > { %v5936_v59 = vpop.f32.mrf.mxu0 }
 0x1ec   : > { %v8707_v42 = vpop.f32.mrf.mxu1 }
 0x1ed   : > { %9167 = vst [vmem:[#allocation46_spill] sm:$0xff] %v8707_v42  ;;  %v4595_v35 = vpop.f32.mrf.mxu0  ;;  %v3532_v42 = vadd.f32 %v8593_v37, %v3170_v0  ;;  %v3533_v0 = vadd.f32 %v8601_v40, %v3171_v30 }
 0x1ee   : > { %v5902_v15 = vpop.f32.mrf.mxu1 }
 0x1ef   : > { %v4254_v36 = vadd.f32 %v5902_v15, %v3528_v34  ;;  %v5937_v56 = vpop.f32.mrf.mxu0  ;;  %v3527_v15 = vadd.f32 %v8591_v28, %v3165_v62  ;;  %v3169_v28 = vadd.f32 %v8611_v4, %v8511_v2 }
 0x1f0   : > { %v4125_v24 = vpop.f32.mrf.mxu1 }
 0x1f1   : > { %v4724_v6 = vadd.f32 %v5936_v59, %v4254_v36  ;;  %v4252_v58 = vadd.f32 %v4125_v24, %v3526_v22  ;;  %v4598_v39 = vpop.f32.mrf.mxu0 }
 0x1f2   : > { %v5903_v34 = vpop.f32.mrf.mxu1 }
 0x1f3   : > { %v4763_v48 = vadd.f32 %v8720_v45, %v4724_v6  ;;  %v4722_v43 = vadd.f32 %v4595_v35, %v4252_v58  ;;  %v4255_v61 = vadd.f32 %v5903_v34, %v3529_v26  ;;  %v5940_v63 = vpop.f32.mrf.mxu0  ;;  %v3531_v34 = vadd.f32 %v8605_v10, %v3169_v28 }
 0x1f4   : > { %v4128_v5 = vpop.f32.mrf.mxu1  ;;  %v3178_v28 = vadd.f32 %v8631_v41, %v8526_v53 }
 0x1f5   : > { %v4795_v59 = vmax.f32 %v4763_v48, 0.0  ;;  %v4761_v22 = vadd.f32 %v8720_v45, %v4722_v43  ;;  %v4725_v36 = vadd.f32 %v5937_v56, %v4255_v61  ;;  %v4253_v24 = vadd.f32 %v4128_v5, %v3527_v15  ;;  %v4611_v31 = vpop.f32.mrf.mxu0 }
 0x1f6   : > { %v5906_v35 = vpop.f32.mrf.mxu1  ;;  %v3536_v43 = vadd.f32 %v8609_v46, %v3174_v21  ;;  %v3175_v61 = vadd.f32 %v8623_v23, %v8520_v13 }
 0x1f7   : > { %4827 = vst [vmem:[%s8736_s9 + $0x10] sm:$0xff] %v4795_v59  ;;  %v4793_v37 = vmax.f32 %v4761_v22, 0.0  ;;  %v4764_v38 = vadd.f32 %v8720_v45, %v4725_v36  ;;  %v4723_v25 = vadd.f32 %v4598_v39, %v4253_v24  ;;  %v4258_v62 = vadd.f32 %v5906_v35, %v3532_v42  ;;  %v5941_v56 = vpop.f32.mrf.mxu0 }
 0x1f8   : > { %v4141_v26 = vpop.f32.mrf.mxu1  ;;  %v3172_v42 = vadd.f32 %v8619_v17, %v8517_v18  ;;  %v3173_v22 = vadd.f32 %v8627_v33, %v8523_v8 }
 0x1f9   : > { %4825 = vst [vmem:[%s8736_s9] sm:$0xff] %v4793_v37  ;;  %v4796_v2 = vmax.f32 %v4764_v38, 0.0  ;;  %v4762_v4 = vadd.f32 %v8720_v45, %v4723_v25  ;;  %v4728_v6 = vadd.f32 %v5940_v63, %v4258_v62  ;;  %v4256_v58 = vadd.f32 %v4141_v26, %v3530_v54  ;;  %v4614_v60 = vpop.f32.mrf.mxu0 }
 0x1fa   : > { %v5907_v39 = vpop.f32.mrf.mxu1  ;;  %v3534_v59 = vadd.f32 %v8613_v50, %v3172_v42  ;;  %v3537_v54 = vadd.f32 %v8617_v1, %v3175_v61  ;;  %v3535_v25 = vadd.f32 %v8621_v51, %v3173_v22  ;;  %v3176_v62 = vadd.f32 %v8635_v52, %v8529_v12 }
 0x1fb   : > { %4828 = vst [vmem:[%s8736_s9 + $0x18] sm:$0xff] %v4796_v2  ;;  %v4794_v40 = vmax.f32 %v4762_v4, 0.0  ;;  %v4767_v15 = vadd.f32 %v8720_v45, %v4728_v6  ;;  %v4726_v27 = vadd.f32 %v4611_v31, %v4256_v58  ;;  %v4259_v7 = vadd.f32 %v5907_v39, %v3533_v0  ;;  %v5944_v48 = vpop.f32.mrf.mxu0 }
 0x1fc   : > { %v4144_v63 = vpop.f32.mrf.mxu1  ;;  %v3540_v26 = vadd.f32 %v8625_v19, %v3178_v28  ;;  %v3179_v2 = vadd.f32 %v8639_v14, %v8532_v16 }
 0x1fd   : > { %4826 = vst [vmem:[%s8736_s9 + $0x8] sm:$0xff] %v4794_v40  ;;  %v4799_v10 = vmax.f32 %v4767_v15, 0.0  ;;  %v4765_v30 = vadd.f32 %v8720_v45, %v4726_v27  ;;  %v4729_v18 = vadd.f32 %v5941_v56, %v4259_v7  ;;  %v4257_v17 = vadd.f32 %v4144_v63, %v3531_v34  ;;  %v4627_v5 = vpop.f32.mrf.mxu0 }
 0x1fe   : > { %v5910_v36 = vpop.f32.mrf.mxu1  ;;  %v3177_v34 = vadd.f32 %v8643_v32, %v8535_v11  ;;  %v3541_v15 = vadd.f32 %v8633_v47, %v3179_v2  ;;  %v3182_v27 = vadd.f32 %v8647_v44, %v8538_v29  ;;  %v3180_v63 = vadd.f32 %v8651_v3, %v8541_v9 }
 0x1ff   : > { %4831 = vst [vmem:[%s8736_s9 + $0x30] sm:$0xff] %v4799_v10  ;;  %v4797_v46 = vmax.f32 %v4765_v30, 0.0  ;;  %v4768_v24 = vadd.f32 %v8720_v45, %v4729_v18  ;;  %v4727_v13 = vadd.f32 %v4614_v60, %v4257_v17  ;;  %v4262_v23 = vadd.f32 %v5910_v36, %v3536_v43  ;;  %v5945_v31 = vpop.f32.mrf.mxu0 }
 0x200   : > { %v4157_v35 = vpop.f32.mrf.mxu1  ;;  %v3538_v60 = vadd.f32 %v8629_v57, %v3176_v62  ;;  %v3539_v61 = vadd.f32 %v8637_v49, %v3177_v34  ;;  %v3544_v17 = vadd.f32 %v8641_v20, %v3182_v27  ;;  %v9174_v62 = vld [vmem:[#allocation22_spill] sm:$0xff] }
 0x201   : > { %4829 = vst [vmem:[%s8736_s9 + $0x20] sm:$0xff] %v4797_v46  ;;  %v4800_v50 = vmax.f32 %v4768_v24, 0.0  ;;  %v4766_v37 = vadd.f32 %v8720_v45, %v4727_v13  ;;  %v4732_v8 = vadd.f32 %v5944_v48, %v4262_v23  ;;  %v4260_v33 = vadd.f32 %v4157_v35, %v3534_v59  ;;  %v4630_v38 = vpop.f32.mrf.mxu0  ;;  %v9169_v59 = vld [vmem:[#allocation23_spill] sm:$0xff]  ;;  %v9170_v13 = vld [vmem:[#allocation16_spill] sm:$0xff] }
 0x202   : > { %v5911_v56 = vpop.f32.mrf.mxu1  ;;  %v3542_v23 = vadd.f32 %v9170_v13, %v3180_v63 }
 0x203   : > { %4832 = vst [vmem:[%s8736_s9 + $0x38] sm:$0xff] %v4800_v50  ;;  %v4798_v1 = vmax.f32 %v4766_v37, 0.0  ;;  %v4771_v0 = vadd.f32 %v8720_v45, %v4732_v8  ;;  %v4730_v53 = vadd.f32 %v4627_v5, %v4260_v33  ;;  %v4263_v41 = vadd.f32 %v5911_v56, %v3537_v54  ;;  %v5948_v21 = vpop.f32.mrf.mxu0  ;;  %v9168_v5 = vld [vmem:[#allocation5_spill] sm:$0xff]  ;;  %v9172_v54 = vld [vmem:[#allocation27_spill] sm:$0xff] }
 0x204   : > { %v4160_v4 = vpop.f32.mrf.mxu1  ;;  %v3183_v22 = vadd.f32 %v9169_v59, %v9168_v5  ;;  %v9175_v56 = vld [vmem:[#allocation11_spill] sm:$0xff] }
 0x205   : > { %4830 = vst [vmem:[%s8736_s9 + $0x28] sm:$0xff] %v4798_v1  ;;  %v4803_v51 = vmax.f32 %v4771_v0, 0.0  ;;  %v4769_v6 = vadd.f32 %v8720_v45, %v4730_v53  ;;  %v4733_v12 = vadd.f32 %v5945_v31, %v4263_v41  ;;  %v4261_v52 = vadd.f32 %v4160_v4, %v3535_v25  ;;  %v4643_v58 = vpop.f32.mrf.mxu0  ;;  %v9171_v31 = vld [vmem:[#allocation17_spill] sm:$0xff]  ;;  %v9176_v4 = vld [vmem:[#allocation20_spill] sm:$0xff] }
 0x206   : > { %v5914_v42 = vpop.f32.mrf.mxu1  ;;  %v3181_v28 = vadd.f32 %v9172_v54, %v9171_v31  ;;  %v3186_v1 = vadd.f32 %v9175_v56, %v9174_v62 }
 0x207   : > { %4835 = vst [vmem:[%s8736_s9 + $0x50] sm:$0xff] %v4803_v51  ;;  %v4801_v19 = vmax.f32 %v4769_v6, 0.0  ;;  %v4772_v39 = vadd.f32 %v8720_v45, %v4733_v12  ;;  %v4731_v16 = vadd.f32 %v4630_v38, %v4261_v52  ;;  %v4266_v14 = vadd.f32 %v5914_v42, %v3540_v26  ;;  %v5949_v40 = vpop.f32.mrf.mxu0  ;;  %v9173_v38 = vld [vmem:[#allocation18_spill] sm:$0xff]  ;;  %v9177_v6 = vld [vmem:[#allocation12_spill] sm:$0xff]  ;;  %v9178_v12 = vld [vmem:[#allocation15_spill] sm:$0xff] }
 0x208   : > { %v4173_v7 = vpop.f32.mrf.mxu1  ;;  %v3545_v25 = vadd.f32 %v9173_v38, %v3183_v22  ;;  %v3543_v51 = vadd.f32 %v9176_v4, %v3181_v28  ;;  %v3184_v52 = vadd.f32 %v9178_v12, %v9177_v6  ;;  %v9185_v22 = vld [vmem:[#allocation19_spill] sm:$0xff]  ;;  %v9188_v28 = vld [vmem:[#allocation29_spill] sm:$0xff] }
 0x209   : > { %4833 = vst [vmem:[%s8736_s9 + $0x40] sm:$0xff] %v4801_v19  ;;  %v4804_v57 = vmax.f32 %v4772_v39, 0.0  ;;  %v4770_v48 = vadd.f32 %v8720_v45, %v4731_v16  ;;  %v4736_v11 = vadd.f32 %v5948_v21, %v4266_v14  ;;  %v4264_v32 = vadd.f32 %v4173_v7, %v3538_v60  ;;  %v4646_v43 = vpop.f32.mrf.mxu0  ;;  %v9179_v16 = vld [vmem:[#allocation25_spill] sm:$0xff] }
 0x20a   : > { %v5915_v10 = vpop.f32.mrf.mxu1  ;;  %v3548_v14 = vadd.f32 %v9179_v16, %v3186_v1  ;;  %v9191_v1 = vld [vmem:[#allocation31_spill] sm:$0xff] }
 0x20b   : > { %4836 = vst [vmem:[%s8736_s9 + $0x58] sm:$0xff] %v4804_v57  ;;  %v4802_v47 = vmax.f32 %v4770_v48, 0.0  ;;  %v4775_v30 = vadd.f32 %v8720_v45, %v4736_v11  ;;  %v4734_v29 = vadd.f32 %v4643_v58, %v4264_v32  ;;  %v4267_v44 = vadd.f32 %v5915_v10, %v3541_v15  ;;  %v5952_v18 = vpop.f32.mrf.mxu0  ;;  %v9181_v15 = vld [vmem:[#allocation30_spill] sm:$0xff]  ;;  %v9183_v10 = vld [vmem:[#allocation24_spill] sm:$0xff] }
 0x20c   : > { %v4176_v36 = vpop.f32.mrf.mxu1 }
 0x20d   : > { %4834 = vst [vmem:[%s8736_s9 + $0x48] sm:$0xff] %v4802_v47  ;;  %v4807_v49 = vmax.f32 %v4775_v30, 0.0  ;;  %v4773_v46 = vadd.f32 %v8720_v45, %v4734_v29  ;;  %v4737_v9 = vadd.f32 %v5949_v40, %v4267_v44  ;;  %v4265_v3 = vadd.f32 %v4176_v36, %v3539_v61  ;;  %v4659_v24 = vpop.f32.mrf.mxu0  ;;  %v9180_v40 = vld [vmem:[#allocation21_spill] sm:$0xff]  ;;  %v9182_v61 = vld [vmem:[#allocation14_spill] sm:$0xff]  ;;  %v9184_v47 = vld [vmem:[#allocation32_spill] sm:$0xff] }
 0x20e   : > { %v5918_v35 = vpop.f32.mrf.mxu1  ;;  %v3187_v27 = vadd.f32 %v9181_v15, %v9180_v40  ;;  %v3546_v63 = vadd.f32 %v9182_v61, %v3184_v52  ;;  %v3185_v30 = vadd.f32 %v9184_v47, %v9183_v10  ;;  %v9194_v52 = vld [vmem:[#allocation33_spill] sm:$0xff] }
 0x20f   : > { %4839 = vst [vmem:[%s8736_s9 + $0x70] sm:$0xff] %v4807_v49  ;;  %v4805_v20 = vmax.f32 %v4773_v46, 0.0  ;;  %v4776_v50 = vadd.f32 %v8720_v45, %v4737_v9  ;;  %v4735_v37 = vadd.f32 %v4646_v43, %v4265_v3  ;;  %v4270_v8 = vadd.f32 %v5918_v35, %v3544_v17  ;;  %v5953_v33 = vpop.f32.mrf.mxu0  ;;  %v9186_v49 = vld [vmem:[#allocation26_spill] sm:$0xff] }
 0x210   : > { %v4189_v0 = vpop.f32.mrf.mxu1  ;;  %v3549_v36 = vadd.f32 %v9185_v22, %v3187_v27  ;;  %v9187_v46 = vld [vmem:[#allocation34_spill] sm:$0xff]  ;;  %v3547_v35 = vadd.f32 %v9188_v28, %v3185_v30  ;;  %v9197_v27 = vld [vmem:[#allocation35_spill] sm:$0xff]  ;;  %v9200_v30 = vld [vmem:[#allocation37_spill] sm:$0xff] }
 0x211   : > { %4837 = vst [vmem:[%s8736_s9 + $0x60] sm:$0xff] %v4805_v20  ;;  %v4808_v53 = vmax.f32 %v4776_v50, 0.0  ;;  %v4774_v41 = vadd.f32 %v8720_v45, %v4735_v37  ;;  %v4740_v21 = vadd.f32 %v5952_v18, %v4270_v8  ;;  %v4268_v26 = vadd.f32 %v4189_v0, %v3542_v23  ;;  %v4662_v2 = vpop.f32.mrf.mxu0  ;;  %v9189_v20 = vld [vmem:[#allocation28_spill] sm:$0xff] }
 0x212   : > { %v5919_v58 = vpop.f32.mrf.mxu1  ;;  %v3190_v9 = vadd.f32 %v9187_v46, %v9186_v49  ;;  %v9190_v50 = vld [vmem:[#allocation36_spill] sm:$0xff] }
 0x213   : > { %4840 = vst [vmem:[%s8736_s9 + $0x78] sm:$0xff] %v4808_v53  ;;  %v4806_v60 = vmax.f32 %v4774_v41, 0.0  ;;  %v4779_v34 = vadd.f32 %v8720_v45, %v4740_v21  ;;  %v4738_v42 = vadd.f32 %v4659_v24, %v4268_v26  ;;  %v4271_v19 = vadd.f32 %v5919_v58, %v3545_v25  ;;  %v9192_v53 = vld [vmem:[#allocation7_spill] sm:$0xff]  ;;  %v9193_v41 = vld [vmem:[#allocation38_spill] sm:$0xff] }
 0x214   : > { %v5956_v39 = vpop.f32.mrf.mxu0  ;;  %v4192_v7 = vpop.f32.mrf.mxu1  ;;  %v3188_v37 = vadd.f32 %v9190_v50, %v9189_v20  ;;  %v3552_v0 = vadd.f32 %v9191_v1, %v3190_v9  ;;  %v3191_v21 = vadd.f32 %v9193_v41, %v9192_v53  ;;  %v9203_v9 = vld [vmem:[#allocation39_spill] sm:$0xff]  ;;  %v9205_v20 = vld [vmem:[#allocation41_spill] sm:$0xff] }
 0x215   : > { %4838 = vst [vmem:[%s8736_s9 + $0x68] sm:$0xff] %v4806_v60  ;;  %v4811_v57 = vmax.f32 %v4779_v34, 0.0  ;;  %v4777_v48 = vadd.f32 %v8720_v45, %v4738_v42  ;;  %v4741_v11 = vadd.f32 %v5953_v33, %v4271_v19  ;;  %v4269_v32 = vadd.f32 %v4192_v7, %v3543_v51  ;;  %v9195_v60 = vld [vmem:[#allocation6_spill] sm:$0xff]  ;;  %v9196_v34 = vld [vmem:[#allocation40_spill] sm:$0xff] }
 0x216   : > { %v4675_v43 = vpop.f32.mrf.mxu0  ;;  %v5922_v29 = vpop.f32.mrf.mxu1  ;;  %v3550_v58 = vadd.f32 %v9194_v52, %v3188_v37  ;;  %v3189_v42 = vadd.f32 %v9196_v34, %v9195_v60  ;;  %v3553_v7 = vadd.f32 %v9197_v27, %v3191_v21  ;;  %v9206_v37 = vld [vmem:[#allocation13_spill] sm:$0xff] }
 0x217   : > { %4843 = vst [vmem:[%s8736_s9 + $0x90] sm:$0xff] %v4811_v57  ;;  %v4809_v44 = vmax.f32 %v4777_v48, 0.0  ;;  %v4780_v18 = vadd.f32 %v8720_v45, %v4741_v11  ;;  %v4739_v17 = vadd.f32 %v4662_v2, %v4269_v32  ;;  %v4274_v5 = vadd.f32 %v5922_v29, %v3548_v14  ;;  %v9198_v57 = vld [vmem:[#allocation9_spill] sm:$0xff]  ;;  %v9199_v48 = vld [vmem:[#allocation42_spill] sm:$0xff] }
 0x218   : > { %v5957_v59 = vpop.f32.mrf.mxu0  ;;  %v4205_v3 = vpop.f32.mrf.mxu1  ;;  %v3194_v11 = vadd.f32 %v9199_v48, %v9198_v57  ;;  %v3551_v29 = vadd.f32 %v9200_v30, %v3189_v42 }
 0x219   : > { %4841 = vst [vmem:[%s8736_s9 + $0x80] sm:$0xff] %v4809_v44  ;;  %v4812_v24 = vmax.f32 %v4780_v18, 0.0  ;;  %v4778_v13 = vadd.f32 %v8720_v45, %v4739_v17  ;;  %v4744_v23 = vadd.f32 %v5956_v39, %v4274_v5  ;;  %v4272_v31 = vadd.f32 %v4205_v3, %v3546_v63  ;;  %v9201_v44 = vld [vmem:[#allocation8_spill] sm:$0xff] }
 0x21a   : > { %v4678_v54 = vpop.f32.mrf.mxu0  ;;  %v5923_v8 = vpop.f32.mrf.mxu1  ;;  %v9202_v18 = vld [vmem:[#allocation44_spill] sm:$0xff]  ;;  %v3556_v3 = vadd.f32 %v9203_v9, %v3194_v11 }
 0x21b   : > { %4844 = vst [vmem:[%s8736_s9 + $0x98] sm:$0xff] %v4812_v24  ;;  %v4810_v33 = vmax.f32 %v4778_v13, 0.0  ;;  %v4783_v38 = vadd.f32 %v8720_v45, %v4744_v23  ;;  %v4742_v25 = vadd.f32 %v4675_v43, %v4272_v31  ;;  %v4275_v62 = vadd.f32 %v5923_v8, %v3549_v36  ;;  %v9204_v24 = vld [vmem:[#allocation10_spill] sm:$0xff] }
 0x21c   : > { %v5960_v56 = vpop.f32.mrf.mxu0  ;;  %v4208_v26 = vpop.f32.mrf.mxu1  ;;  %v3192_v17 = vadd.f32 %v9202_v18, %v9201_v44  ;;  %v3195_v13 = vadd.f32 %v8704_v55, %v9204_v24  ;;  %v9207_v8 = vld [vmem:[#allocation46_spill] sm:$0xff] }
 0x21d   : > { %4842 = vst [vmem:[%s8736_s9 + $0x88] sm:$0xff] %v4810_v33  ;;  %v4815_v2 = vmax.f32 %v4783_v38, 0.0  ;;  %v4781_v4 = vadd.f32 %v8720_v45, %v4742_v25  ;;  %v4745_v51 = vadd.f32 %v5957_v59, %v4275_v62  ;;  %v4273_v6 = vadd.f32 %v4208_v26, %v3547_v35 }
 0x21e   : > { %v4691_v12 = vpop.f32.mrf.mxu0  ;;  %v5926_v19 = vpop.f32.mrf.mxu1  ;;  %v3554_v50 = vadd.f32 %v9205_v20, %v3192_v17  ;;  %v3193_v33 = vadd.f32 %v9207_v8, %v9206_v37 }
 0x21f   : > { %4847 = vst [vmem:[%s8736_s9 + $0xb0] sm:$0xff] %v4815_v2  ;;  %v4813_v39 = vmax.f32 %v4781_v4, 0.0  ;;  %v4784_v16 = vadd.f32 %v8720_v45, %v4745_v51  ;;  %v4743_v14 = vadd.f32 %v4678_v54, %v4273_v6  ;;  %v4278_v40 = vadd.f32 %v5926_v19, %v3552_v0  ;;  %v9208_v0 = vld [vmem:[#allocation43_spill] sm:$0xff]  ;;  %v9209_v51 = vld [vmem:[#allocation45_spill] sm:$0xff] }
 0x220   : > { %v5961_v15 = vpop.f32.mrf.mxu0  ;;  %v4221_v32 = vpop.f32.mrf.mxu1  ;;  %v3557_v53 = vadd.f32 %v9208_v0, %v3195_v13  ;;  %v3555_v6 = vadd.f32 %v9209_v51, %v3193_v33 }
 0x221   : > { %4845 = vst [vmem:[%s8736_s9 + $0xa0] sm:$0xff] %v4813_v39  ;;  %v4816_v43 = vmax.f32 %v4784_v16, 0.0  ;;  %v4782_v61 = vadd.f32 %v8720_v45, %v4743_v14  ;;  %v4748_v63 = vadd.f32 %v5960_v56, %v4278_v40  ;;  %v4276_v10 = vadd.f32 %v4221_v32, %v3550_v58 }
 0x222   : > { %v4694_v47 = vpop.f32.mrf.mxu0  ;;  %v5927_v5 = vpop.f32.mrf.mxu1 }
 0x223   : > { %4848 = vst [vmem:[%s8736_s9 + $0xb8] sm:$0xff] %v4816_v43  ;;  %v4814_v59 = vmax.f32 %v4782_v61, 0.0  ;;  %v4787_v22 = vadd.f32 %v8720_v45, %v4748_v63  ;;  %v4746_v36 = vadd.f32 %v4691_v12, %v4276_v10  ;;  %v4279_v49 = vadd.f32 %v5927_v5, %v3553_v7 }
 0x224   : > { %v5964_v46 = vpop.f32.mrf.mxu0  ;;  %v4224_v23 = vpop.f32.mrf.mxu1 }
 0x225   : > { %4846 = vst [vmem:[%s8736_s9 + $0xa8] sm:$0xff] %v4814_v59  ;;  %v4819_v31 = vmax.f32 %v4787_v22, 0.0  ;;  %v4785_v54 = vadd.f32 %v8720_v45, %v4746_v36  ;;  %v4749_v28 = vadd.f32 %v5961_v15, %v4279_v49  ;;  %v4277_v35 = vadd.f32 %v4224_v23, %v3551_v29 }
 0x226   : > { %v5930_v38 = vpop.f32.mrf.mxu1  ;;  %v4707_v25 = vpop.f32.mrf.mxu0 }
 0x227   : > { %4851 = vst [vmem:[%s8736_s9 + $0xd0] sm:$0xff] %v4819_v31  ;;  %v4817_v62 = vmax.f32 %v4785_v54, 0.0  ;;  %v4788_v55 = vadd.f32 %v8720_v45, %v4749_v28  ;;  %v4747_v56 = vadd.f32 %v4694_v47, %v4277_v35  ;;  %v4282_v1 = vadd.f32 %v5930_v38, %v3556_v3 }
 0x228   : > { %v4237_v41 = vpop.f32.mrf.mxu1  ;;  %v5965_v52 = vpop.f32.mrf.mxu0 }
 0x229   : > { %4849 = vst [vmem:[%s8736_s9 + $0xc0] sm:$0xff] %v4817_v62  ;;  %v4820_v21 = vmax.f32 %v4788_v55, 0.0  ;;  %v4786_v26 = vadd.f32 %v8720_v45, %v4747_v56  ;;  %v4752_v2 = vadd.f32 %v5964_v46, %v4282_v1  ;;  %v4280_v4 = vadd.f32 %v4237_v41, %v3554_v50 }
 0x22a   : > { %v5931_v12 = vpop.f32.mrf.mxu1  ;;  %v4710_v15 = vpop.f32.mrf.mxu0 }
 0x22b   : > { %4852 = vst [vmem:[%s8736_s9 + $0xd8] sm:$0xff] %v4820_v21  ;;  %v4818_v58 = vmax.f32 %v4786_v26, 0.0  ;;  %v4791_v60 = vadd.f32 %v8720_v45, %v4752_v2  ;;  %v4750_v34 = vadd.f32 %v4707_v25, %v4280_v4  ;;  %v4283_v42 = vadd.f32 %v5931_v12, %v3557_v53 }
 0x22c   : > { %v4240_v19 = vpop.f32.mrf.mxu1 }
 0x22d   : > { %4850 = vst [vmem:[%s8736_s9 + $0xc8] sm:$0xff] %v4818_v58  ;;  %v4823_v39 = vmax.f32 %v4791_v60, 0.0  ;;  %v4789_v16 = vadd.f32 %v8720_v45, %v4750_v34  ;;  %v4753_v14 = vadd.f32 %v5965_v52, %v4283_v42  ;;  %v4281_v40 = vadd.f32 %v4240_v19, %v3555_v6 }
 0x22f   : > { %4855 = vst [vmem:[%s8736_s9 + $0xf0] sm:$0xff] %v4823_v39  ;;  %v4821_v27 = vmax.f32 %v4789_v16, 0.0  ;;  %v4792_v7 = vadd.f32 %v8720_v45, %v4753_v14  ;;  %v4751_v57 = vadd.f32 %v4710_v15, %v4281_v40 }
 0x231   : > { %4853 = vst [vmem:[%s8736_s9 + $0xe0] sm:$0xff] %v4821_v27  ;;  %v4824_v48 = vmax.f32 %v4792_v7, 0.0  ;;  %v4790_v11 = vadd.f32 %v8720_v45, %v4751_v57 }
 0x233   : > { %4856 = vst [vmem:[%s8736_s9 + $0xf8] sm:$0xff] %v4824_v48  ;;  %v4822_v32 = vmax.f32 %v4790_v11, 0.0 }
 0x235   : > { %4854 = vst [vmem:[%s8736_s9 + $0xe8] sm:$0xff] %v4822_v32 }
 0x236   : > { %6099 = shalt.err (!%p6096_p5)
}
 0x237   : > { %s6100_s29 = scalar_lea.hbm %s8877_s21, 4096  ;;  %s6104_s5 = scalar_lea.hbm %s8933_s3, 8192 }
 0x238   : > { %p6101_p6 = scmp.ne.s32.totalorder %s8877_s21, %s6100_s29  ;;  %p6105_p10 = scmp.lt.s32.totalorder %s8877_s21, %s8933_s3 }
 0x239   : > { %p6106_p11 = scmp.lt.s32.totalorder %s6104_s5, %s6100_s29 }
 0x23a   : > { %p6102_p7 = pnand %p6101_p6, %p6227_p4 }
 0x23b   : > { %p6107_p12 = por %p6106_p11, %p6105_p10 }
 0x23c   : > { %p6103_p9 = pneg %p6102_p7 }
 0x23e   : > { %p6108_p13 = pnand %p6107_p12, %p6103_p9 }
 0x240   : > { %6111 = shalt.err (!%p6108_p13)
}
 0x241   : > { %s6165_s8 = smov 128   ;;  %s6166_s9 = smov 8  }
 0x242   : > { %5979 = dma.vmem_to_hbm [thread:$0]  (%p6227_p4), %s8879_s11, 4096, %s8877_s21, %s8885_s15, %s6165_s8, %s6165_s8, %s6166_s9  }
 0x243 PF: > { %p5985_p0 = scmp.ge.s32.totalorder %s6162_s17, 2  ;;  %s4889_s10 = sand.u32 1, %s6142_s12  }
 0x244   : > { %s4890_s18 = scalar_lea.sflag [#allocation3], %s4889_s10 }
 0x245   : > { %p5982_p1 = pnand %p5985_p0, %p6234_p8 }
 0x247   : > { %p5983_p2 = pneg %p5982_p1 }
 0x249   : > { %6137 = dma.done.wait (%p5983_p2), %s4890_s18, 4096  }
 0x24a   : > { %6139 = vsyncadd (%p5983_p2), %s4890_s18, 4294963200  ;;  %s16_s17 = sadd.s32 1, %s6162_s17   ;;  %s9210_s12 = smov %s6146_s13 }
 0x24b   : > { %p13_p3 = scmp.ge.s32.totalorder %s16_s17, 4   ;;  %s9211_s13 = smov %s6150_s14 }
 0x24c   : > { %s9212_s14 = smov %s6240_s25  ;;  %s9213_s15 = smov %s6158_s16 }
 0x24d   : > { %s9214_s16 = smov %s9216_s20  ;;  %15 = sbr.rel (!%p13_p3) target bundleno = 4 (0x4), region = 78 }
 0x252   :  { %4895 = vsyncpa [#allocation3], 1 }
 0x253   :  { %4897 = vsyncpa [#allocation3 + $0x1], 1 }

</bundles_post_ra>
